<compile_context>
chip_gen: v5e
topology: v5e:2x2
jax: 0.10.0
libtpu: 0.0.40
codegen_flags: <defaults>
</compile_context>

<pallas_src>
import functools

import jax
import jax.numpy as jnp
from jax.experimental import pallas as pl
from jax.experimental.pallas import tpu as pltpu


_MAX_PACKED_ROWS = 1024   # 1024 packed rows == 8192 original rows at P=8.


def _pick_pack(m, max_p=8):
    """Largest power-of-two packing factor (<= max_p) that divides the row count."""
    p = max_p
    while p > 1 and m % p:
        p //= 2
    return p


def _pack_rows(x2d, p):
    m, c = x2d.shape
    return x2d.reshape(m // p, p * c)


def _blockdiag(w, p, dtype):
    w = w.astype(dtype)
    if p == 1:
        return w
    return jnp.kron(jnp.eye(p, dtype=dtype), w)


def _tile_row(v, p):
    return jnp.tile(v.reshape(1, -1).astype(jnp.float32), (1, p))


def _row_grid(mp):
    tm = min(mp, _MAX_PACKED_ROWS)
    return tm, pl.cdiv(mp, tm)


def _row_spec(tm, c):
    return pl.BlockSpec((tm, c), lambda i: (i, 0))


def _const_spec(shape):
    # Small weight/bias operand kept resident in VMEM across the whole row grid.
    return pl.BlockSpec(shape, lambda *_: (0,) * len(shape))


def _cparams():
    return pltpu.CompilerParams(
        dimension_semantics=("parallel",),        # shards the grid across TCs on v7x
        vmem_limit_bytes=64 * 1024 * 1024)        # sized against v7x's 64 MiB per TC


# ----------------------------- Pallas kernels -------------------------------

def _matmul_bias_kernel(x_ref, w_ref, b_ref, o_ref):
    """1x1 conv (channel matmul, block-diagonal packed) + bias."""
    y = jnp.dot(x_ref[...], w_ref[...], preferred_element_type=jnp.float32)
    o_ref[...] = (y + b_ref[...]).astype(o_ref.dtype)


def _gate_skip_kernel(xt_ref, xd_ref, w0_ref, w1_ref, bfg_ref, ws_ref, bs_ref,
                      gated_ref, skip_ref, *, half):
    """Dilated (1,2) temporal conv pair + tanh/sigmoid gate + skip 1x1 conv.

    xt/xd are the t and t+d time windows of the residual stream (packed rows);
    w0/w1 are the two temporal taps with columns laid out as
    [all filter groups | all gate groups], so the f/g split below is an aligned
    lane slice (128 lanes at P=8, Cd=16) instead of a masked select.
    """
    fg = (jnp.dot(xt_ref[...], w0_ref[...], preferred_element_type=jnp.float32)
          + jnp.dot(xd_ref[...], w1_ref[...], preferred_element_type=jnp.float32)
          + bfg_ref[...])
    gated = jnp.tanh(fg[:, :half]) * jax.nn.sigmoid(fg[:, half:])
    gated_ref[...] = gated.astype(gated_ref.dtype)
    s = jnp.dot(gated.astype(ws_ref.dtype), ws_ref[...],
                preferred_element_type=jnp.float32) + bs_ref[...]
    skip_ref[...] = s.astype(skip_ref.dtype)


def _agg_kernel(a_ref, h_ref, o_ref):
    """Neighbor aggregation for one batch element: agg = A @ h, h as [N, To*C]."""
    o_ref[0] = jnp.dot(a_ref[...], h_ref[0],
                       preferred_element_type=jnp.float32).astype(o_ref.dtype)


def _agg_skip_kernel(a_ref, h_ref, s_ref, prev_ref, agg_ref, skip_ref, *, off):
    """Neighbor aggregation fused with the running skip accumulation.

    skip_prev is passed in its (N, Tprev*Cs) lane-flattened view so the
    reference's skip[..., -To:] time slice is a static lane slice.
    """
    agg_ref[0] = jnp.dot(a_ref[...], h_ref[0],
                         preferred_element_type=jnp.float32).astype(agg_ref.dtype)
    acc = s_ref[0].astype(jnp.float32) + prev_ref[0][:, off:].astype(jnp.float32)
    skip_ref[0] = acc.astype(skip_ref.dtype)


def _sage_kernel(h_ref, agg_ref, wr_ref, wl_ref, b_ref, o_ref):
    """SAGEConv (dense): relu( h @ W_root + agg @ W_neigh + b )."""
    y = (jnp.dot(h_ref[...], wr_ref[...], preferred_element_type=jnp.float32)
         + jnp.dot(agg_ref[...], wl_ref[...], preferred_element_type=jnp.float32)
         + b_ref[...])
    o_ref[...] = jnp.maximum(y, 0.0).astype(o_ref.dtype)


def _sage_res_bn_kernel(h_ref, agg_ref, res_ref, wr_ref, wl_ref, b_ref,
                        scale_ref, shift_ref, o_ref):
    """Last SAGE order step fused with the residual add and folded BatchNorm."""
    y = (jnp.dot(h_ref[...], wr_ref[...], preferred_element_type=jnp.float32)
         + jnp.dot(agg_ref[...], wl_ref[...], preferred_element_type=jnp.float32)
         + b_ref[...])
    y = jnp.maximum(y, 0.0) + res_ref[...].astype(jnp.float32)
    o_ref[...] = (y * scale_ref[...] + shift_ref[...]).astype(o_ref.dtype)


def _head_kernel(s_ref, w1_ref, b1_ref, w2_ref, b2_ref, o_ref):
    """Fused head: relu(skip) -> end_conv_1 -> relu -> end_conv_2."""
    h = jnp.maximum(s_ref[...].astype(jnp.float32), 0.0)
    h = jnp.dot(h.astype(w1_ref.dtype), w1_ref[...],
                preferred_element_type=jnp.float32) + b1_ref[...]
    h = jnp.maximum(h, 0.0)
    y = jnp.dot(h.astype(w2_ref.dtype), w2_ref[...],
                preferred_element_type=jnp.float32) + b2_ref[...]
    o_ref[...] = y.astype(o_ref.dtype)


def _adp_kernel(n1_ref, n2_ref, o_ref):
    """adp = softmax(relu(nodevec1 @ nodevec2), axis=1).  Runs once per forward."""
    logits = jnp.maximum(
        jnp.dot(n1_ref[...], n2_ref[...], preferred_element_type=jnp.float32), 0.0)
    m = jnp.max(logits, axis=-1, keepdims=True)
    e = jnp.exp(logits - m)
    # Exact normalization (no approx reciprocal): adp feeds every aggregation.
    o_ref[...] = (e / jnp.sum(e, axis=-1, keepdims=True)).astype(o_ref.dtype)


# ------------------------------- the model ----------------------------------

class GWNetSAGE:
    """Inference-mode gwnet_sage (dropout = identity, BatchNorm folded)."""

    def __init__(self, key, num_nodes, in_dim=1, out_dim=12,
                 residual_channels=16, dilation_channels=16, skip_channels=32,
                 end_channels=64, kernel_size=2, blocks=2, layers=2,
                 dropout=0.3, order=2, act_dtype=jnp.float32):
        # act_dtype: storage dtype of inter-layer activations. float32 is safe on
        # every generation; use jnp.bfloat16 on v6e/v7x to halve HBM traffic and
        # VMEM footprint (matmuls still accumulate in f32).
        self.Cr = residual_channels
        self.Cd = dilation_channels
        self.Cs = skip_channels
        self.Ce = end_channels
        self.out_dim = out_dim
        self.order = order
        self.dropout = dropout          # inference: F.dropout is identity
        self.act_dtype = act_dtype
        self.supports_len = 1           # supports=None, gcn_bool=True, addaptadj=True -> [adp]

        def nrm(shape, scale=0.1):
            nonlocal key
            key, sub = jax.random.split(key)
            return (scale * jax.random.normal(sub, shape)).astype(jnp.float32)

        self.start_w = nrm((in_dim, residual_channels))
        self.start_b = nrm((residual_channels,), 0.01)
        self.nodevec1 = nrm((num_nodes, 10), 1.0)   # torch.randn
        self.nodevec2 = nrm((10, num_nodes), 1.0)

        receptive_field = 1
        self.dilations = []
        self.layer_params = []
        for _ in range(blocks):
            additional_scope = kernel_size - 1
            d = 1
            for _ in range(layers):
                bn_gamma = jnp.ones((residual_channels,), jnp.float32)
                bn_beta = jnp.zeros((residual_channels,), jnp.float32)
                bn_rm = jnp.zeros((residual_channels,), jnp.float32)
                bn_rv = jnp.ones((residual_channels,), jnp.float32)
                bn_scale = bn_gamma / jnp.sqrt(bn_rv + 1e-5)
                p = {
                    "wf0": nrm((residual_channels, dilation_channels)),
                    "wf1": nrm((residual_channels, dilation_channels)),
                    "bf": nrm((dilation_channels,), 0.01),
                    "wg0": nrm((residual_channels, dilation_channels)),
                    "wg1": nrm((residual_channels, dilation_channels)),
                    "bg": nrm((dilation_channels,), 0.01),
                    "ws": nrm((dilation_channels, skip_channels)),
                    "bs": nrm((skip_channels,), 0.01),
                    # BatchNorm2d (inference) folded into scale/shift
                    "bn_scale": bn_scale,
                    "bn_shift": bn_beta - bn_rm * bn_scale,
                }
                sage = []
                for k in range(order):
                    cin = dilation_channels if k == 0 else residual_channels
                    sage.append({
                        "wr": nrm((cin, residual_channels)),    # root branch (lin_r)
                        "wl": nrm((cin, residual_channels)),    # neighbor branch (lin_l)
                        "bl": nrm((residual_channels,), 0.01),  # bias (lin_l)
                    })
                p["sage"] = sage
                self.layer_params.append(p)
                self.dilations.append(d)
                d *= 2
                receptive_field += additional_scope
                additional_scope *= 2
        self.receptive_field = receptive_field

        self.end1_w = nrm((skip_channels, end_channels))
        self.end1_b = nrm((end_channels,), 0.01)
        self.end2_w = nrm((end_channels, out_dim))
        self.end2_b = nrm((out_dim,), 0.01)

    # ---------------- per-stage pallas wrappers ----------------

    def _start(self, x):
        B, N, T, Cin = x.shape
        m = B * N * T
        pk = _pick_pack(m)
        xp = _pack_rows(x.reshape(m, Cin), pk)
        w = _blockdiag(self.start_w, pk, self.act_dtype)
        b = _tile_row(self.start_b, pk)
        k = pk * Cin
        if k < 8:  # keep a sane MXU contraction width even when in_dim==1 and pk==1
            xp = jnp.pad(xp, ((0, 0), (0, 8 - k)))
            w = jnp.pad(w, ((0, 8 - k), (0, 0)))
            k = 8
        mp = m // pk
        tm, g = _row_grid(mp)
        y = pl.pallas_call(
            _matmul_bias_kernel,
            out_shape=jax.ShapeDtypeStruct((mp, pk * self.Cr), self.act_dtype),
            grid=(g,),
            in_specs=[_row_spec(tm, k), _const_spec(w.shape), _const_spec(b.shape)],
            out_specs=_row_spec(tm, pk * self.Cr),
            compiler_params=_cparams(),
        )(xp, w, b)
        return y.reshape(B, N, T, self.Cr)

    def _adp(self):
        vmem = pl.BlockSpec(memory_space=pltpu.MemorySpace.VMEM)
        adp = pl.pallas_call(
            _adp_kernel,
            out_shape=jax.ShapeDtypeStruct(
                (self.nodevec1.shape[0], self.nodevec2.shape[1]), jnp.float32),
            in_specs=[vmem, vmem],
            out_specs=vmem,
        )(self.nodevec1, self.nodevec2)
        return adp.astype(self.act_dtype)

    def _gate_skip(self, x_t, x_td, p, pk):
        B, N, To, C = x_t.shape
        m = B * N * To
        dt = self.act_dtype
        xt = _pack_rows(x_t.reshape(m, C), pk)
        xd = _pack_rows(x_td.reshape(m, C), pk)
        # column layout [all filter groups | all gate groups] -> aligned f/g split
        w0 = jnp.concatenate([_blockdiag(p["wf0"], pk, dt),
                              _blockdiag(p["wg0"], pk, dt)], axis=1)
        w1 = jnp.concatenate([_blockdiag(p["wf1"], pk, dt),
                              _blockdiag(p["wg1"], pk, dt)], axis=1)
        bfg = jnp.concatenate([_tile_row(p["bf"], pk), _tile_row(p["bg"], pk)], axis=1)
        ws = _blockdiag(p["ws"], pk, dt)
        bs = _tile_row(p["bs"], pk)
        mp = m // pk
        tm, g = _row_grid(mp)
        gated, s = pl.pallas_call(
            functools.partial(_gate_skip_kernel, half=pk * self.Cd),
            out_shape=(jax.ShapeDtypeStruct((mp, pk * self.Cd), dt),
                       jax.ShapeDtypeStruct((mp, pk * self.Cs), dt)),
            grid=(g,),
            in_specs=[_row_spec(tm, pk * C), _row_spec(tm, pk * C),
                      _const_spec(w0.shape), _const_spec(w1.shape),
                      _const_spec(bfg.shape),
                      _const_spec(ws.shape), _const_spec(bs.shape)],
            out_specs=(_row_spec(tm, pk * self.Cd), _row_spec(tm, pk * self.Cs)),
            compiler_params=_cparams(),
        )(xt, xd, w0, w1, bfg, ws, bs)
        return gated, s

    def _aggregate(self, adp, h_mat):
        B, N, K = h_mat.shape
        return pl.pallas_call(
            _agg_kernel,
            out_shape=jax.ShapeDtypeStruct((B, N, K), self.act_dtype),
            grid=(B,),
            in_specs=[pl.BlockSpec((N, N), lambda b: (0, 0)),
                      pl.BlockSpec((1, N, K), lambda b: (b, 0, 0))],
            out_specs=pl.BlockSpec((1, N, K), lambda b: (b, 0, 0)),
            compiler_params=_cparams(),
        )(adp, h_mat)

    def _aggregate_skip(self, adp, h_mat, s_mat, skip_prev):
        B, N, K = h_mat.shape
        Ks = s_mat.shape[2]
        Kp = skip_prev.shape[2]
        return pl.pallas_call(
            functools.partial(_agg_skip_kernel, off=Kp - Ks),
            out_shape=(jax.ShapeDtypeStruct((B, N, K), self.act_dtype),
                       jax.ShapeDtypeStruct((B, N, Ks), self.act_dtype)),
            grid=(B,),
            in_specs=[pl.BlockSpec((N, N), lambda b: (0, 0)),
                      pl.BlockSpec((1, N, K), lambda b: (b, 0, 0)),
                      pl.BlockSpec((1, N, Ks), lambda b: (b, 0, 0)),
                      pl.BlockSpec((1, N, Kp), lambda b: (b, 0, 0))],
            out_specs=(pl.BlockSpec((1, N, K), lambda b: (b, 0, 0)),
                       pl.BlockSpec((1, N, Ks), lambda b: (b, 0, 0))),
            compiler_params=_cparams(),
        )(adp, h_mat, s_mat, skip_prev)

    def _sage_step(self, h_p, agg_p, lp, pk, cin):
        mp = h_p.shape[0]
        dt = self.act_dtype
        wr = _blockdiag(lp["wr"], pk, dt)
        wl = _blockdiag(lp["wl"], pk, dt)
        b = _tile_row(lp["bl"], pk)
        tm, g = _row_grid(mp)
        return pl.pallas_call(
            _sage_kernel,
            out_shape=jax.ShapeDtypeStruct((mp, pk * self.Cr), dt),
            grid=(g,),
            in_specs=[_row_spec(tm, pk * cin), _row_spec(tm, pk * cin),
                      _const_spec(wr.shape), _const_spec(wl.shape),
                      _const_spec(b.shape)],
            out_specs=_row_spec(tm, pk * self.Cr),
            compiler_params=_cparams(),
        )(h_p, agg_p, wr, wl, b)

    def _sage_final_step(self, h_p, agg_p, res_p, lp, p, pk, cin):
        mp = h_p.shape[0]
        dt = self.act_dtype
        wr = _blockdiag(lp["wr"], pk, dt)
        wl = _blockdiag(lp["wl"], pk, dt)
        b = _tile_row(lp["bl"], pk)
        scale = _tile_row(p["bn_scale"], pk)
        shift = _tile_row(p["bn_shift"], pk)
        tm, g = _row_grid(mp)
        return pl.pallas_call(
            _sage_res_bn_kernel,
            out_shape=jax.ShapeDtypeStruct((mp, pk * self.Cr), dt),
            grid=(g,),
            in_specs=[_row_spec(tm, pk * cin), _row_spec(tm, pk * cin),
                      _row_spec(tm, pk * self.Cr),
                      _const_spec(wr.shape), _const_spec(wl.shape),
                      _const_spec(b.shape),
                      _const_spec(scale.shape), _const_spec(shift.shape)],
            out_specs=_row_spec(tm, pk * self.Cr),
            compiler_params=_cparams(),
        )(h_p, agg_p, res_p, wr, wl, b, scale, shift)

    def _head(self, skip_mat, B, N):
        Tf = skip_mat.shape[2] // self.Cs
        m = B * N * Tf
        pk = _pick_pack(m)
        sp = _pack_rows(skip_mat.reshape(m, self.Cs), pk)
        dt = self.act_dtype
        w1 = _blockdiag(self.end1_w, pk, dt)
        b1 = _tile_row(self.end1_b, pk)
        w2 = _blockdiag(self.end2_w, pk, dt)
        b2 = _tile_row(self.end2_b, pk)
        mp = m // pk
        tm, g = _row_grid(mp)
        y = pl.pallas_call(
            _head_kernel,
            out_shape=jax.ShapeDtypeStruct((mp, pk * self.out_dim), jnp.float32),
            grid=(g,),
            in_specs=[_row_spec(tm, pk * self.Cs),
                      _const_spec(w1.shape), _const_spec(b1.shape),
                      _const_spec(w2.shape), _const_spec(b2.shape)],
            out_specs=_row_spec(tm, pk * self.out_dim),
            compiler_params=_cparams(),
        )(sp, w1, b1, w2, b2)
        y = y.reshape(B, N, Tf, self.out_dim)
        # back to PyTorch NCHW output layout: [B, out_dim, N, T]
        return jnp.transpose(y, (0, 3, 1, 2))

    # ------------------------------- forward --------------------------------

    def __call__(self, inp):
        # inp: [B, T, N, in_dim]  (PyTorch call convention before its permute)
        B, T, N, _ = inp.shape
        x = jnp.transpose(inp, (0, 2, 1, 3)).astype(self.act_dtype)   # [B, N, T, Cin]
        if T < self.receptive_field:
            x = jnp.pad(x, ((0, 0), (0, 0), (self.receptive_field - T, 0), (0, 0)))

        x = self._start(x)                       # [B, N, T, Cr]
        adp = self._adp()                        # [N, N] softmax(relu(nv1 @ nv2))

        skip = None                              # kept as a (B, N, To*Cs) lane-flat view
        for i, p in enumerate(self.layer_params):
            d = self.dilations[i]
            Bc, Nc, Tc, C = x.shape
            To = Tc - d
            # t and t+d windows of the residual stream; x_td also IS the residual
            # for the last SAGE step (residual[..., -To:] == x[:, :, d:, :]).
            x_t = x[:, :, :To, :]
            x_td = x[:, :, d:, :]
            m = Bc * Nc * To
            pk = _pick_pack(m)

            gated_p, s_p = self._gate_skip(x_t, x_td, p, pk)
            s_mat = s_p.reshape(Bc, Nc, To * self.Cs)
            res_p = _pack_rows(x_td.reshape(m, C), pk)

            # ---- dense graph SAGE over the adaptive adjacency -----------------
            # TODO(synk): the reference graph_sage concatenates [x] with the
            # per-support outputs along channels, which is shape-inconsistent with
            # the downstream residual add / BatchNorm; we keep only the SAGE
            # output of the single adaptive support so the network stays consistent.
            h_p, cin = gated_p, self.Cd
            for k, lp in enumerate(p["sage"]):
                h_mat = h_p.reshape(Bc, Nc, To * cin)
                if k == 0 and skip is not None:
                    # neighbor aggregation fused with the running skip update
                    agg_mat, skip = self._aggregate_skip(adp, h_mat, s_mat, skip)
                else:
                    agg_mat = self._aggregate(adp, h_mat)
                    if k == 0:
                        skip = s_mat             # first layer: skip starts at s
                agg_p = _pack_rows(agg_mat.reshape(m, cin), pk)
                if k == len(p["sage"]) - 1:
                    h_p = self._sage_final_step(h_p, agg_p, res_p, lp, p, pk, cin)
                else:
                    h_p = self._sage_step(h_p, agg_p, lp, pk, cin)
                cin = self.Cr
            x = h_p.reshape(Bc, Nc, To, self.Cr)

        return self._head(skip, x.shape[0], x.shape[1])


if __name__ == "__main__":
    key = jax.random.PRNGKey(0)
    model = GWNetSAGE(
        key, num_nodes=8, in_dim=1, out_dim=12,
        residual_channels=16, dilation_channels=16,
        skip_channels=32, end_channels=64,
        kernel_size=2, blocks=2, layers=2,
    )
    # input: [batch=2, seq_len=8, num_nodes=8, in_dim=1]
    x = jax.random.normal(jax.random.fold_in(key, 123), (2, 8, 8, 1),
                          dtype=jnp.float32)
    fwd = jax.jit(model.__call__)
    out = jax.block_until_ready(fwd(x))
    assert out.shape == (2, 12, 8, 2), out.shape
    assert bool(jnp.isfinite(out).all())
    print("KERNEL_OK")
</pallas_src>

<mosaic_0001>
module attributes {stable_mosaic.version = 11 : i64} {
  func.func @_matmul_bias_kernel(%arg0: i32, %arg1: memref<16x8xf32, #tpu.memory_space<vmem>>, %arg2: memref<8x128xf32, #tpu.memory_space<vmem>>, %arg3: memref<1x128xf32, #tpu.memory_space<vmem>>, %arg4: memref<16x128xf32, #tpu.memory_space<vmem>>) attributes {dimension_semantics = [#tpu.dimension_semantics<parallel>], iteration_bounds = array<i64: 1>, scalar_prefetch = 0 : i64, scratch_operands = 0 : i64, tpu.core_type = #tpu.core_type<tc>, window_params = [{transform_indices = @transform_0, window_bounds = array<i64: 16, 8>}, {pipeline_mode = #tpu.pipeline_mode<synchronous>, transform_indices = @transform_1, window_bounds = array<i64: 8, 128>}, {pipeline_mode = #tpu.pipeline_mode<synchronous>, transform_indices = @transform_2, window_bounds = array<i64: 1, 128>}, {transform_indices = @transform_3, window_bounds = array<i64: 16, 128>}]} {
    %c0 = arith.constant 0 : index
    %c0_0 = arith.constant 0 : index
    %0 = vector.load %arg1[%c0, %c0_0] : memref<16x8xf32, #tpu.memory_space<vmem>>, vector<16x8xf32>
    %c0_1 = arith.constant 0 : index
    %c0_2 = arith.constant 0 : index
    %1 = vector.load %arg2[%c0_1, %c0_2] : memref<8x128xf32, #tpu.memory_space<vmem>>, vector<8x128xf32>
    %cst = arith.constant dense<0.000000e+00> : vector<16x128xf32>
    %2 = tpu.matmul %0, %1, %cst {dimension_numbers = #tpu.dot_dimension_numbers<[1], [0], [0], [1], [0, 0, 1, 1], [], []>} : vector<16x8xf32>, vector<8x128xf32>, vector<16x128xf32> -> vector<16x128xf32>
    %c0_3 = arith.constant 0 : index
    %c0_4 = arith.constant 0 : index
    %3 = vector.load %arg3[%c0_3, %c0_4] : memref<1x128xf32, #tpu.memory_space<vmem>>, vector<1x128xf32>
    %4 = vector.broadcast %3 : vector<1x128xf32> to vector<16x128xf32>
    %5 = arith.addf %2, %4 : vector<16x128xf32>
    %c0_5 = arith.constant 0 : index
    %c0_6 = arith.constant 0 : index
    %6 = vector.load %arg4[%c0_5, %c0_6] : memref<16x128xf32, #tpu.memory_space<vmem>>, vector<16x128xf32>
    tpu.vector_store %arg4[%c0_5, %c0_6], %5 {strides = array<i32>} : memref<16x128xf32, #tpu.memory_space<vmem>>, vector<16x128xf32>,
    return
  }
  func.func @transform_0(%arg0: i32) -> (i32, i32) {
    %c0_i32 = arith.constant 0 : i32
    %c0_i32_0 = arith.constant 0 : i32
    return %arg0, %c0_i32 : i32, i32
  }
  func.func @transform_1(%arg0: i32) -> (i32, i32) {
    %c0_i32 = arith.constant 0 : i32
    %c0_i32_0 = arith.constant 0 : i32
    %c0_i32_1 = arith.constant 0 : i32
    return %c0_i32, %c0_i32_0 : i32, i32
  }
  func.func @transform_2(%arg0: i32) -> (i32, i32) {
    %c0_i32 = arith.constant 0 : i32
    %c0_i32_0 = arith.constant 0 : i32
    %c0_i32_1 = arith.constant 0 : i32
    return %c0_i32, %c0_i32_0 : i32, i32
  }
  func.func @transform_3(%arg0: i32) -> (i32, i32) {
    %c0_i32 = arith.constant 0 : i32
    %c0_i32_0 = arith.constant 0 : i32
    return %arg0, %c0_i32 : i32, i32
  }
}

module attributes {stable_mosaic.version = 11 : i64} {
  func.func @_adp_kernel(%arg0: memref<8x10xf32, #tpu.memory_space<vmem>>, %arg1: memref<10x8xf32, #tpu.memory_space<vmem>>, %arg2: memref<8x8xf32, #tpu.memory_space<vmem>>) attributes {dimension_semantics = [], scalar_prefetch = 0 : i64, scratch_operands = 0 : i64, tpu.core_type = #tpu.core_type<tc>} {
    %c0 = arith.constant 0 : index
    %c0_0 = arith.constant 0 : index
    %0 = vector.load %arg0[%c0, %c0_0] : memref<8x10xf32, #tpu.memory_space<vmem>>, vector<8x10xf32>
    %c0_1 = arith.constant 0 : index
    %c0_2 = arith.constant 0 : index
    %1 = vector.load %arg1[%c0_1, %c0_2] : memref<10x8xf32, #tpu.memory_space<vmem>>, vector<10x8xf32>
    %cst = arith.constant dense<0.000000e+00> : vector<8x8xf32>
    %2 = tpu.matmul %0, %1, %cst {dimension_numbers = #tpu.dot_dimension_numbers<[1], [0], [0], [1], [0, 0, 1, 1], [], []>} : vector<8x10xf32>, vector<10x8xf32>, vector<8x8xf32> -> vector<8x8xf32>
    %cst_3 = arith.constant 0.000000e+00 : f32
    %3 = vector.broadcast %cst_3 : f32 to vector<8x8xf32>
    %4 = arith.maximumf %2, %3 : vector<8x8xf32>
    %cst_4 = arith.constant dense<0xFF800000> : vector<8xf32>
    %5 = vector.multi_reduction <maximumf>, %4, %cst_4 [1] : vector<8x8xf32> to vector<8xf32>
    %6 = vector.shape_cast %5 : vector<8xf32> to vector<8x1xf32>
    %7 = vector.broadcast %6 : vector<8x1xf32> to vector<8x8xf32>
    %8 = arith.subf %4, %7 : vector<8x8xf32>
    %9 = math.exp %8 : vector<8x8xf32>
    %cst_5 = arith.constant dense<0.000000e+00> : vector<8xf32>
    %10 = vector.multi_reduction <add>, %9, %cst_5 [1] : vector<8x8xf32> to vector<8xf32>
    %11 = vector.shape_cast %10 : vector<8xf32> to vector<8x1xf32>
    %12 = vector.broadcast %11 : vector<8x1xf32> to vector<8x8xf32>
    %13 = arith.divf %9, %12 : vector<8x8xf32>
    %c0_6 = arith.constant 0 : index
    %c0_7 = arith.constant 0 : index
    %14 = vector.load %arg2[%c0_6, %c0_7] : memref<8x8xf32, #tpu.memory_space<vmem>>, vector<8x8xf32>
    tpu.vector_store %arg2[%c0_6, %c0_7], %13 {strides = array<i32>} : memref<8x8xf32, #tpu.memory_space<vmem>>, vector<8x8xf32>,
    return
  }
}

module attributes {stable_mosaic.version = 11 : i64} {
  func.func @_gate_skip_kernel(%arg0: i32, %arg1: memref<14x128xf32, #tpu.memory_space<vmem>>, %arg2: memref<14x128xf32, #tpu.memory_space<vmem>>, %arg3: memref<128x256xf32, #tpu.memory_space<vmem>>, %arg4: memref<128x256xf32, #tpu.memory_space<vmem>>, %arg5: memref<1x256xf32, #tpu.memory_space<vmem>>, %arg6: memref<128x256xf32, #tpu.memory_space<vmem>>, %arg7: memref<1x256xf32, #tpu.memory_space<vmem>>, %arg8: memref<14x128xf32, #tpu.memory_space<vmem>>, %arg9: memref<14x256xf32, #tpu.memory_space<vmem>>) attributes {dimension_semantics = [#tpu.dimension_semantics<parallel>], iteration_bounds = array<i64: 1>, scalar_prefetch = 0 : i64, scratch_operands = 0 : i64, tpu.core_type = #tpu.core_type<tc>, window_params = [{transform_indices = @transform_0, window_bounds = array<i64: 14, 128>}, {transform_indices = @transform_1, window_bounds = array<i64: 14, 128>}, {pipeline_mode = #tpu.pipeline_mode<synchronous>, transform_indices = @transform_2, window_bounds = array<i64: 128, 256>}, {pipeline_mode = #tpu.pipeline_mode<synchronous>, transform_indices = @transform_3, window_bounds = array<i64: 128, 256>}, {pipeline_mode = #tpu.pipeline_mode<synchronous>, transform_indices = @transform_4, window_bounds = array<i64: 1, 256>}, {pipeline_mode = #tpu.pipeline_mode<synchronous>, transform_indices = @transform_5, window_bounds = array<i64: 128, 256>}, {pipeline_mode = #tpu.pipeline_mode<synchronous>, transform_indices = @transform_6, window_bounds = array<i64: 1, 256>}, {transform_indices = @transform_7, window_bounds = array<i64: 14, 128>}, {transform_indices = @transform_8, window_bounds = array<i64: 14, 256>}]} {
    %c0 = arith.constant 0 : index
    %c0_0 = arith.constant 0 : index
    %0 = vector.load %arg1[%c0, %c0_0] : memref<14x128xf32, #tpu.memory_space<vmem>>, vector<14x128xf32>
    %c0_1 = arith.constant 0 : index
    %c0_2 = arith.constant 0 : index
    %1 = vector.load %arg3[%c0_1, %c0_2] : memref<128x256xf32, #tpu.memory_space<vmem>>, vector<128x256xf32>
    %cst = arith.constant dense<0.000000e+00> : vector<14x256xf32>
    %2 = tpu.matmul %0, %1, %cst {dimension_numbers = #tpu.dot_dimension_numbers<[1], [0], [0], [1], [0, 0, 1, 1], [], []>} : vector<14x128xf32>, vector<128x256xf32>, vector<14x256xf32> -> vector<14x256xf32>
    %c0_3 = arith.constant 0 : index
    %c0_4 = arith.constant 0 : index
    %3 = vector.load %arg2[%c0_3, %c0_4] : memref<14x128xf32, #tpu.memory_space<vmem>>, vector<14x128xf32>
    %c0_5 = arith.constant 0 : index
    %c0_6 = arith.constant 0 : index
    %4 = vector.load %arg4[%c0_5, %c0_6] : memref<128x256xf32, #tpu.memory_space<vmem>>, vector<128x256xf32>
    %cst_7 = arith.constant dense<0.000000e+00> : vector<14x256xf32>
    %5 = tpu.matmul %3, %4, %cst_7 {dimension_numbers = #tpu.dot_dimension_numbers<[1], [0], [0], [1], [0, 0, 1, 1], [], []>} : vector<14x128xf32>, vector<128x256xf32>, vector<14x256xf32> -> vector<14x256xf32>
    %6 = arith.addf %2, %5 : vector<14x256xf32>
    %c0_8 = arith.constant 0 : index
    %c0_9 = arith.constant 0 : index
    %7 = vector.load %arg5[%c0_8, %c0_9] : memref<1x256xf32, #tpu.memory_space<vmem>>, vector<1x256xf32>
    %8 = vector.broadcast %7 : vector<1x256xf32> to vector<14x256xf32>
    %9 = arith.addf %6, %8 : vector<14x256xf32>
    %10 = vector.extract_strided_slice %9 {offsets = [0, 0], sizes = [14, 128], strides = [1, 1]} : vector<14x256xf32> to vector<14x128xf32>
    %11 = math.tanh %10 : vector<14x128xf32>
    %12 = vector.extract_strided_slice %9 {offsets = [0, 128], sizes = [14, 128], strides = [1, 1]} : vector<14x256xf32> to vector<14x128xf32>
    %13 = arith.negf %12 : vector<14x128xf32>
    %14 = math.exp %13 : vector<14x128xf32>
    %cst_10 = arith.constant 1.000000e+00 : f32
    %15 = vector.broadcast %cst_10 : f32 to vector<14x128xf32>
    %16 = arith.addf %15, %14 : vector<14x128xf32>
    %17 = arith.divf %15, %16 : vector<14x128xf32>
    %18 = arith.mulf %11, %17 : vector<14x128xf32>
    %c0_11 = arith.constant 0 : index
    %c0_12 = arith.constant 0 : index
    %19 = vector.load %arg8[%c0_11, %c0_12] : memref<14x128xf32, #tpu.memory_space<vmem>>, vector<14x128xf32>
    tpu.vector_store %arg8[%c0_11, %c0_12], %18 {strides = array<i32>} : memref<14x128xf32, #tpu.memory_space<vmem>>, vector<14x128xf32>,
    %c0_13 = arith.constant 0 : index
    %c0_14 = arith.constant 0 : index
    %20 = vector.load %arg6[%c0_13, %c0_14] : memref<128x256xf32, #tpu.memory_space<vmem>>, vector<128x256xf32>
    %cst_15 = arith.constant dense<0.000000e+00> : vector<14x256xf32>
    %21 = tpu.matmul %18, %20, %cst_15 {dimension_numbers = #tpu.dot_dimension_numbers<[1], [0], [0], [1], [0, 0, 1, 1], [], []>} : vector<14x128xf32>, vector<128x256xf32>, vector<14x256xf32> -> vector<14x256xf32>
    %c0_16 = arith.constant 0 : index
    %c0_17 = arith.constant 0 : index
    %22 = vector.load %arg7[%c0_16, %c0_17] : memref<1x256xf32, #tpu.memory_space<vmem>>, vector<1x256xf32>
    %23 = vector.broadcast %22 : vector<1x256xf32> to vector<14x256xf32>
    %24 = arith.addf %21, %23 : vector<14x256xf32>
    %c0_18 = arith.constant 0 : index
    %c0_19 = arith.constant 0 : index
    %25 = vector.load %arg9[%c0_18, %c0_19] : memref<14x256xf32, #tpu.memory_space<vmem>>, vector<14x256xf32>
    tpu.vector_store %arg9[%c0_18, %c0_19], %24 {strides = array<i32>} : memref<14x256xf32, #tpu.memory_space<vmem>>, vector<14x256xf32>,
    return
  }
  func.func @transform_0(%arg0: i32) -> (i32, i32) {
    %c0_i32 = arith.constant 0 : i32
    %c0_i32_0 = arith.constant 0 : i32
    return %arg0, %c0_i32 : i32, i32
  }
  func.func @transform_1(%arg0: i32) -> (i32, i32) {
    %c0_i32 = arith.constant 0 : i32
    %c0_i32_0 = arith.constant 0 : i32
    return %arg0, %c0_i32 : i32, i32
  }
  func.func @transform_2(%arg0: i32) -> (i32, i32) {
    %c0_i32 = arith.constant 0 : i32
    %c0_i32_0 = arith.constant 0 : i32
    %c0_i32_1 = arith.constant 0 : i32
    return %c0_i32, %c0_i32_0 : i32, i32
  }
  func.func @transform_3(%arg0: i32) -> (i32, i32) {
    %c0_i32 = arith.constant 0 : i32
    %c0_i32_0 = arith.constant 0 : i32
    %c0_i32_1 = arith.constant 0 : i32
    return %c0_i32, %c0_i32_0 : i32, i32
  }
  func.func @transform_4(%arg0: i32) -> (i32, i32) {
    %c0_i32 = arith.constant 0 : i32
    %c0_i32_0 = arith.constant 0 : i32
    %c0_i32_1 = arith.constant 0 : i32
    return %c0_i32, %c0_i32_0 : i32, i32
  }
  func.func @transform_5(%arg0: i32) -> (i32, i32) {
    %c0_i32 = arith.constant 0 : i32
    %c0_i32_0 = arith.constant 0 : i32
    %c0_i32_1 = arith.constant 0 : i32
    return %c0_i32, %c0_i32_0 : i32, i32
  }
  func.func @transform_6(%arg0: i32) -> (i32, i32) {
    %c0_i32 = arith.constant 0 : i32
    %c0_i32_0 = arith.constant 0 : i32
    %c0_i32_1 = arith.constant 0 : i32
    return %c0_i32, %c0_i32_0 : i32, i32
  }
  func.func @transform_7(%arg0: i32) -> (i32, i32) {
    %c0_i32 = arith.constant 0 : i32
    %c0_i32_0 = arith.constant 0 : i32
    return %arg0, %c0_i32 : i32, i32
  }
  func.func @transform_8(%arg0: i32) -> (i32, i32) {
    %c0_i32 = arith.constant 0 : i32
    %c0_i32_0 = arith.constant 0 : i32
    return %arg0, %c0_i32 : i32, i32
  }
}

module attributes {stable_mosaic.version = 11 : i64} {
  func.func @_agg_kernel(%arg0: i32, %arg1: memref<8x8xf32, #tpu.memory_space<vmem>>, %arg2: memref<1x8x112xf32, #tpu.memory_space<vmem>>, %arg3: memref<1x8x112xf32, #tpu.memory_space<vmem>>) attributes {dimension_semantics = [#tpu.dimension_semantics<parallel>], iteration_bounds = array<i64: 2>, scalar_prefetch = 0 : i64, scratch_operands = 0 : i64, tpu.core_type = #tpu.core_type<tc>, window_params = [{pipeline_mode = #tpu.pipeline_mode<synchronous>, transform_indices = @transform_0, window_bounds = array<i64: 8, 8>}, {transform_indices = @transform_1, window_bounds = array<i64: 1, 8, 112>}, {transform_indices = @transform_2, window_bounds = array<i64: 1, 8, 112>}]} {
    %c0 = arith.constant 0 : index
    %c0_0 = arith.constant 0 : index
    %0 = vector.load %arg1[%c0, %c0_0] : memref<8x8xf32, #tpu.memory_space<vmem>>, vector<8x8xf32>
    %c0_1 = arith.constant 0 : index
    %c0_2 = arith.constant 0 : index
    %c0_3 = arith.constant 0 : index
    %1 = vector.load %arg2[%c0_1, %c0_2, %c0_3] : memref<1x8x112xf32, #tpu.memory_space<vmem>>, vector<1x8x112xf32>
    %2 = vector.shape_cast %1 : vector<1x8x112xf32> to vector<8x112xf32>
    %cst = arith.constant dense<0.000000e+00> : vector<8x112xf32>
    %3 = tpu.matmul %0, %2, %cst {dimension_numbers = #tpu.dot_dimension_numbers<[1], [0], [0], [1], [0, 0, 1, 1], [], []>} : vector<8x8xf32>, vector<8x112xf32>, vector<8x112xf32> -> vector<8x112xf32>
    %c0_4 = arith.constant 0 : index
    %c0_5 = arith.constant 0 : index
    %c0_6 = arith.constant 0 : index
    %4 = vector.load %arg3[%c0_4, %c0_5, %c0_6] : memref<1x8x112xf32, #tpu.memory_space<vmem>>, vector<1x8x112xf32>
    %5 = vector.shape_cast %4 : vector<1x8x112xf32> to vector<8x112xf32>
    %6 = vector.shape_cast %3 : vector<8x112xf32> to vector<1x8x112xf32>
    tpu.vector_store %arg3[%c0_4, %c0_5, %c0_6], %6 {strides = array<i32>} : memref<1x8x112xf32, #tpu.memory_space<vmem>>, vector<1x8x112xf32>,
    return
  }
  func.func @transform_0(%arg0: i32) -> (i32, i32) {
    %c0_i32 = arith.constant 0 : i32
    %c0_i32_0 = arith.constant 0 : i32
    %c0_i32_1 = arith.constant 0 : i32
    return %c0_i32, %c0_i32_0 : i32, i32
  }
  func.func @transform_1(%arg0: i32) -> (i32, i32, i32) {
    %c0_i32 = arith.constant 0 : i32
    %c0_i32_0 = arith.constant 0 : i32
    %c0_i32_1 = arith.constant 0 : i32
    return %arg0, %c0_i32, %c0_i32_0 : i32, i32, i32
  }
  func.func @transform_2(%arg0: i32) -> (i32, i32, i32) {
    %c0_i32 = arith.constant 0 : i32
    %c0_i32_0 = arith.constant 0 : i32
    %c0_i32_1 = arith.constant 0 : i32
    return %arg0, %c0_i32, %c0_i32_0 : i32, i32, i32
  }
}

module attributes {stable_mosaic.version = 11 : i64} {
  func.func @_sage_kernel(%arg0: i32, %arg1: memref<14x128xf32, #tpu.memory_space<vmem>>, %arg2: memref<14x128xf32, #tpu.memory_space<vmem>>, %arg3: memref<128x128xf32, #tpu.memory_space<vmem>>, %arg4: memref<128x128xf32, #tpu.memory_space<vmem>>, %arg5: memref<1x128xf32, #tpu.memory_space<vmem>>, %arg6: memref<14x128xf32, #tpu.memory_space<vmem>>) attributes {dimension_semantics = [#tpu.dimension_semantics<parallel>], iteration_bounds = array<i64: 1>, scalar_prefetch = 0 : i64, scratch_operands = 0 : i64, tpu.core_type = #tpu.core_type<tc>, window_params = [{transform_indices = @transform_0, window_bounds = array<i64: 14, 128>}, {transform_indices = @transform_1, window_bounds = array<i64: 14, 128>}, {pipeline_mode = #tpu.pipeline_mode<synchronous>, transform_indices = @transform_2, window_bounds = array<i64: 128, 128>}, {pipeline_mode = #tpu.pipeline_mode<synchronous>, transform_indices = @transform_3, window_bounds = array<i64: 128, 128>}, {pipeline_mode = #tpu.pipeline_mode<synchronous>, transform_indices = @transform_4, window_bounds = array<i64: 1, 128>}, {transform_indices = @transform_5, window_bounds = array<i64: 14, 128>}]} {
    %c0 = arith.constant 0 : index
    %c0_0 = arith.constant 0 : index
    %0 = vector.load %arg1[%c0, %c0_0] : memref<14x128xf32, #tpu.memory_space<vmem>>, vector<14x128xf32>
    %c0_1 = arith.constant 0 : index
    %c0_2 = arith.constant 0 : index
    %1 = vector.load %arg3[%c0_1, %c0_2] : memref<128x128xf32, #tpu.memory_space<vmem>>, vector<128x128xf32>
    %cst = arith.constant dense<0.000000e+00> : vector<14x128xf32>
    %2 = tpu.matmul %0, %1, %cst {dimension_numbers = #tpu.dot_dimension_numbers<[1], [0], [0], [1], [0, 0, 1, 1], [], []>} : vector<14x128xf32>, vector<128x128xf32>, vector<14x128xf32> -> vector<14x128xf32>
    %c0_3 = arith.constant 0 : index
    %c0_4 = arith.constant 0 : index
    %3 = vector.load %arg2[%c0_3, %c0_4] : memref<14x128xf32, #tpu.memory_space<vmem>>, vector<14x128xf32>
    %c0_5 = arith.constant 0 : index
    %c0_6 = arith.constant 0 : index
    %4 = vector.load %arg4[%c0_5, %c0_6] : memref<128x128xf32, #tpu.memory_space<vmem>>, vector<128x128xf32>
    %cst_7 = arith.constant dense<0.000000e+00> : vector<14x128xf32>
    %5 = tpu.matmul %3, %4, %cst_7 {dimension_numbers = #tpu.dot_dimension_numbers<[1], [0], [0], [1], [0, 0, 1, 1], [], []>} : vector<14x128xf32>, vector<128x128xf32>, vector<14x128xf32> -> vector<14x128xf32>
    %6 = arith.addf %2, %5 : vector<14x128xf32>
    %c0_8 = arith.constant 0 : index
    %c0_9 = arith.constant 0 : index
    %7 = vector.load %arg5[%c0_8, %c0_9] : memref<1x128xf32, #tpu.memory_space<vmem>>, vector<1x128xf32>
    %8 = vector.broadcast %7 : vector<1x128xf32> to vector<14x128xf32>
    %9 = arith.addf %6, %8 : vector<14x128xf32>
    %cst_10 = arith.constant 0.000000e+00 : f32
    %10 = vector.broadcast %cst_10 : f32 to vector<14x128xf32>
    %11 = arith.maximumf %9, %10 : vector<14x128xf32>
    %c0_11 = arith.constant 0 : index
    %c0_12 = arith.constant 0 : index
    %12 = vector.load %arg6[%c0_11, %c0_12] : memref<14x128xf32, #tpu.memory_space<vmem>>, vector<14x128xf32>
    tpu.vector_store %arg6[%c0_11, %c0_12], %11 {strides = array<i32>} : memref<14x128xf32, #tpu.memory_space<vmem>>, vector<14x128xf32>,
    return
  }
  func.func @transform_0(%arg0: i32) -> (i32, i32) {
    %c0_i32 = arith.constant 0 : i32
    %c0_i32_0 = arith.constant 0 : i32
    return %arg0, %c0_i32 : i32, i32
  }
  func.func @transform_1(%arg0: i32) -> (i32, i32) {
    %c0_i32 = arith.constant 0 : i32
    %c0_i32_0 = arith.constant 0 : i32
    return %arg0, %c0_i32 : i32, i32
  }
  func.func @transform_2(%arg0: i32) -> (i32, i32) {
    %c0_i32 = arith.constant 0 : i32
    %c0_i32_0 = arith.constant 0 : i32
    %c0_i32_1 = arith.constant 0 : i32
    return %c0_i32, %c0_i32_0 : i32, i32
  }
  func.func @transform_3(%arg0: i32) -> (i32, i32) {
    %c0_i32 = arith.constant 0 : i32
    %c0_i32_0 = arith.constant 0 : i32
    %c0_i32_1 = arith.constant 0 : i32
    return %c0_i32, %c0_i32_0 : i32, i32
  }
  func.func @transform_4(%arg0: i32) -> (i32, i32) {
    %c0_i32 = arith.constant 0 : i32
    %c0_i32_0 = arith.constant 0 : i32
    %c0_i32_1 = arith.constant 0 : i32
    return %c0_i32, %c0_i32_0 : i32, i32
  }
  func.func @transform_5(%arg0: i32) -> (i32, i32) {
    %c0_i32 = arith.constant 0 : i32
    %c0_i32_0 = arith.constant 0 : i32
    return %arg0, %c0_i32 : i32, i32
  }
}

module attributes {stable_mosaic.version = 11 : i64} {
  func.func @_sage_res_bn_kernel(%arg0: i32, %arg1: memref<14x128xf32, #tpu.memory_space<vmem>>, %arg2: memref<14x128xf32, #tpu.memory_space<vmem>>, %arg3: memref<14x128xf32, #tpu.memory_space<vmem>>, %arg4: memref<128x128xf32, #tpu.memory_space<vmem>>, %arg5: memref<128x128xf32, #tpu.memory_space<vmem>>, %arg6: memref<1x128xf32, #tpu.memory_space<vmem>>, %arg7: memref<1x128xf32, #tpu.memory_space<vmem>>, %arg8: memref<1x128xf32, #tpu.memory_space<vmem>>, %arg9: memref<14x128xf32, #tpu.memory_space<vmem>>) attributes {dimension_semantics = [#tpu.dimension_semantics<parallel>], iteration_bounds = array<i64: 1>, scalar_prefetch = 0 : i64, scratch_operands = 0 : i64, tpu.core_type = #tpu.core_type<tc>, window_params = [{transform_indices = @transform_0, window_bounds = array<i64: 14, 128>}, {transform_indices = @transform_1, window_bounds = array<i64: 14, 128>}, {transform_indices = @transform_2, window_bounds = array<i64: 14, 128>}, {pipeline_mode = #tpu.pipeline_mode<synchronous>, transform_indices = @transform_3, window_bounds = array<i64: 128, 128>}, {pipeline_mode = #tpu.pipeline_mode<synchronous>, transform_indices = @transform_4, window_bounds = array<i64: 128, 128>}, {pipeline_mode = #tpu.pipeline_mode<synchronous>, transform_indices = @transform_5, window_bounds = array<i64: 1, 128>}, {pipeline_mode = #tpu.pipeline_mode<synchronous>, transform_indices = @transform_6, window_bounds = array<i64: 1, 128>}, {pipeline_mode = #tpu.pipeline_mode<synchronous>, transform_indices = @transform_7, window_bounds = array<i64: 1, 128>}, {transform_indices = @transform_8, window_bounds = array<i64: 14, 128>}]} {
    %c0 = arith.constant 0 : index
    %c0_0 = arith.constant 0 : index
    %0 = vector.load %arg1[%c0, %c0_0] : memref<14x128xf32, #tpu.memory_space<vmem>>, vector<14x128xf32>
    %c0_1 = arith.constant 0 : index
    %c0_2 = arith.constant 0 : index
    %1 = vector.load %arg4[%c0_1, %c0_2] : memref<128x128xf32, #tpu.memory_space<vmem>>, vector<128x128xf32>
    %cst = arith.constant dense<0.000000e+00> : vector<14x128xf32>
    %2 = tpu.matmul %0, %1, %cst {dimension_numbers = #tpu.dot_dimension_numbers<[1], [0], [0], [1], [0, 0, 1, 1], [], []>} : vector<14x128xf32>, vector<128x128xf32>, vector<14x128xf32> -> vector<14x128xf32>
    %c0_3 = arith.constant 0 : index
    %c0_4 = arith.constant 0 : index
    %3 = vector.load %arg2[%c0_3, %c0_4] : memref<14x128xf32, #tpu.memory_space<vmem>>, vector<14x128xf32>
    %c0_5 = arith.constant 0 : index
    %c0_6 = arith.constant 0 : index
    %4 = vector.load %arg5[%c0_5, %c0_6] : memref<128x128xf32, #tpu.memory_space<vmem>>, vector<128x128xf32>
    %cst_7 = arith.constant dense<0.000000e+00> : vector<14x128xf32>
    %5 = tpu.matmul %3, %4, %cst_7 {dimension_numbers = #tpu.dot_dimension_numbers<[1], [0], [0], [1], [0, 0, 1, 1], [], []>} : vector<14x128xf32>, vector<128x128xf32>, vector<14x128xf32> -> vector<14x128xf32>
    %6 = arith.addf %2, %5 : vector<14x128xf32>
    %c0_8 = arith.constant 0 : index
    %c0_9 = arith.constant 0 : index
    %7 = vector.load %arg6[%c0_8, %c0_9] : memref<1x128xf32, #tpu.memory_space<vmem>>, vector<1x128xf32>
    %8 = vector.broadcast %7 : vector<1x128xf32> to vector<14x128xf32>
    %9 = arith.addf %6, %8 : vector<14x128xf32>
    %cst_10 = arith.constant 0.000000e+00 : f32
    %10 = vector.broadcast %cst_10 : f32 to vector<14x128xf32>
    %11 = arith.maximumf %9, %10 : vector<14x128xf32>
    %c0_11 = arith.constant 0 : index
    %c0_12 = arith.constant 0 : index
    %12 = vector.load %arg3[%c0_11, %c0_12] : memref<14x128xf32, #tpu.memory_space<vmem>>, vector<14x128xf32>
    %13 = arith.addf %11, %12 : vector<14x128xf32>
    %c0_13 = arith.constant 0 : index
    %c0_14 = arith.constant 0 : index
    %14 = vector.load %arg7[%c0_13, %c0_14] : memref<1x128xf32, #tpu.memory_space<vmem>>, vector<1x128xf32>
    %15 = vector.broadcast %14 : vector<1x128xf32> to vector<14x128xf32>
    %16 = arith.mulf %13, %15 : vector<14x128xf32>
    %c0_15 = arith.constant 0 : index
    %c0_16 = arith.constant 0 : index
    %17 = vector.load %arg8[%c0_15, %c0_16] : memref<1x128xf32, #tpu.memory_space<vmem>>, vector<1x128xf32>
    %18 = vector.broadcast %17 : vector<1x128xf32> to vector<14x128xf32>
    %19 = arith.addf %16, %18 : vector<14x128xf32>
    %c0_17 = arith.constant 0 : index
    %c0_18 = arith.constant 0 : index
    %20 = vector.load %arg9[%c0_17, %c0_18] : memref<14x128xf32, #tpu.memory_space<vmem>>, vector<14x128xf32>
    tpu.vector_store %arg9[%c0_17, %c0_18], %19 {strides = array<i32>} : memref<14x128xf32, #tpu.memory_space<vmem>>, vector<14x128xf32>,
    return
  }
  func.func @transform_0(%arg0: i32) -> (i32, i32) {
    %c0_i32 = arith.constant 0 : i32
    %c0_i32_0 = arith.constant 0 : i32
    return %arg0, %c0_i32 : i32, i32
  }
  func.func @transform_1(%arg0: i32) -> (i32, i32) {
    %c0_i32 = arith.constant 0 : i32
    %c0_i32_0 = arith.constant 0 : i32
    return %arg0, %c0_i32 : i32, i32
  }
  func.func @transform_2(%arg0: i32) -> (i32, i32) {
    %c0_i32 = arith.constant 0 : i32
    %c0_i32_0 = arith.constant 0 : i32
    return %arg0, %c0_i32 : i32, i32
  }
  func.func @transform_3(%arg0: i32) -> (i32, i32) {
    %c0_i32 = arith.constant 0 : i32
    %c0_i32_0 = arith.constant 0 : i32
    %c0_i32_1 = arith.constant 0 : i32
    return %c0_i32, %c0_i32_0 : i32, i32
  }
  func.func @transform_4(%arg0: i32) -> (i32, i32) {
    %c0_i32 = arith.constant 0 : i32
    %c0_i32_0 = arith.constant 0 : i32
    %c0_i32_1 = arith.constant 0 : i32
    return %c0_i32, %c0_i32_0 : i32, i32
  }
  func.func @transform_5(%arg0: i32) -> (i32, i32) {
    %c0_i32 = arith.constant 0 : i32
    %c0_i32_0 = arith.constant 0 : i32
    %c0_i32_1 = arith.constant 0 : i32
    return %c0_i32, %c0_i32_0 : i32, i32
  }
  func.func @transform_6(%arg0: i32) -> (i32, i32) {
    %c0_i32 = arith.constant 0 : i32
    %c0_i32_0 = arith.constant 0 : i32
    %c0_i32_1 = arith.constant 0 : i32
    return %c0_i32, %c0_i32_0 : i32, i32
  }
  func.func @transform_7(%arg0: i32) -> (i32, i32) {
    %c0_i32 = arith.constant 0 : i32
    %c0_i32_0 = arith.constant 0 : i32
    %c0_i32_1 = arith.constant 0 : i32
    return %c0_i32, %c0_i32_0 : i32, i32
  }
  func.func @transform_8(%arg0: i32) -> (i32, i32) {
    %c0_i32 = arith.constant 0 : i32
    %c0_i32_0 = arith.constant 0 : i32
    return %arg0, %c0_i32 : i32, i32
  }
}

module attributes {stable_mosaic.version = 11 : i64} {
  func.func @_gate_skip_kernel(%arg0: i32, %arg1: memref<10x128xf32, #tpu.memory_space<vmem>>, %arg2: memref<10x128xf32, #tpu.memory_space<vmem>>, %arg3: memref<128x256xf32, #tpu.memory_space<vmem>>, %arg4: memref<128x256xf32, #tpu.memory_space<vmem>>, %arg5: memref<1x256xf32, #tpu.memory_space<vmem>>, %arg6: memref<128x256xf32, #tpu.memory_space<vmem>>, %arg7: memref<1x256xf32, #tpu.memory_space<vmem>>, %arg8: memref<10x128xf32, #tpu.memory_space<vmem>>, %arg9: memref<10x256xf32, #tpu.memory_space<vmem>>) attributes {dimension_semantics = [#tpu.dimension_semantics<parallel>], iteration_bounds = array<i64: 1>, scalar_prefetch = 0 : i64, scratch_operands = 0 : i64, tpu.core_type = #tpu.core_type<tc>, window_params = [{transform_indices = @transform_0, window_bounds = array<i64: 10, 128>}, {transform_indices = @transform_1, window_bounds = array<i64: 10, 128>}, {pipeline_mode = #tpu.pipeline_mode<synchronous>, transform_indices = @transform_2, window_bounds = array<i64: 128, 256>}, {pipeline_mode = #tpu.pipeline_mode<synchronous>, transform_indices = @transform_3, window_bounds = array<i64: 128, 256>}, {pipeline_mode = #tpu.pipeline_mode<synchronous>, transform_indices = @transform_4, window_bounds = array<i64: 1, 256>}, {pipeline_mode = #tpu.pipeline_mode<synchronous>, transform_indices = @transform_5, window_bounds = array<i64: 128, 256>}, {pipeline_mode = #tpu.pipeline_mode<synchronous>, transform_indices = @transform_6, window_bounds = array<i64: 1, 256>}, {transform_indices = @transform_7, window_bounds = array<i64: 10, 128>}, {transform_indices = @transform_8, window_bounds = array<i64: 10, 256>}]} {
    %c0 = arith.constant 0 : index
    %c0_0 = arith.constant 0 : index
    %0 = vector.load %arg1[%c0, %c0_0] : memref<10x128xf32, #tpu.memory_space<vmem>>, vector<10x128xf32>
    %c0_1 = arith.constant 0 : index
    %c0_2 = arith.constant 0 : index
    %1 = vector.load %arg3[%c0_1, %c0_2] : memref<128x256xf32, #tpu.memory_space<vmem>>, vector<128x256xf32>
    %cst = arith.constant dense<0.000000e+00> : vector<10x256xf32>
    %2 = tpu.matmul %0, %1, %cst {dimension_numbers = #tpu.dot_dimension_numbers<[1], [0], [0], [1], [0, 0, 1, 1], [], []>} : vector<10x128xf32>, vector<128x256xf32>, vector<10x256xf32> -> vector<10x256xf32>
    %c0_3 = arith.constant 0 : index
    %c0_4 = arith.constant 0 : index
    %3 = vector.load %arg2[%c0_3, %c0_4] : memref<10x128xf32, #tpu.memory_space<vmem>>, vector<10x128xf32>
    %c0_5 = arith.constant 0 : index
    %c0_6 = arith.constant 0 : index
    %4 = vector.load %arg4[%c0_5, %c0_6] : memref<128x256xf32, #tpu.memory_space<vmem>>, vector<128x256xf32>
    %cst_7 = arith.constant dense<0.000000e+00> : vector<10x256xf32>
    %5 = tpu.matmul %3, %4, %cst_7 {dimension_numbers = #tpu.dot_dimension_numbers<[1], [0], [0], [1], [0, 0, 1, 1], [], []>} : vector<10x128xf32>, vector<128x256xf32>, vector<10x256xf32> -> vector<10x256xf32>
    %6 = arith.addf %2, %5 : vector<10x256xf32>
    %c0_8 = arith.constant 0 : index
    %c0_9 = arith.constant 0 : index
    %7 = vector.load %arg5[%c0_8, %c0_9] : memref<1x256xf32, #tpu.memory_space<vmem>>, vector<1x256xf32>
    %8 = vector.broadcast %7 : vector<1x256xf32> to vector<10x256xf32>
    %9 = arith.addf %6, %8 : vector<10x256xf32>
    %10 = vector.extract_strided_slice %9 {offsets = [0, 0], sizes = [10, 128], strides = [1, 1]} : vector<10x256xf32> to vector<10x128xf32>
    %11 = math.tanh %10 : vector<10x128xf32>
    %12 = vector.extract_strided_slice %9 {offsets = [0, 128], sizes = [10, 128], strides = [1, 1]} : vector<10x256xf32> to vector<10x128xf32>
    %13 = arith.negf %12 : vector<10x128xf32>
    %14 = math.exp %13 : vector<10x128xf32>
    %cst_10 = arith.constant 1.000000e+00 : f32
    %15 = vector.broadcast %cst_10 : f32 to vector<10x128xf32>
    %16 = arith.addf %15, %14 : vector<10x128xf32>
    %17 = arith.divf %15, %16 : vector<10x128xf32>
    %18 = arith.mulf %11, %17 : vector<10x128xf32>
    %c0_11 = arith.constant 0 : index
    %c0_12 = arith.constant 0 : index
    %19 = vector.load %arg8[%c0_11, %c0_12] : memref<10x128xf32, #tpu.memory_space<vmem>>, vector<10x128xf32>
    tpu.vector_store %arg8[%c0_11, %c0_12], %18 {strides = array<i32>} : memref<10x128xf32, #tpu.memory_space<vmem>>, vector<10x128xf32>,
    %c0_13 = arith.constant 0 : index
    %c0_14 = arith.constant 0 : index
    %20 = vector.load %arg6[%c0_13, %c0_14] : memref<128x256xf32, #tpu.memory_space<vmem>>, vector<128x256xf32>
    %cst_15 = arith.constant dense<0.000000e+00> : vector<10x256xf32>
    %21 = tpu.matmul %18, %20, %cst_15 {dimension_numbers = #tpu.dot_dimension_numbers<[1], [0], [0], [1], [0, 0, 1, 1], [], []>} : vector<10x128xf32>, vector<128x256xf32>, vector<10x256xf32> -> vector<10x256xf32>
    %c0_16 = arith.constant 0 : index
    %c0_17 = arith.constant 0 : index
    %22 = vector.load %arg7[%c0_16, %c0_17] : memref<1x256xf32, #tpu.memory_space<vmem>>, vector<1x256xf32>
    %23 = vector.broadcast %22 : vector<1x256xf32> to vector<10x256xf32>
    %24 = arith.addf %21, %23 : vector<10x256xf32>
    %c0_18 = arith.constant 0 : index
    %c0_19 = arith.constant 0 : index
    %25 = vector.load %arg9[%c0_18, %c0_19] : memref<10x256xf32, #tpu.memory_space<vmem>>, vector<10x256xf32>
    tpu.vector_store %arg9[%c0_18, %c0_19], %24 {strides = array<i32>} : memref<10x256xf32, #tpu.memory_space<vmem>>, vector<10x256xf32>,
    return
  }
  func.func @transform_0(%arg0: i32) -> (i32, i32) {
    %c0_i32 = arith.constant 0 : i32
    %c0_i32_0 = arith.constant 0 : i32
    return %arg0, %c0_i32 : i32, i32
  }
  func.func @transform_1(%arg0: i32) -> (i32, i32) {
    %c0_i32 = arith.constant 0 : i32
    %c0_i32_0 = arith.constant 0 : i32
    return %arg0, %c0_i32 : i32, i32
  }
  func.func @transform_2(%arg0: i32) -> (i32, i32) {
    %c0_i32 = arith.constant 0 : i32
    %c0_i32_0 = arith.constant 0 : i32
    %c0_i32_1 = arith.constant 0 : i32
    return %c0_i32, %c0_i32_0 : i32, i32
  }
  func.func @transform_3(%arg0: i32) -> (i32, i32) {
    %c0_i32 = arith.constant 0 : i32
    %c0_i32_0 = arith.constant 0 : i32
    %c0_i32_1 = arith.constant 0 : i32
    return %c0_i32, %c0_i32_0 : i32, i32
  }
  func.func @transform_4(%arg0: i32) -> (i32, i32) {
    %c0_i32 = arith.constant 0 : i32
    %c0_i32_0 = arith.constant 0 : i32
    %c0_i32_1 = arith.constant 0 : i32
    return %c0_i32, %c0_i32_0 : i32, i32
  }
  func.func @transform_5(%arg0: i32) -> (i32, i32) {
    %c0_i32 = arith.constant 0 : i32
    %c0_i32_0 = arith.constant 0 : i32
    %c0_i32_1 = arith.constant 0 : i32
    return %c0_i32, %c0_i32_0 : i32, i32
  }
  func.func @transform_6(%arg0: i32) -> (i32, i32) {
    %c0_i32 = arith.constant 0 : i32
    %c0_i32_0 = arith.constant 0 : i32
    %c0_i32_1 = arith.constant 0 : i32
    return %c0_i32, %c0_i32_0 : i32, i32
  }
  func.func @transform_7(%arg0: i32) -> (i32, i32) {
    %c0_i32 = arith.constant 0 : i32
    %c0_i32_0 = arith.constant 0 : i32
    return %arg0, %c0_i32 : i32, i32
  }
  func.func @transform_8(%arg0: i32) -> (i32, i32) {
    %c0_i32 = arith.constant 0 : i32
    %c0_i32_0 = arith.constant 0 : i32
    return %arg0, %c0_i32 : i32, i32
  }
}

module attributes {stable_mosaic.version = 11 : i64} {
  func.func @_sage_kernel(%arg0: i32, %arg1: memref<10x128xf32, #tpu.memory_space<vmem>>, %arg2: memref<10x128xf32, #tpu.memory_space<vmem>>, %arg3: memref<128x128xf32, #tpu.memory_space<vmem>>, %arg4: memref<128x128xf32, #tpu.memory_space<vmem>>, %arg5: memref<1x128xf32, #tpu.memory_space<vmem>>, %arg6: memref<10x128xf32, #tpu.memory_space<vmem>>) attributes {dimension_semantics = [#tpu.dimension_semantics<parallel>], iteration_bounds = array<i64: 1>, scalar_prefetch = 0 : i64, scratch_operands = 0 : i64, tpu.core_type = #tpu.core_type<tc>, window_params = [{transform_indices = @transform_0, window_bounds = array<i64: 10, 128>}, {transform_indices = @transform_1, window_bounds = array<i64: 10, 128>}, {pipeline_mode = #tpu.pipeline_mode<synchronous>, transform_indices = @transform_2, window_bounds = array<i64: 128, 128>}, {pipeline_mode = #tpu.pipeline_mode<synchronous>, transform_indices = @transform_3, window_bounds = array<i64: 128, 128>}, {pipeline_mode = #tpu.pipeline_mode<synchronous>, transform_indices = @transform_4, window_bounds = array<i64: 1, 128>}, {transform_indices = @transform_5, window_bounds = array<i64: 10, 128>}]} {
    %c0 = arith.constant 0 : index
    %c0_0 = arith.constant 0 : index
    %0 = vector.load %arg1[%c0, %c0_0] : memref<10x128xf32, #tpu.memory_space<vmem>>, vector<10x128xf32>
    %c0_1 = arith.constant 0 : index
    %c0_2 = arith.constant 0 : index
    %1 = vector.load %arg3[%c0_1, %c0_2] : memref<128x128xf32, #tpu.memory_space<vmem>>, vector<128x128xf32>
    %cst = arith.constant dense<0.000000e+00> : vector<10x128xf32>
    %2 = tpu.matmul %0, %1, %cst {dimension_numbers = #tpu.dot_dimension_numbers<[1], [0], [0], [1], [0, 0, 1, 1], [], []>} : vector<10x128xf32>, vector<128x128xf32>, vector<10x128xf32> -> vector<10x128xf32>
    %c0_3 = arith.constant 0 : index
    %c0_4 = arith.constant 0 : index
    %3 = vector.load %arg2[%c0_3, %c0_4] : memref<10x128xf32, #tpu.memory_space<vmem>>, vector<10x128xf32>
    %c0_5 = arith.constant 0 : index
    %c0_6 = arith.constant 0 : index
    %4 = vector.load %arg4[%c0_5, %c0_6] : memref<128x128xf32, #tpu.memory_space<vmem>>, vector<128x128xf32>
    %cst_7 = arith.constant dense<0.000000e+00> : vector<10x128xf32>
    %5 = tpu.matmul %3, %4, %cst_7 {dimension_numbers = #tpu.dot_dimension_numbers<[1], [0], [0], [1], [0, 0, 1, 1], [], []>} : vector<10x128xf32>, vector<128x128xf32>, vector<10x128xf32> -> vector<10x128xf32>
    %6 = arith.addf %2, %5 : vector<10x128xf32>
    %c0_8 = arith.constant 0 : index
    %c0_9 = arith.constant 0 : index
    %7 = vector.load %arg5[%c0_8, %c0_9] : memref<1x128xf32, #tpu.memory_space<vmem>>, vector<1x128xf32>
    %8 = vector.broadcast %7 : vector<1x128xf32> to vector<10x128xf32>
    %9 = arith.addf %6, %8 : vector<10x128xf32>
    %cst_10 = arith.constant 0.000000e+00 : f32
    %10 = vector.broadcast %cst_10 : f32 to vector<10x128xf32>
    %11 = arith.maximumf %9, %10 : vector<10x128xf32>
    %c0_11 = arith.constant 0 : index
    %c0_12 = arith.constant 0 : index
    %12 = vector.load %arg6[%c0_11, %c0_12] : memref<10x128xf32, #tpu.memory_space<vmem>>, vector<10x128xf32>
    tpu.vector_store %arg6[%c0_11, %c0_12], %11 {strides = array<i32>} : memref<10x128xf32, #tpu.memory_space<vmem>>, vector<10x128xf32>,
    return
  }
  func.func @transform_0(%arg0: i32) -> (i32, i32) {
    %c0_i32 = arith.constant 0 : i32
    %c0_i32_0 = arith.constant 0 : i32
    return %arg0, %c0_i32 : i32, i32
  }
  func.func @transform_1(%arg0: i32) -> (i32, i32) {
    %c0_i32 = arith.constant 0 : i32
    %c0_i32_0 = arith.constant 0 : i32
    return %arg0, %c0_i32 : i32, i32
  }
  func.func @transform_2(%arg0: i32) -> (i32, i32) {
    %c0_i32 = arith.constant 0 : i32
    %c0_i32_0 = arith.constant 0 : i32
    %c0_i32_1 = arith.constant 0 : i32
    return %c0_i32, %c0_i32_0 : i32, i32
  }
  func.func @transform_3(%arg0: i32) -> (i32, i32) {
    %c0_i32 = arith.constant 0 : i32
    %c0_i32_0 = arith.constant 0 : i32
    %c0_i32_1 = arith.constant 0 : i32
    return %c0_i32, %c0_i32_0 : i32, i32
  }
  func.func @transform_4(%arg0: i32) -> (i32, i32) {
    %c0_i32 = arith.constant 0 : i32
    %c0_i32_0 = arith.constant 0 : i32
    %c0_i32_1 = arith.constant 0 : i32
    return %c0_i32, %c0_i32_0 : i32, i32
  }
  func.func @transform_5(%arg0: i32) -> (i32, i32) {
    %c0_i32 = arith.constant 0 : i32
    %c0_i32_0 = arith.constant 0 : i32
    return %arg0, %c0_i32 : i32, i32
  }
}

module attributes {stable_mosaic.version = 11 : i64} {
  func.func @_agg_kernel(%arg0: i32, %arg1: memref<8x8xf32, #tpu.memory_space<vmem>>, %arg2: memref<1x8x80xf32, #tpu.memory_space<vmem>>, %arg3: memref<1x8x80xf32, #tpu.memory_space<vmem>>) attributes {dimension_semantics = [#tpu.dimension_semantics<parallel>], iteration_bounds = array<i64: 2>, scalar_prefetch = 0 : i64, scratch_operands = 0 : i64, tpu.core_type = #tpu.core_type<tc>, window_params = [{pipeline_mode = #tpu.pipeline_mode<synchronous>, transform_indices = @transform_0, window_bounds = array<i64: 8, 8>}, {transform_indices = @transform_1, window_bounds = array<i64: 1, 8, 80>}, {transform_indices = @transform_2, window_bounds = array<i64: 1, 8, 80>}]} {
    %c0 = arith.constant 0 : index
    %c0_0 = arith.constant 0 : index
    %0 = vector.load %arg1[%c0, %c0_0] : memref<8x8xf32, #tpu.memory_space<vmem>>, vector<8x8xf32>
    %c0_1 = arith.constant 0 : index
    %c0_2 = arith.constant 0 : index
    %c0_3 = arith.constant 0 : index
    %1 = vector.load %arg2[%c0_1, %c0_2, %c0_3] : memref<1x8x80xf32, #tpu.memory_space<vmem>>, vector<1x8x80xf32>
    %2 = vector.shape_cast %1 : vector<1x8x80xf32> to vector<8x80xf32>
    %cst = arith.constant dense<0.000000e+00> : vector<8x80xf32>
    %3 = tpu.matmul %0, %2, %cst {dimension_numbers = #tpu.dot_dimension_numbers<[1], [0], [0], [1], [0, 0, 1, 1], [], []>} : vector<8x8xf32>, vector<8x80xf32>, vector<8x80xf32> -> vector<8x80xf32>
    %c0_4 = arith.constant 0 : index
    %c0_5 = arith.constant 0 : index
    %c0_6 = arith.constant 0 : index
    %4 = vector.load %arg3[%c0_4, %c0_5, %c0_6] : memref<1x8x80xf32, #tpu.memory_space<vmem>>, vector<1x8x80xf32>
    %5 = vector.shape_cast %4 : vector<1x8x80xf32> to vector<8x80xf32>
    %6 = vector.shape_cast %3 : vector<8x80xf32> to vector<1x8x80xf32>
    tpu.vector_store %arg3[%c0_4, %c0_5, %c0_6], %6 {strides = array<i32>} : memref<1x8x80xf32, #tpu.memory_space<vmem>>, vector<1x8x80xf32>,
    return
  }
  func.func @transform_0(%arg0: i32) -> (i32, i32) {
    %c0_i32 = arith.constant 0 : i32
    %c0_i32_0 = arith.constant 0 : i32
    %c0_i32_1 = arith.constant 0 : i32
    return %c0_i32, %c0_i32_0 : i32, i32
  }
  func.func @transform_1(%arg0: i32) -> (i32, i32, i32) {
    %c0_i32 = arith.constant 0 : i32
    %c0_i32_0 = arith.constant 0 : i32
    %c0_i32_1 = arith.constant 0 : i32
    return %arg0, %c0_i32, %c0_i32_0 : i32, i32, i32
  }
  func.func @transform_2(%arg0: i32) -> (i32, i32, i32) {
    %c0_i32 = arith.constant 0 : i32
    %c0_i32_0 = arith.constant 0 : i32
    %c0_i32_1 = arith.constant 0 : i32
    return %arg0, %c0_i32, %c0_i32_0 : i32, i32, i32
  }
}

module attributes {stable_mosaic.version = 11 : i64} {
  func.func @_agg_skip_kernel(%arg0: i32, %arg1: memref<8x8xf32, #tpu.memory_space<vmem>>, %arg2: memref<1x8x80xf32, #tpu.memory_space<vmem>>, %arg3: memref<1x8x160xf32, #tpu.memory_space<vmem>>, %arg4: memref<1x8x224xf32, #tpu.memory_space<vmem>>, %arg5: memref<1x8x80xf32, #tpu.memory_space<vmem>>, %arg6: memref<1x8x160xf32, #tpu.memory_space<vmem>>) attributes {dimension_semantics = [#tpu.dimension_semantics<parallel>], iteration_bounds = array<i64: 2>, scalar_prefetch = 0 : i64, scratch_operands = 0 : i64, tpu.core_type = #tpu.core_type<tc>, window_params = [{pipeline_mode = #tpu.pipeline_mode<synchronous>, transform_indices = @transform_0, window_bounds = array<i64: 8, 8>}, {transform_indices = @transform_1, window_bounds = array<i64: 1, 8, 80>}, {transform_indices = @transform_2, window_bounds = array<i64: 1, 8, 160>}, {transform_indices = @transform_3, window_bounds = array<i64: 1, 8, 224>}, {transform_indices = @transform_4, window_bounds = array<i64: 1, 8, 80>}, {transform_indices = @transform_5, window_bounds = array<i64: 1, 8, 160>}]} {
    %c0 = arith.constant 0 : index
    %c0_0 = arith.constant 0 : index
    %0 = vector.load %arg1[%c0, %c0_0] : memref<8x8xf32, #tpu.memory_space<vmem>>, vector<8x8xf32>
    %c0_1 = arith.constant 0 : index
    %c0_2 = arith.constant 0 : index
    %c0_3 = arith.constant 0 : index
    %1 = vector.load %arg2[%c0_1, %c0_2, %c0_3] : memref<1x8x80xf32, #tpu.memory_space<vmem>>, vector<1x8x80xf32>
    %2 = vector.shape_cast %1 : vector<1x8x80xf32> to vector<8x80xf32>
    %cst = arith.constant dense<0.000000e+00> : vector<8x80xf32>
    %3 = tpu.matmul %0, %2, %cst {dimension_numbers = #tpu.dot_dimension_numbers<[1], [0], [0], [1], [0, 0, 1, 1], [], []>} : vector<8x8xf32>, vector<8x80xf32>, vector<8x80xf32> -> vector<8x80xf32>
    %c0_4 = arith.constant 0 : index
    %c0_5 = arith.constant 0 : index
    %c0_6 = arith.constant 0 : index
    %4 = vector.load %arg5[%c0_4, %c0_5, %c0_6] : memref<1x8x80xf32, #tpu.memory_space<vmem>>, vector<1x8x80xf32>
    %5 = vector.shape_cast %4 : vector<1x8x80xf32> to vector<8x80xf32>
    %6 = vector.shape_cast %3 : vector<8x80xf32> to vector<1x8x80xf32>
    tpu.vector_store %arg5[%c0_4, %c0_5, %c0_6], %6 {strides = array<i32>} : memref<1x8x80xf32, #tpu.memory_space<vmem>>, vector<1x8x80xf32>,
    %c0_7 = arith.constant 0 : index
    %c0_8 = arith.constant 0 : index
    %c0_9 = arith.constant 0 : index
    %7 = vector.load %arg3[%c0_7, %c0_8, %c0_9] : memref<1x8x160xf32, #tpu.memory_space<vmem>>, vector<1x8x160xf32>
    %8 = vector.shape_cast %7 : vector<1x8x160xf32> to vector<8x160xf32>
    %c0_10 = arith.constant 0 : index
    %c0_11 = arith.constant 0 : index
    %c0_12 = arith.constant 0 : index
    %9 = vector.load %arg4[%c0_10, %c0_11, %c0_12] : memref<1x8x224xf32, #tpu.memory_space<vmem>>, vector<1x8x224xf32>
    %10 = vector.shape_cast %9 : vector<1x8x224xf32> to vector<8x224xf32>
    %11 = vector.extract_strided_slice %10 {offsets = [0, 64], sizes = [8, 160], strides = [1, 1]} : vector<8x224xf32> to vector<8x160xf32>
    %12 = arith.addf %8, %11 : vector<8x160xf32>
    %c0_13 = arith.constant 0 : index
    %c0_14 = arith.constant 0 : index
    %c0_15 = arith.constant 0 : index
    %13 = vector.load %arg6[%c0_13, %c0_14, %c0_15] : memref<1x8x160xf32, #tpu.memory_space<vmem>>, vector<1x8x160xf32>
    %14 = vector.shape_cast %13 : vector<1x8x160xf32> to vector<8x160xf32>
    %15 = vector.shape_cast %12 : vector<8x160xf32> to vector<1x8x160xf32>
    tpu.vector_store %arg6[%c0_13, %c0_14, %c0_15], %15 {strides = array<i32>} : memref<1x8x160xf32, #tpu.memory_space<vmem>>, vector<1x8x160xf32>,
    return
  }
  func.func @transform_0(%arg0: i32) -> (i32, i32) {
    %c0_i32 = arith.constant 0 : i32
    %c0_i32_0 = arith.constant 0 : i32
    %c0_i32_1 = arith.constant 0 : i32
    return %c0_i32, %c0_i32_0 : i32, i32
  }
  func.func @transform_1(%arg0: i32) -> (i32, i32, i32) {
    %c0_i32 = arith.constant 0 : i32
    %c0_i32_0 = arith.constant 0 : i32
    %c0_i32_1 = arith.constant 0 : i32
    return %arg0, %c0_i32, %c0_i32_0 : i32, i32, i32
  }
  func.func @transform_2(%arg0: i32) -> (i32, i32, i32) {
    %c0_i32 = arith.constant 0 : i32
    %c0_i32_0 = arith.constant 0 : i32
    %c0_i32_1 = arith.constant 0 : i32
    return %arg0, %c0_i32, %c0_i32_0 : i32, i32, i32
  }
  func.func @transform_3(%arg0: i32) -> (i32, i32, i32) {
    %c0_i32 = arith.constant 0 : i32
    %c0_i32_0 = arith.constant 0 : i32
    %c0_i32_1 = arith.constant 0 : i32
    return %arg0, %c0_i32, %c0_i32_0 : i32, i32, i32
  }
  func.func @transform_4(%arg0: i32) -> (i32, i32, i32) {
    %c0_i32 = arith.constant 0 : i32
    %c0_i32_0 = arith.constant 0 : i32
    %c0_i32_1 = arith.constant 0 : i32
    return %arg0, %c0_i32, %c0_i32_0 : i32, i32, i32
  }
  func.func @transform_5(%arg0: i32) -> (i32, i32, i32) {
    %c0_i32 = arith.constant 0 : i32
    %c0_i32_0 = arith.constant 0 : i32
    %c0_i32_1 = arith.constant 0 : i32
    return %arg0, %c0_i32, %c0_i32_0 : i32, i32, i32
  }
}

module attributes {stable_mosaic.version = 11 : i64} {
  func.func @_sage_res_bn_kernel(%arg0: i32, %arg1: memref<10x128xf32, #tpu.memory_space<vmem>>, %arg2: memref<10x128xf32, #tpu.memory_space<vmem>>, %arg3: memref<10x128xf32, #tpu.memory_space<vmem>>, %arg4: memref<128x128xf32, #tpu.memory_space<vmem>>, %arg5: memref<128x128xf32, #tpu.memory_space<vmem>>, %arg6: memref<1x128xf32, #tpu.memory_space<vmem>>, %arg7: memref<1x128xf32, #tpu.memory_space<vmem>>, %arg8: memref<1x128xf32, #tpu.memory_space<vmem>>, %arg9: memref<10x128xf32, #tpu.memory_space<vmem>>) attributes {dimension_semantics = [#tpu.dimension_semantics<parallel>], iteration_bounds = array<i64: 1>, scalar_prefetch = 0 : i64, scratch_operands = 0 : i64, tpu.core_type = #tpu.core_type<tc>, window_params = [{transform_indices = @transform_0, window_bounds = array<i64: 10, 128>}, {transform_indices = @transform_1, window_bounds = array<i64: 10, 128>}, {transform_indices = @transform_2, window_bounds = array<i64: 10, 128>}, {pipeline_mode = #tpu.pipeline_mode<synchronous>, transform_indices = @transform_3, window_bounds = array<i64: 128, 128>}, {pipeline_mode = #tpu.pipeline_mode<synchronous>, transform_indices = @transform_4, window_bounds = array<i64: 128, 128>}, {pipeline_mode = #tpu.pipeline_mode<synchronous>, transform_indices = @transform_5, window_bounds = array<i64: 1, 128>}, {pipeline_mode = #tpu.pipeline_mode<synchronous>, transform_indices = @transform_6, window_bounds = array<i64: 1, 128>}, {pipeline_mode = #tpu.pipeline_mode<synchronous>, transform_indices = @transform_7, window_bounds = array<i64: 1, 128>}, {transform_indices = @transform_8, window_bounds = array<i64: 10, 128>}]} {
    %c0 = arith.constant 0 : index
    %c0_0 = arith.constant 0 : index
    %0 = vector.load %arg1[%c0, %c0_0] : memref<10x128xf32, #tpu.memory_space<vmem>>, vector<10x128xf32>
    %c0_1 = arith.constant 0 : index
    %c0_2 = arith.constant 0 : index
    %1 = vector.load %arg4[%c0_1, %c0_2] : memref<128x128xf32, #tpu.memory_space<vmem>>, vector<128x128xf32>
    %cst = arith.constant dense<0.000000e+00> : vector<10x128xf32>
    %2 = tpu.matmul %0, %1, %cst {dimension_numbers = #tpu.dot_dimension_numbers<[1], [0], [0], [1], [0, 0, 1, 1], [], []>} : vector<10x128xf32>, vector<128x128xf32>, vector<10x128xf32> -> vector<10x128xf32>
    %c0_3 = arith.constant 0 : index
    %c0_4 = arith.constant 0 : index
    %3 = vector.load %arg2[%c0_3, %c0_4] : memref<10x128xf32, #tpu.memory_space<vmem>>, vector<10x128xf32>
    %c0_5 = arith.constant 0 : index
    %c0_6 = arith.constant 0 : index
    %4 = vector.load %arg5[%c0_5, %c0_6] : memref<128x128xf32, #tpu.memory_space<vmem>>, vector<128x128xf32>
    %cst_7 = arith.constant dense<0.000000e+00> : vector<10x128xf32>
    %5 = tpu.matmul %3, %4, %cst_7 {dimension_numbers = #tpu.dot_dimension_numbers<[1], [0], [0], [1], [0, 0, 1, 1], [], []>} : vector<10x128xf32>, vector<128x128xf32>, vector<10x128xf32> -> vector<10x128xf32>
    %6 = arith.addf %2, %5 : vector<10x128xf32>
    %c0_8 = arith.constant 0 : index
    %c0_9 = arith.constant 0 : index
    %7 = vector.load %arg6[%c0_8, %c0_9] : memref<1x128xf32, #tpu.memory_space<vmem>>, vector<1x128xf32>
    %8 = vector.broadcast %7 : vector<1x128xf32> to vector<10x128xf32>
    %9 = arith.addf %6, %8 : vector<10x128xf32>
    %cst_10 = arith.constant 0.000000e+00 : f32
    %10 = vector.broadcast %cst_10 : f32 to vector<10x128xf32>
    %11 = arith.maximumf %9, %10 : vector<10x128xf32>
    %c0_11 = arith.constant 0 : index
    %c0_12 = arith.constant 0 : index
    %12 = vector.load %arg3[%c0_11, %c0_12] : memref<10x128xf32, #tpu.memory_space<vmem>>, vector<10x128xf32>
    %13 = arith.addf %11, %12 : vector<10x128xf32>
    %c0_13 = arith.constant 0 : index
    %c0_14 = arith.constant 0 : index
    %14 = vector.load %arg7[%c0_13, %c0_14] : memref<1x128xf32, #tpu.memory_space<vmem>>, vector<1x128xf32>
    %15 = vector.broadcast %14 : vector<1x128xf32> to vector<10x128xf32>
    %16 = arith.mulf %13, %15 : vector<10x128xf32>
    %c0_15 = arith.constant 0 : index
    %c0_16 = arith.constant 0 : index
    %17 = vector.load %arg8[%c0_15, %c0_16] : memref<1x128xf32, #tpu.memory_space<vmem>>, vector<1x128xf32>
    %18 = vector.broadcast %17 : vector<1x128xf32> to vector<10x128xf32>
    %19 = arith.addf %16, %18 : vector<10x128xf32>
    %c0_17 = arith.constant 0 : index
    %c0_18 = arith.constant 0 : index
    %20 = vector.load %arg9[%c0_17, %c0_18] : memref<10x128xf32, #tpu.memory_space<vmem>>, vector<10x128xf32>
    tpu.vector_store %arg9[%c0_17, %c0_18], %19 {strides = array<i32>} : memref<10x128xf32, #tpu.memory_space<vmem>>, vector<10x128xf32>,
    return
  }
  func.func @transform_0(%arg0: i32) -> (i32, i32) {
    %c0_i32 = arith.constant 0 : i32
    %c0_i32_0 = arith.constant 0 : i32
    return %arg0, %c0_i32 : i32, i32
  }
  func.func @transform_1(%arg0: i32) -> (i32, i32) {
    %c0_i32 = arith.constant 0 : i32
    %c0_i32_0 = arith.constant 0 : i32
    return %arg0, %c0_i32 : i32, i32
  }
  func.func @transform_2(%arg0: i32) -> (i32, i32) {
    %c0_i32 = arith.constant 0 : i32
    %c0_i32_0 = arith.constant 0 : i32
    return %arg0, %c0_i32 : i32, i32
  }
  func.func @transform_3(%arg0: i32) -> (i32, i32) {
    %c0_i32 = arith.constant 0 : i32
    %c0_i32_0 = arith.constant 0 : i32
    %c0_i32_1 = arith.constant 0 : i32
    return %c0_i32, %c0_i32_0 : i32, i32
  }
  func.func @transform_4(%arg0: i32) -> (i32, i32) {
    %c0_i32 = arith.constant 0 : i32
    %c0_i32_0 = arith.constant 0 : i32
    %c0_i32_1 = arith.constant 0 : i32
    return %c0_i32, %c0_i32_0 : i32, i32
  }
  func.func @transform_5(%arg0: i32) -> (i32, i32) {
    %c0_i32 = arith.constant 0 : i32
    %c0_i32_0 = arith.constant 0 : i32
    %c0_i32_1 = arith.constant 0 : i32
    return %c0_i32, %c0_i32_0 : i32, i32
  }
  func.func @transform_6(%arg0: i32) -> (i32, i32) {
    %c0_i32 = arith.constant 0 : i32
    %c0_i32_0 = arith.constant 0 : i32
    %c0_i32_1 = arith.constant 0 : i32
    return %c0_i32, %c0_i32_0 : i32, i32
  }
  func.func @transform_7(%arg0: i32) -> (i32, i32) {
    %c0_i32 = arith.constant 0 : i32
    %c0_i32_0 = arith.constant 0 : i32
    %c0_i32_1 = arith.constant 0 : i32
    return %c0_i32, %c0_i32_0 : i32, i32
  }
  func.func @transform_8(%arg0: i32) -> (i32, i32) {
    %c0_i32 = arith.constant 0 : i32
    %c0_i32_0 = arith.constant 0 : i32
    return %arg0, %c0_i32 : i32, i32
  }
}

module attributes {stable_mosaic.version = 11 : i64} {
  func.func @_gate_skip_kernel(%arg0: i32, %arg1: memref<8x128xf32, #tpu.memory_space<vmem>>, %arg2: memref<8x128xf32, #tpu.memory_space<vmem>>, %arg3: memref<128x256xf32, #tpu.memory_space<vmem>>, %arg4: memref<128x256xf32, #tpu.memory_space<vmem>>, %arg5: memref<1x256xf32, #tpu.memory_space<vmem>>, %arg6: memref<128x256xf32, #tpu.memory_space<vmem>>, %arg7: memref<1x256xf32, #tpu.memory_space<vmem>>, %arg8: memref<8x128xf32, #tpu.memory_space<vmem>>, %arg9: memref<8x256xf32, #tpu.memory_space<vmem>>) attributes {dimension_semantics = [#tpu.dimension_semantics<parallel>], iteration_bounds = array<i64: 1>, scalar_prefetch = 0 : i64, scratch_operands = 0 : i64, tpu.core_type = #tpu.core_type<tc>, window_params = [{transform_indices = @transform_0, window_bounds = array<i64: 8, 128>}, {transform_indices = @transform_1, window_bounds = array<i64: 8, 128>}, {pipeline_mode = #tpu.pipeline_mode<synchronous>, transform_indices = @transform_2, window_bounds = array<i64: 128, 256>}, {pipeline_mode = #tpu.pipeline_mode<synchronous>, transform_indices = @transform_3, window_bounds = array<i64: 128, 256>}, {pipeline_mode = #tpu.pipeline_mode<synchronous>, transform_indices = @transform_4, window_bounds = array<i64: 1, 256>}, {pipeline_mode = #tpu.pipeline_mode<synchronous>, transform_indices = @transform_5, window_bounds = array<i64: 128, 256>}, {pipeline_mode = #tpu.pipeline_mode<synchronous>, transform_indices = @transform_6, window_bounds = array<i64: 1, 256>}, {transform_indices = @transform_7, window_bounds = array<i64: 8, 128>}, {transform_indices = @transform_8, window_bounds = array<i64: 8, 256>}]} {
    %c0 = arith.constant 0 : index
    %c0_0 = arith.constant 0 : index
    %0 = vector.load %arg1[%c0, %c0_0] : memref<8x128xf32, #tpu.memory_space<vmem>>, vector<8x128xf32>
    %c0_1 = arith.constant 0 : index
    %c0_2 = arith.constant 0 : index
    %1 = vector.load %arg3[%c0_1, %c0_2] : memref<128x256xf32, #tpu.memory_space<vmem>>, vector<128x256xf32>
    %cst = arith.constant dense<0.000000e+00> : vector<8x256xf32>
    %2 = tpu.matmul %0, %1, %cst {dimension_numbers = #tpu.dot_dimension_numbers<[1], [0], [0], [1], [0, 0, 1, 1], [], []>} : vector<8x128xf32>, vector<128x256xf32>, vector<8x256xf32> -> vector<8x256xf32>
    %c0_3 = arith.constant 0 : index
    %c0_4 = arith.constant 0 : index
    %3 = vector.load %arg2[%c0_3, %c0_4] : memref<8x128xf32, #tpu.memory_space<vmem>>, vector<8x128xf32>
    %c0_5 = arith.constant 0 : index
    %c0_6 = arith.constant 0 : index
    %4 = vector.load %arg4[%c0_5, %c0_6] : memref<128x256xf32, #tpu.memory_space<vmem>>, vector<128x256xf32>
    %cst_7 = arith.constant dense<0.000000e+00> : vector<8x256xf32>
    %5 = tpu.matmul %3, %4, %cst_7 {dimension_numbers = #tpu.dot_dimension_numbers<[1], [0], [0], [1], [0, 0, 1, 1], [], []>} : vector<8x128xf32>, vector<128x256xf32>, vector<8x256xf32> -> vector<8x256xf32>
    %6 = arith.addf %2, %5 : vector<8x256xf32>
    %c0_8 = arith.constant 0 : index
    %c0_9 = arith.constant 0 : index
    %7 = vector.load %arg5[%c0_8, %c0_9] : memref<1x256xf32, #tpu.memory_space<vmem>>, vector<1x256xf32>
    %8 = vector.broadcast %7 : vector<1x256xf32> to vector<8x256xf32>
    %9 = arith.addf %6, %8 : vector<8x256xf32>
    %10 = vector.extract_strided_slice %9 {offsets = [0, 0], sizes = [8, 128], strides = [1, 1]} : vector<8x256xf32> to vector<8x128xf32>
    %11 = math.tanh %10 : vector<8x128xf32>
    %12 = vector.extract_strided_slice %9 {offsets = [0, 128], sizes = [8, 128], strides = [1, 1]} : vector<8x256xf32> to vector<8x128xf32>
    %13 = arith.negf %12 : vector<8x128xf32>
    %14 = math.exp %13 : vector<8x128xf32>
    %cst_10 = arith.constant 1.000000e+00 : f32
    %15 = vector.broadcast %cst_10 : f32 to vector<8x128xf32>
    %16 = arith.addf %15, %14 : vector<8x128xf32>
    %17 = arith.divf %15, %16 : vector<8x128xf32>
    %18 = arith.mulf %11, %17 : vector<8x128xf32>
    %c0_11 = arith.constant 0 : index
    %c0_12 = arith.constant 0 : index
    %19 = vector.load %arg8[%c0_11, %c0_12] : memref<8x128xf32, #tpu.memory_space<vmem>>, vector<8x128xf32>
    tpu.vector_store %arg8[%c0_11, %c0_12], %18 {strides = array<i32>} : memref<8x128xf32, #tpu.memory_space<vmem>>, vector<8x128xf32>,
    %c0_13 = arith.constant 0 : index
    %c0_14 = arith.constant 0 : index
    %20 = vector.load %arg6[%c0_13, %c0_14] : memref<128x256xf32, #tpu.memory_space<vmem>>, vector<128x256xf32>
    %cst_15 = arith.constant dense<0.000000e+00> : vector<8x256xf32>
    %21 = tpu.matmul %18, %20, %cst_15 {dimension_numbers = #tpu.dot_dimension_numbers<[1], [0], [0], [1], [0, 0, 1, 1], [], []>} : vector<8x128xf32>, vector<128x256xf32>, vector<8x256xf32> -> vector<8x256xf32>
    %c0_16 = arith.constant 0 : index
    %c0_17 = arith.constant 0 : index
    %22 = vector.load %arg7[%c0_16, %c0_17] : memref<1x256xf32, #tpu.memory_space<vmem>>, vector<1x256xf32>
    %23 = vector.broadcast %22 : vector<1x256xf32> to vector<8x256xf32>
    %24 = arith.addf %21, %23 : vector<8x256xf32>
    %c0_18 = arith.constant 0 : index
    %c0_19 = arith.constant 0 : index
    %25 = vector.load %arg9[%c0_18, %c0_19] : memref<8x256xf32, #tpu.memory_space<vmem>>, vector<8x256xf32>
    tpu.vector_store %arg9[%c0_18, %c0_19], %24 {strides = array<i32>} : memref<8x256xf32, #tpu.memory_space<vmem>>, vector<8x256xf32>,
    return
  }
  func.func @transform_0(%arg0: i32) -> (i32, i32) {
    %c0_i32 = arith.constant 0 : i32
    %c0_i32_0 = arith.constant 0 : i32
    return %arg0, %c0_i32 : i32, i32
  }
  func.func @transform_1(%arg0: i32) -> (i32, i32) {
    %c0_i32 = arith.constant 0 : i32
    %c0_i32_0 = arith.constant 0 : i32
    return %arg0, %c0_i32 : i32, i32
  }
  func.func @transform_2(%arg0: i32) -> (i32, i32) {
    %c0_i32 = arith.constant 0 : i32
    %c0_i32_0 = arith.constant 0 : i32
    %c0_i32_1 = arith.constant 0 : i32
    return %c0_i32, %c0_i32_0 : i32, i32
  }
  func.func @transform_3(%arg0: i32) -> (i32, i32) {
    %c0_i32 = arith.constant 0 : i32
    %c0_i32_0 = arith.constant 0 : i32
    %c0_i32_1 = arith.constant 0 : i32
    return %c0_i32, %c0_i32_0 : i32, i32
  }
  func.func @transform_4(%arg0: i32) -> (i32, i32) {
    %c0_i32 = arith.constant 0 : i32
    %c0_i32_0 = arith.constant 0 : i32
    %c0_i32_1 = arith.constant 0 : i32
    return %c0_i32, %c0_i32_0 : i32, i32
  }
  func.func @transform_5(%arg0: i32) -> (i32, i32) {
    %c0_i32 = arith.constant 0 : i32
    %c0_i32_0 = arith.constant 0 : i32
    %c0_i32_1 = arith.constant 0 : i32
    return %c0_i32, %c0_i32_0 : i32, i32
  }
  func.func @transform_6(%arg0: i32) -> (i32, i32) {
    %c0_i32 = arith.constant 0 : i32
    %c0_i32_0 = arith.constant 0 : i32
    %c0_i32_1 = arith.constant 0 : i32
    return %c0_i32, %c0_i32_0 : i32, i32
  }
  func.func @transform_7(%arg0: i32) -> (i32, i32) {
    %c0_i32 = arith.constant 0 : i32
    %c0_i32_0 = arith.constant 0 : i32
    return %arg0, %c0_i32 : i32, i32
  }
  func.func @transform_8(%arg0: i32) -> (i32, i32) {
    %c0_i32 = arith.constant 0 : i32
    %c0_i32_0 = arith.constant 0 : i32
    return %arg0, %c0_i32 : i32, i32
  }
}

module attributes {stable_mosaic.version = 11 : i64} {
  func.func @_agg_skip_kernel(%arg0: i32, %arg1: memref<8x8xf32, #tpu.memory_space<vmem>>, %arg2: memref<1x8x64xf32, #tpu.memory_space<vmem>>, %arg3: memref<1x8x128xf32, #tpu.memory_space<vmem>>, %arg4: memref<1x8x160xf32, #tpu.memory_space<vmem>>, %arg5: memref<1x8x64xf32, #tpu.memory_space<vmem>>, %arg6: memref<1x8x128xf32, #tpu.memory_space<vmem>>) attributes {dimension_semantics = [#tpu.dimension_semantics<parallel>], iteration_bounds = array<i64: 2>, scalar_prefetch = 0 : i64, scratch_operands = 0 : i64, tpu.core_type = #tpu.core_type<tc>, window_params = [{pipeline_mode = #tpu.pipeline_mode<synchronous>, transform_indices = @transform_0, window_bounds = array<i64: 8, 8>}, {transform_indices = @transform_1, window_bounds = array<i64: 1, 8, 64>}, {transform_indices = @transform_2, window_bounds = array<i64: 1, 8, 128>}, {transform_indices = @transform_3, window_bounds = array<i64: 1, 8, 160>}, {transform_indices = @transform_4, window_bounds = array<i64: 1, 8, 64>}, {transform_indices = @transform_5, window_bounds = array<i64: 1, 8, 128>}]} {
    %c0 = arith.constant 0 : index
    %c0_0 = arith.constant 0 : index
    %0 = vector.load %arg1[%c0, %c0_0] : memref<8x8xf32, #tpu.memory_space<vmem>>, vector<8x8xf32>
    %c0_1 = arith.constant 0 : index
    %c0_2 = arith.constant 0 : index
    %c0_3 = arith.constant 0 : index
    %1 = vector.load %arg2[%c0_1, %c0_2, %c0_3] : memref<1x8x64xf32, #tpu.memory_space<vmem>>, vector<1x8x64xf32>
    %2 = vector.shape_cast %1 : vector<1x8x64xf32> to vector<8x64xf32>
    %cst = arith.constant dense<0.000000e+00> : vector<8x64xf32>
    %3 = tpu.matmul %0, %2, %cst {dimension_numbers = #tpu.dot_dimension_numbers<[1], [0], [0], [1], [0, 0, 1, 1], [], []>} : vector<8x8xf32>, vector<8x64xf32>, vector<8x64xf32> -> vector<8x64xf32>
    %c0_4 = arith.constant 0 : index
    %c0_5 = arith.constant 0 : index
    %c0_6 = arith.constant 0 : index
    %4 = vector.load %arg5[%c0_4, %c0_5, %c0_6] : memref<1x8x64xf32, #tpu.memory_space<vmem>>, vector<1x8x64xf32>
    %5 = vector.shape_cast %4 : vector<1x8x64xf32> to vector<8x64xf32>
    %6 = vector.shape_cast %3 : vector<8x64xf32> to vector<1x8x64xf32>
    tpu.vector_store %arg5[%c0_4, %c0_5, %c0_6], %6 {strides = array<i32>} : memref<1x8x64xf32, #tpu.memory_space<vmem>>, vector<1x8x64xf32>,
    %c0_7 = arith.constant 0 : index
    %c0_8 = arith.constant 0 : index
    %c0_9 = arith.constant 0 : index
    %7 = vector.load %arg3[%c0_7, %c0_8, %c0_9] : memref<1x8x128xf32, #tpu.memory_space<vmem>>, vector<1x8x128xf32>
    %8 = vector.shape_cast %7 : vector<1x8x128xf32> to vector<8x128xf32>
    %c0_10 = arith.constant 0 : index
    %c0_11 = arith.constant 0 : index
    %c0_12 = arith.constant 0 : index
    %9 = vector.load %arg4[%c0_10, %c0_11, %c0_12] : memref<1x8x160xf32, #tpu.memory_space<vmem>>, vector<1x8x160xf32>
    %10 = vector.shape_cast %9 : vector<1x8x160xf32> to vector<8x160xf32>
    %11 = vector.extract_strided_slice %10 {offsets = [0, 32], sizes = [8, 128], strides = [1, 1]} : vector<8x160xf32> to vector<8x128xf32>
    %12 = arith.addf %8, %11 : vector<8x128xf32>
    %c0_13 = arith.constant 0 : index
    %c0_14 = arith.constant 0 : index
    %c0_15 = arith.constant 0 : index
    %13 = vector.load %arg6[%c0_13, %c0_14, %c0_15] : memref<1x8x128xf32, #tpu.memory_space<vmem>>, vector<1x8x128xf32>
    %14 = vector.shape_cast %13 : vector<1x8x128xf32> to vector<8x128xf32>
    %15 = vector.shape_cast %12 : vector<8x128xf32> to vector<1x8x128xf32>
    tpu.vector_store %arg6[%c0_13, %c0_14, %c0_15], %15 {strides = array<i32>} : memref<1x8x128xf32, #tpu.memory_space<vmem>>, vector<1x8x128xf32>,
    return
  }
  func.func @transform_0(%arg0: i32) -> (i32, i32) {
    %c0_i32 = arith.constant 0 : i32
    %c0_i32_0 = arith.constant 0 : i32
    %c0_i32_1 = arith.constant 0 : i32
    return %c0_i32, %c0_i32_0 : i32, i32
  }
  func.func @transform_1(%arg0: i32) -> (i32, i32, i32) {
    %c0_i32 = arith.constant 0 : i32
    %c0_i32_0 = arith.constant 0 : i32
    %c0_i32_1 = arith.constant 0 : i32
    return %arg0, %c0_i32, %c0_i32_0 : i32, i32, i32
  }
  func.func @transform_2(%arg0: i32) -> (i32, i32, i32) {
    %c0_i32 = arith.constant 0 : i32
    %c0_i32_0 = arith.constant 0 : i32
    %c0_i32_1 = arith.constant 0 : i32
    return %arg0, %c0_i32, %c0_i32_0 : i32, i32, i32
  }
  func.func @transform_3(%arg0: i32) -> (i32, i32, i32) {
    %c0_i32 = arith.constant 0 : i32
    %c0_i32_0 = arith.constant 0 : i32
    %c0_i32_1 = arith.constant 0 : i32
    return %arg0, %c0_i32, %c0_i32_0 : i32, i32, i32
  }
  func.func @transform_4(%arg0: i32) -> (i32, i32, i32) {
    %c0_i32 = arith.constant 0 : i32
    %c0_i32_0 = arith.constant 0 : i32
    %c0_i32_1 = arith.constant 0 : i32
    return %arg0, %c0_i32, %c0_i32_0 : i32, i32, i32
  }
  func.func @transform_5(%arg0: i32) -> (i32, i32, i32) {
    %c0_i32 = arith.constant 0 : i32
    %c0_i32_0 = arith.constant 0 : i32
    %c0_i32_1 = arith.constant 0 : i32
    return %arg0, %c0_i32, %c0_i32_0 : i32, i32, i32
  }
}

module attributes {stable_mosaic.version = 11 : i64} {
  func.func @_sage_kernel(%arg0: i32, %arg1: memref<8x128xf32, #tpu.memory_space<vmem>>, %arg2: memref<8x128xf32, #tpu.memory_space<vmem>>, %arg3: memref<128x128xf32, #tpu.memory_space<vmem>>, %arg4: memref<128x128xf32, #tpu.memory_space<vmem>>, %arg5: memref<1x128xf32, #tpu.memory_space<vmem>>, %arg6: memref<8x128xf32, #tpu.memory_space<vmem>>) attributes {dimension_semantics = [#tpu.dimension_semantics<parallel>], iteration_bounds = array<i64: 1>, scalar_prefetch = 0 : i64, scratch_operands = 0 : i64, tpu.core_type = #tpu.core_type<tc>, window_params = [{transform_indices = @transform_0, window_bounds = array<i64: 8, 128>}, {transform_indices = @transform_1, window_bounds = array<i64: 8, 128>}, {pipeline_mode = #tpu.pipeline_mode<synchronous>, transform_indices = @transform_2, window_bounds = array<i64: 128, 128>}, {pipeline_mode = #tpu.pipeline_mode<synchronous>, transform_indices = @transform_3, window_bounds = array<i64: 128, 128>}, {pipeline_mode = #tpu.pipeline_mode<synchronous>, transform_indices = @transform_4, window_bounds = array<i64: 1, 128>}, {transform_indices = @transform_5, window_bounds = array<i64: 8, 128>}]} {
    %c0 = arith.constant 0 : index
    %c0_0 = arith.constant 0 : index
    %0 = vector.load %arg1[%c0, %c0_0] : memref<8x128xf32, #tpu.memory_space<vmem>>, vector<8x128xf32>
    %c0_1 = arith.constant 0 : index
    %c0_2 = arith.constant 0 : index
    %1 = vector.load %arg3[%c0_1, %c0_2] : memref<128x128xf32, #tpu.memory_space<vmem>>, vector<128x128xf32>
    %cst = arith.constant dense<0.000000e+00> : vector<8x128xf32>
    %2 = tpu.matmul %0, %1, %cst {dimension_numbers = #tpu.dot_dimension_numbers<[1], [0], [0], [1], [0, 0, 1, 1], [], []>} : vector<8x128xf32>, vector<128x128xf32>, vector<8x128xf32> -> vector<8x128xf32>
    %c0_3 = arith.constant 0 : index
    %c0_4 = arith.constant 0 : index
    %3 = vector.load %arg2[%c0_3, %c0_4] : memref<8x128xf32, #tpu.memory_space<vmem>>, vector<8x128xf32>
    %c0_5 = arith.constant 0 : index
    %c0_6 = arith.constant 0 : index
    %4 = vector.load %arg4[%c0_5, %c0_6] : memref<128x128xf32, #tpu.memory_space<vmem>>, vector<128x128xf32>
    %cst_7 = arith.constant dense<0.000000e+00> : vector<8x128xf32>
    %5 = tpu.matmul %3, %4, %cst_7 {dimension_numbers = #tpu.dot_dimension_numbers<[1], [0], [0], [1], [0, 0, 1, 1], [], []>} : vector<8x128xf32>, vector<128x128xf32>, vector<8x128xf32> -> vector<8x128xf32>
    %6 = arith.addf %2, %5 : vector<8x128xf32>
    %c0_8 = arith.constant 0 : index
    %c0_9 = arith.constant 0 : index
    %7 = vector.load %arg5[%c0_8, %c0_9] : memref<1x128xf32, #tpu.memory_space<vmem>>, vector<1x128xf32>
    %8 = vector.broadcast %7 : vector<1x128xf32> to vector<8x128xf32>
    %9 = arith.addf %6, %8 : vector<8x128xf32>
    %cst_10 = arith.constant 0.000000e+00 : f32
    %10 = vector.broadcast %cst_10 : f32 to vector<8x128xf32>
    %11 = arith.maximumf %9, %10 : vector<8x128xf32>
    %c0_11 = arith.constant 0 : index
    %c0_12 = arith.constant 0 : index
    %12 = vector.load %arg6[%c0_11, %c0_12] : memref<8x128xf32, #tpu.memory_space<vmem>>, vector<8x128xf32>
    tpu.vector_store %arg6[%c0_11, %c0_12], %11 {strides = array<i32>} : memref<8x128xf32, #tpu.memory_space<vmem>>, vector<8x128xf32>,
    return
  }
  func.func @transform_0(%arg0: i32) -> (i32, i32) {
    %c0_i32 = arith.constant 0 : i32
    %c0_i32_0 = arith.constant 0 : i32
    return %arg0, %c0_i32 : i32, i32
  }
  func.func @transform_1(%arg0: i32) -> (i32, i32) {
    %c0_i32 = arith.constant 0 : i32
    %c0_i32_0 = arith.constant 0 : i32
    return %arg0, %c0_i32 : i32, i32
  }
  func.func @transform_2(%arg0: i32) -> (i32, i32) {
    %c0_i32 = arith.constant 0 : i32
    %c0_i32_0 = arith.constant 0 : i32
    %c0_i32_1 = arith.constant 0 : i32
    return %c0_i32, %c0_i32_0 : i32, i32
  }
  func.func @transform_3(%arg0: i32) -> (i32, i32) {
    %c0_i32 = arith.constant 0 : i32
    %c0_i32_0 = arith.constant 0 : i32
    %c0_i32_1 = arith.constant 0 : i32
    return %c0_i32, %c0_i32_0 : i32, i32
  }
  func.func @transform_4(%arg0: i32) -> (i32, i32) {
    %c0_i32 = arith.constant 0 : i32
    %c0_i32_0 = arith.constant 0 : i32
    %c0_i32_1 = arith.constant 0 : i32
    return %c0_i32, %c0_i32_0 : i32, i32
  }
  func.func @transform_5(%arg0: i32) -> (i32, i32) {
    %c0_i32 = arith.constant 0 : i32
    %c0_i32_0 = arith.constant 0 : i32
    return %arg0, %c0_i32 : i32, i32
  }
}

module attributes {stable_mosaic.version = 11 : i64} {
  func.func @_sage_res_bn_kernel(%arg0: i32, %arg1: memref<8x128xf32, #tpu.memory_space<vmem>>, %arg2: memref<8x128xf32, #tpu.memory_space<vmem>>, %arg3: memref<8x128xf32, #tpu.memory_space<vmem>>, %arg4: memref<128x128xf32, #tpu.memory_space<vmem>>, %arg5: memref<128x128xf32, #tpu.memory_space<vmem>>, %arg6: memref<1x128xf32, #tpu.memory_space<vmem>>, %arg7: memref<1x128xf32, #tpu.memory_space<vmem>>, %arg8: memref<1x128xf32, #tpu.memory_space<vmem>>, %arg9: memref<8x128xf32, #tpu.memory_space<vmem>>) attributes {dimension_semantics = [#tpu.dimension_semantics<parallel>], iteration_bounds = array<i64: 1>, scalar_prefetch = 0 : i64, scratch_operands = 0 : i64, tpu.core_type = #tpu.core_type<tc>, window_params = [{transform_indices = @transform_0, window_bounds = array<i64: 8, 128>}, {transform_indices = @transform_1, window_bounds = array<i64: 8, 128>}, {transform_indices = @transform_2, window_bounds = array<i64: 8, 128>}, {pipeline_mode = #tpu.pipeline_mode<synchronous>, transform_indices = @transform_3, window_bounds = array<i64: 128, 128>}, {pipeline_mode = #tpu.pipeline_mode<synchronous>, transform_indices = @transform_4, window_bounds = array<i64: 128, 128>}, {pipeline_mode = #tpu.pipeline_mode<synchronous>, transform_indices = @transform_5, window_bounds = array<i64: 1, 128>}, {pipeline_mode = #tpu.pipeline_mode<synchronous>, transform_indices = @transform_6, window_bounds = array<i64: 1, 128>}, {pipeline_mode = #tpu.pipeline_mode<synchronous>, transform_indices = @transform_7, window_bounds = array<i64: 1, 128>}, {transform_indices = @transform_8, window_bounds = array<i64: 8, 128>}]} {
    %c0 = arith.constant 0 : index
    %c0_0 = arith.constant 0 : index
    %0 = vector.load %arg1[%c0, %c0_0] : memref<8x128xf32, #tpu.memory_space<vmem>>, vector<8x128xf32>
    %c0_1 = arith.constant 0 : index
    %c0_2 = arith.constant 0 : index
    %1 = vector.load %arg4[%c0_1, %c0_2] : memref<128x128xf32, #tpu.memory_space<vmem>>, vector<128x128xf32>
    %cst = arith.constant dense<0.000000e+00> : vector<8x128xf32>
    %2 = tpu.matmul %0, %1, %cst {dimension_numbers = #tpu.dot_dimension_numbers<[1], [0], [0], [1], [0, 0, 1, 1], [], []>} : vector<8x128xf32>, vector<128x128xf32>, vector<8x128xf32> -> vector<8x128xf32>
    %c0_3 = arith.constant 0 : index
    %c0_4 = arith.constant 0 : index
    %3 = vector.load %arg2[%c0_3, %c0_4] : memref<8x128xf32, #tpu.memory_space<vmem>>, vector<8x128xf32>
    %c0_5 = arith.constant 0 : index
    %c0_6 = arith.constant 0 : index
    %4 = vector.load %arg5[%c0_5, %c0_6] : memref<128x128xf32, #tpu.memory_space<vmem>>, vector<128x128xf32>
    %cst_7 = arith.constant dense<0.000000e+00> : vector<8x128xf32>
    %5 = tpu.matmul %3, %4, %cst_7 {dimension_numbers = #tpu.dot_dimension_numbers<[1], [0], [0], [1], [0, 0, 1, 1], [], []>} : vector<8x128xf32>, vector<128x128xf32>, vector<8x128xf32> -> vector<8x128xf32>
    %6 = arith.addf %2, %5 : vector<8x128xf32>
    %c0_8 = arith.constant 0 : index
    %c0_9 = arith.constant 0 : index
    %7 = vector.load %arg6[%c0_8, %c0_9] : memref<1x128xf32, #tpu.memory_space<vmem>>, vector<1x128xf32>
    %8 = vector.broadcast %7 : vector<1x128xf32> to vector<8x128xf32>
    %9 = arith.addf %6, %8 : vector<8x128xf32>
    %cst_10 = arith.constant 0.000000e+00 : f32
    %10 = vector.broadcast %cst_10 : f32 to vector<8x128xf32>
    %11 = arith.maximumf %9, %10 : vector<8x128xf32>
    %c0_11 = arith.constant 0 : index
    %c0_12 = arith.constant 0 : index
    %12 = vector.load %arg3[%c0_11, %c0_12] : memref<8x128xf32, #tpu.memory_space<vmem>>, vector<8x128xf32>
    %13 = arith.addf %11, %12 : vector<8x128xf32>
    %c0_13 = arith.constant 0 : index
    %c0_14 = arith.constant 0 : index
    %14 = vector.load %arg7[%c0_13, %c0_14] : memref<1x128xf32, #tpu.memory_space<vmem>>, vector<1x128xf32>
    %15 = vector.broadcast %14 : vector<1x128xf32> to vector<8x128xf32>
    %16 = arith.mulf %13, %15 : vector<8x128xf32>
    %c0_15 = arith.constant 0 : index
    %c0_16 = arith.constant 0 : index
    %17 = vector.load %arg8[%c0_15, %c0_16] : memref<1x128xf32, #tpu.memory_space<vmem>>, vector<1x128xf32>
    %18 = vector.broadcast %17 : vector<1x128xf32> to vector<8x128xf32>
    %19 = arith.addf %16, %18 : vector<8x128xf32>
    %c0_17 = arith.constant 0 : index
    %c0_18 = arith.constant 0 : index
    %20 = vector.load %arg9[%c0_17, %c0_18] : memref<8x128xf32, #tpu.memory_space<vmem>>, vector<8x128xf32>
    tpu.vector_store %arg9[%c0_17, %c0_18], %19 {strides = array<i32>} : memref<8x128xf32, #tpu.memory_space<vmem>>, vector<8x128xf32>,
    return
  }
  func.func @transform_0(%arg0: i32) -> (i32, i32) {
    %c0_i32 = arith.constant 0 : i32
    %c0_i32_0 = arith.constant 0 : i32
    return %arg0, %c0_i32 : i32, i32
  }
  func.func @transform_1(%arg0: i32) -> (i32, i32) {
    %c0_i32 = arith.constant 0 : i32
    %c0_i32_0 = arith.constant 0 : i32
    return %arg0, %c0_i32 : i32, i32
  }
  func.func @transform_2(%arg0: i32) -> (i32, i32) {
    %c0_i32 = arith.constant 0 : i32
    %c0_i32_0 = arith.constant 0 : i32
    return %arg0, %c0_i32 : i32, i32
  }
  func.func @transform_3(%arg0: i32) -> (i32, i32) {
    %c0_i32 = arith.constant 0 : i32
    %c0_i32_0 = arith.constant 0 : i32
    %c0_i32_1 = arith.constant 0 : i32
    return %c0_i32, %c0_i32_0 : i32, i32
  }
  func.func @transform_4(%arg0: i32) -> (i32, i32) {
    %c0_i32 = arith.constant 0 : i32
    %c0_i32_0 = arith.constant 0 : i32
    %c0_i32_1 = arith.constant 0 : i32
    return %c0_i32, %c0_i32_0 : i32, i32
  }
  func.func @transform_5(%arg0: i32) -> (i32, i32) {
    %c0_i32 = arith.constant 0 : i32
    %c0_i32_0 = arith.constant 0 : i32
    %c0_i32_1 = arith.constant 0 : i32
    return %c0_i32, %c0_i32_0 : i32, i32
  }
  func.func @transform_6(%arg0: i32) -> (i32, i32) {
    %c0_i32 = arith.constant 0 : i32
    %c0_i32_0 = arith.constant 0 : i32
    %c0_i32_1 = arith.constant 0 : i32
    return %c0_i32, %c0_i32_0 : i32, i32
  }
  func.func @transform_7(%arg0: i32) -> (i32, i32) {
    %c0_i32 = arith.constant 0 : i32
    %c0_i32_0 = arith.constant 0 : i32
    %c0_i32_1 = arith.constant 0 : i32
    return %c0_i32, %c0_i32_0 : i32, i32
  }
  func.func @transform_8(%arg0: i32) -> (i32, i32) {
    %c0_i32 = arith.constant 0 : i32
    %c0_i32_0 = arith.constant 0 : i32
    return %arg0, %c0_i32 : i32, i32
  }
}

module attributes {stable_mosaic.version = 11 : i64} {
  func.func @_agg_kernel(%arg0: i32, %arg1: memref<8x8xf32, #tpu.memory_space<vmem>>, %arg2: memref<1x8x64xf32, #tpu.memory_space<vmem>>, %arg3: memref<1x8x64xf32, #tpu.memory_space<vmem>>) attributes {dimension_semantics = [#tpu.dimension_semantics<parallel>], iteration_bounds = array<i64: 2>, scalar_prefetch = 0 : i64, scratch_operands = 0 : i64, tpu.core_type = #tpu.core_type<tc>, window_params = [{pipeline_mode = #tpu.pipeline_mode<synchronous>, transform_indices = @transform_0, window_bounds = array<i64: 8, 8>}, {transform_indices = @transform_1, window_bounds = array<i64: 1, 8, 64>}, {transform_indices = @transform_2, window_bounds = array<i64: 1, 8, 64>}]} {
    %c0 = arith.constant 0 : index
    %c0_0 = arith.constant 0 : index
    %0 = vector.load %arg1[%c0, %c0_0] : memref<8x8xf32, #tpu.memory_space<vmem>>, vector<8x8xf32>
    %c0_1 = arith.constant 0 : index
    %c0_2 = arith.constant 0 : index
    %c0_3 = arith.constant 0 : index
    %1 = vector.load %arg2[%c0_1, %c0_2, %c0_3] : memref<1x8x64xf32, #tpu.memory_space<vmem>>, vector<1x8x64xf32>
    %2 = vector.shape_cast %1 : vector<1x8x64xf32> to vector<8x64xf32>
    %cst = arith.constant dense<0.000000e+00> : vector<8x64xf32>
    %3 = tpu.matmul %0, %2, %cst {dimension_numbers = #tpu.dot_dimension_numbers<[1], [0], [0], [1], [0, 0, 1, 1], [], []>} : vector<8x8xf32>, vector<8x64xf32>, vector<8x64xf32> -> vector<8x64xf32>
    %c0_4 = arith.constant 0 : index
    %c0_5 = arith.constant 0 : index
    %c0_6 = arith.constant 0 : index
    %4 = vector.load %arg3[%c0_4, %c0_5, %c0_6] : memref<1x8x64xf32, #tpu.memory_space<vmem>>, vector<1x8x64xf32>
    %5 = vector.shape_cast %4 : vector<1x8x64xf32> to vector<8x64xf32>
    %6 = vector.shape_cast %3 : vector<8x64xf32> to vector<1x8x64xf32>
    tpu.vector_store %arg3[%c0_4, %c0_5, %c0_6], %6 {strides = array<i32>} : memref<1x8x64xf32, #tpu.memory_space<vmem>>, vector<1x8x64xf32>,
    return
  }
  func.func @transform_0(%arg0: i32) -> (i32, i32) {
    %c0_i32 = arith.constant 0 : i32
    %c0_i32_0 = arith.constant 0 : i32
    %c0_i32_1 = arith.constant 0 : i32
    return %c0_i32, %c0_i32_0 : i32, i32
  }
  func.func @transform_1(%arg0: i32) -> (i32, i32, i32) {
    %c0_i32 = arith.constant 0 : i32
    %c0_i32_0 = arith.constant 0 : i32
    %c0_i32_1 = arith.constant 0 : i32
    return %arg0, %c0_i32, %c0_i32_0 : i32, i32, i32
  }
  func.func @transform_2(%arg0: i32) -> (i32, i32, i32) {
    %c0_i32 = arith.constant 0 : i32
    %c0_i32_0 = arith.constant 0 : i32
    %c0_i32_1 = arith.constant 0 : i32
    return %arg0, %c0_i32, %c0_i32_0 : i32, i32, i32
  }
}

module attributes {stable_mosaic.version = 11 : i64} {
  func.func @_gate_skip_kernel(%arg0: i32, %arg1: memref<4x128xf32, #tpu.memory_space<vmem>>, %arg2: memref<4x128xf32, #tpu.memory_space<vmem>>, %arg3: memref<128x256xf32, #tpu.memory_space<vmem>>, %arg4: memref<128x256xf32, #tpu.memory_space<vmem>>, %arg5: memref<1x256xf32, #tpu.memory_space<vmem>>, %arg6: memref<128x256xf32, #tpu.memory_space<vmem>>, %arg7: memref<1x256xf32, #tpu.memory_space<vmem>>, %arg8: memref<4x128xf32, #tpu.memory_space<vmem>>, %arg9: memref<4x256xf32, #tpu.memory_space<vmem>>) attributes {dimension_semantics = [#tpu.dimension_semantics<parallel>], iteration_bounds = array<i64: 1>, scalar_prefetch = 0 : i64, scratch_operands = 0 : i64, tpu.core_type = #tpu.core_type<tc>, window_params = [{transform_indices = @transform_0, window_bounds = array<i64: 4, 128>}, {transform_indices = @transform_1, window_bounds = array<i64: 4, 128>}, {pipeline_mode = #tpu.pipeline_mode<synchronous>, transform_indices = @transform_2, window_bounds = array<i64: 128, 256>}, {pipeline_mode = #tpu.pipeline_mode<synchronous>, transform_indices = @transform_3, window_bounds = array<i64: 128, 256>}, {pipeline_mode = #tpu.pipeline_mode<synchronous>, transform_indices = @transform_4, window_bounds = array<i64: 1, 256>}, {pipeline_mode = #tpu.pipeline_mode<synchronous>, transform_indices = @transform_5, window_bounds = array<i64: 128, 256>}, {pipeline_mode = #tpu.pipeline_mode<synchronous>, transform_indices = @transform_6, window_bounds = array<i64: 1, 256>}, {transform_indices = @transform_7, window_bounds = array<i64: 4, 128>}, {transform_indices = @transform_8, window_bounds = array<i64: 4, 256>}]} {
    %c0 = arith.constant 0 : index
    %c0_0 = arith.constant 0 : index
    %0 = vector.load %arg1[%c0, %c0_0] : memref<4x128xf32, #tpu.memory_space<vmem>>, vector<4x128xf32>
    %c0_1 = arith.constant 0 : index
    %c0_2 = arith.constant 0 : index
    %1 = vector.load %arg3[%c0_1, %c0_2] : memref<128x256xf32, #tpu.memory_space<vmem>>, vector<128x256xf32>
    %cst = arith.constant dense<0.000000e+00> : vector<4x256xf32>
    %2 = tpu.matmul %0, %1, %cst {dimension_numbers = #tpu.dot_dimension_numbers<[1], [0], [0], [1], [0, 0, 1, 1], [], []>} : vector<4x128xf32>, vector<128x256xf32>, vector<4x256xf32> -> vector<4x256xf32>
    %c0_3 = arith.constant 0 : index
    %c0_4 = arith.constant 0 : index
    %3 = vector.load %arg2[%c0_3, %c0_4] : memref<4x128xf32, #tpu.memory_space<vmem>>, vector<4x128xf32>
    %c0_5 = arith.constant 0 : index
    %c0_6 = arith.constant 0 : index
    %4 = vector.load %arg4[%c0_5, %c0_6] : memref<128x256xf32, #tpu.memory_space<vmem>>, vector<128x256xf32>
    %cst_7 = arith.constant dense<0.000000e+00> : vector<4x256xf32>
    %5 = tpu.matmul %3, %4, %cst_7 {dimension_numbers = #tpu.dot_dimension_numbers<[1], [0], [0], [1], [0, 0, 1, 1], [], []>} : vector<4x128xf32>, vector<128x256xf32>, vector<4x256xf32> -> vector<4x256xf32>
    %6 = arith.addf %2, %5 : vector<4x256xf32>
    %c0_8 = arith.constant 0 : index
    %c0_9 = arith.constant 0 : index
    %7 = vector.load %arg5[%c0_8, %c0_9] : memref<1x256xf32, #tpu.memory_space<vmem>>, vector<1x256xf32>
    %8 = vector.broadcast %7 : vector<1x256xf32> to vector<4x256xf32>
    %9 = arith.addf %6, %8 : vector<4x256xf32>
    %10 = vector.extract_strided_slice %9 {offsets = [0, 0], sizes = [4, 128], strides = [1, 1]} : vector<4x256xf32> to vector<4x128xf32>
    %11 = math.tanh %10 : vector<4x128xf32>
    %12 = vector.extract_strided_slice %9 {offsets = [0, 128], sizes = [4, 128], strides = [1, 1]} : vector<4x256xf32> to vector<4x128xf32>
    %13 = arith.negf %12 : vector<4x128xf32>
    %14 = math.exp %13 : vector<4x128xf32>
    %cst_10 = arith.constant 1.000000e+00 : f32
    %15 = vector.broadcast %cst_10 : f32 to vector<4x128xf32>
    %16 = arith.addf %15, %14 : vector<4x128xf32>
    %17 = arith.divf %15, %16 : vector<4x128xf32>
    %18 = arith.mulf %11, %17 : vector<4x128xf32>
    %c0_11 = arith.constant 0 : index
    %c0_12 = arith.constant 0 : index
    %19 = vector.load %arg8[%c0_11, %c0_12] : memref<4x128xf32, #tpu.memory_space<vmem>>, vector<4x128xf32>
    tpu.vector_store %arg8[%c0_11, %c0_12], %18 {strides = array<i32>} : memref<4x128xf32, #tpu.memory_space<vmem>>, vector<4x128xf32>,
    %c0_13 = arith.constant 0 : index
    %c0_14 = arith.constant 0 : index
    %20 = vector.load %arg6[%c0_13, %c0_14] : memref<128x256xf32, #tpu.memory_space<vmem>>, vector<128x256xf32>
    %cst_15 = arith.constant dense<0.000000e+00> : vector<4x256xf32>
    %21 = tpu.matmul %18, %20, %cst_15 {dimension_numbers = #tpu.dot_dimension_numbers<[1], [0], [0], [1], [0, 0, 1, 1], [], []>} : vector<4x128xf32>, vector<128x256xf32>, vector<4x256xf32> -> vector<4x256xf32>
    %c0_16 = arith.constant 0 : index
    %c0_17 = arith.constant 0 : index
    %22 = vector.load %arg7[%c0_16, %c0_17] : memref<1x256xf32, #tpu.memory_space<vmem>>, vector<1x256xf32>
    %23 = vector.broadcast %22 : vector<1x256xf32> to vector<4x256xf32>
    %24 = arith.addf %21, %23 : vector<4x256xf32>
    %c0_18 = arith.constant 0 : index
    %c0_19 = arith.constant 0 : index
    %25 = vector.load %arg9[%c0_18, %c0_19] : memref<4x256xf32, #tpu.memory_space<vmem>>, vector<4x256xf32>
    tpu.vector_store %arg9[%c0_18, %c0_19], %24 {strides = array<i32>} : memref<4x256xf32, #tpu.memory_space<vmem>>, vector<4x256xf32>,
    return
  }
  func.func @transform_0(%arg0: i32) -> (i32, i32) {
    %c0_i32 = arith.constant 0 : i32
    %c0_i32_0 = arith.constant 0 : i32
    return %arg0, %c0_i32 : i32, i32
  }
  func.func @transform_1(%arg0: i32) -> (i32, i32) {
    %c0_i32 = arith.constant 0 : i32
    %c0_i32_0 = arith.constant 0 : i32
    return %arg0, %c0_i32 : i32, i32
  }
  func.func @transform_2(%arg0: i32) -> (i32, i32) {
    %c0_i32 = arith.constant 0 : i32
    %c0_i32_0 = arith.constant 0 : i32
    %c0_i32_1 = arith.constant 0 : i32
    return %c0_i32, %c0_i32_0 : i32, i32
  }
  func.func @transform_3(%arg0: i32) -> (i32, i32) {
    %c0_i32 = arith.constant 0 : i32
    %c0_i32_0 = arith.constant 0 : i32
    %c0_i32_1 = arith.constant 0 : i32
    return %c0_i32, %c0_i32_0 : i32, i32
  }
  func.func @transform_4(%arg0: i32) -> (i32, i32) {
    %c0_i32 = arith.constant 0 : i32
    %c0_i32_0 = arith.constant 0 : i32
    %c0_i32_1 = arith.constant 0 : i32
    return %c0_i32, %c0_i32_0 : i32, i32
  }
  func.func @transform_5(%arg0: i32) -> (i32, i32) {
    %c0_i32 = arith.constant 0 : i32
    %c0_i32_0 = arith.constant 0 : i32
    %c0_i32_1 = arith.constant 0 : i32
    return %c0_i32, %c0_i32_0 : i32, i32
  }
  func.func @transform_6(%arg0: i32) -> (i32, i32) {
    %c0_i32 = arith.constant 0 : i32
    %c0_i32_0 = arith.constant 0 : i32
    %c0_i32_1 = arith.constant 0 : i32
    return %c0_i32, %c0_i32_0 : i32, i32
  }
  func.func @transform_7(%arg0: i32) -> (i32, i32) {
    %c0_i32 = arith.constant 0 : i32
    %c0_i32_0 = arith.constant 0 : i32
    return %arg0, %c0_i32 : i32, i32
  }
  func.func @transform_8(%arg0: i32) -> (i32, i32) {
    %c0_i32 = arith.constant 0 : i32
    %c0_i32_0 = arith.constant 0 : i32
    return %arg0, %c0_i32 : i32, i32
  }
}

module attributes {stable_mosaic.version = 11 : i64} {
  func.func @_agg_skip_kernel(%arg0: i32, %arg1: memref<8x8xf32, #tpu.memory_space<vmem>>, %arg2: memref<1x8x32xf32, #tpu.memory_space<vmem>>, %arg3: memref<1x8x64xf32, #tpu.memory_space<vmem>>, %arg4: memref<1x8x128xf32, #tpu.memory_space<vmem>>, %arg5: memref<1x8x32xf32, #tpu.memory_space<vmem>>, %arg6: memref<1x8x64xf32, #tpu.memory_space<vmem>>) attributes {dimension_semantics = [#tpu.dimension_semantics<parallel>], iteration_bounds = array<i64: 2>, scalar_prefetch = 0 : i64, scratch_operands = 0 : i64, tpu.core_type = #tpu.core_type<tc>, window_params = [{pipeline_mode = #tpu.pipeline_mode<synchronous>, transform_indices = @transform_0, window_bounds = array<i64: 8, 8>}, {transform_indices = @transform_1, window_bounds = array<i64: 1, 8, 32>}, {transform_indices = @transform_2, window_bounds = array<i64: 1, 8, 64>}, {transform_indices = @transform_3, window_bounds = array<i64: 1, 8, 128>}, {transform_indices = @transform_4, window_bounds = array<i64: 1, 8, 32>}, {transform_indices = @transform_5, window_bounds = array<i64: 1, 8, 64>}]} {
    %c0 = arith.constant 0 : index
    %c0_0 = arith.constant 0 : index
    %0 = vector.load %arg1[%c0, %c0_0] : memref<8x8xf32, #tpu.memory_space<vmem>>, vector<8x8xf32>
    %c0_1 = arith.constant 0 : index
    %c0_2 = arith.constant 0 : index
    %c0_3 = arith.constant 0 : index
    %1 = vector.load %arg2[%c0_1, %c0_2, %c0_3] : memref<1x8x32xf32, #tpu.memory_space<vmem>>, vector<1x8x32xf32>
    %2 = vector.shape_cast %1 : vector<1x8x32xf32> to vector<8x32xf32>
    %cst = arith.constant dense<0.000000e+00> : vector<8x32xf32>
    %3 = tpu.matmul %0, %2, %cst {dimension_numbers = #tpu.dot_dimension_numbers<[1], [0], [0], [1], [0, 0, 1, 1], [], []>} : vector<8x8xf32>, vector<8x32xf32>, vector<8x32xf32> -> vector<8x32xf32>
    %c0_4 = arith.constant 0 : index
    %c0_5 = arith.constant 0 : index
    %c0_6 = arith.constant 0 : index
    %4 = vector.load %arg5[%c0_4, %c0_5, %c0_6] : memref<1x8x32xf32, #tpu.memory_space<vmem>>, vector<1x8x32xf32>
    %5 = vector.shape_cast %4 : vector<1x8x32xf32> to vector<8x32xf32>
    %6 = vector.shape_cast %3 : vector<8x32xf32> to vector<1x8x32xf32>
    tpu.vector_store %arg5[%c0_4, %c0_5, %c0_6], %6 {strides = array<i32>} : memref<1x8x32xf32, #tpu.memory_space<vmem>>, vector<1x8x32xf32>,
    %c0_7 = arith.constant 0 : index
    %c0_8 = arith.constant 0 : index
    %c0_9 = arith.constant 0 : index
    %7 = vector.load %arg3[%c0_7, %c0_8, %c0_9] : memref<1x8x64xf32, #tpu.memory_space<vmem>>, vector<1x8x64xf32>
    %8 = vector.shape_cast %7 : vector<1x8x64xf32> to vector<8x64xf32>
    %c0_10 = arith.constant 0 : index
    %c0_11 = arith.constant 0 : index
    %c0_12 = arith.constant 0 : index
    %9 = vector.load %arg4[%c0_10, %c0_11, %c0_12] : memref<1x8x128xf32, #tpu.memory_space<vmem>>, vector<1x8x128xf32>
    %10 = vector.shape_cast %9 : vector<1x8x128xf32> to vector<8x128xf32>
    %11 = vector.extract_strided_slice %10 {offsets = [0, 64], sizes = [8, 64], strides = [1, 1]} : vector<8x128xf32> to vector<8x64xf32>
    %12 = arith.addf %8, %11 : vector<8x64xf32>
    %c0_13 = arith.constant 0 : index
    %c0_14 = arith.constant 0 : index
    %c0_15 = arith.constant 0 : index
    %13 = vector.load %arg6[%c0_13, %c0_14, %c0_15] : memref<1x8x64xf32, #tpu.memory_space<vmem>>, vector<1x8x64xf32>
    %14 = vector.shape_cast %13 : vector<1x8x64xf32> to vector<8x64xf32>
    %15 = vector.shape_cast %12 : vector<8x64xf32> to vector<1x8x64xf32>
    tpu.vector_store %arg6[%c0_13, %c0_14, %c0_15], %15 {strides = array<i32>} : memref<1x8x64xf32, #tpu.memory_space<vmem>>, vector<1x8x64xf32>,
    return
  }
  func.func @transform_0(%arg0: i32) -> (i32, i32) {
    %c0_i32 = arith.constant 0 : i32
    %c0_i32_0 = arith.constant 0 : i32
    %c0_i32_1 = arith.constant 0 : i32
    return %c0_i32, %c0_i32_0 : i32, i32
  }
  func.func @transform_1(%arg0: i32) -> (i32, i32, i32) {
    %c0_i32 = arith.constant 0 : i32
    %c0_i32_0 = arith.constant 0 : i32
    %c0_i32_1 = arith.constant 0 : i32
    return %arg0, %c0_i32, %c0_i32_0 : i32, i32, i32
  }
  func.func @transform_2(%arg0: i32) -> (i32, i32, i32) {
    %c0_i32 = arith.constant 0 : i32
    %c0_i32_0 = arith.constant 0 : i32
    %c0_i32_1 = arith.constant 0 : i32
    return %arg0, %c0_i32, %c0_i32_0 : i32, i32, i32
  }
  func.func @transform_3(%arg0: i32) -> (i32, i32, i32) {
    %c0_i32 = arith.constant 0 : i32
    %c0_i32_0 = arith.constant 0 : i32
    %c0_i32_1 = arith.constant 0 : i32
    return %arg0, %c0_i32, %c0_i32_0 : i32, i32, i32
  }
  func.func @transform_4(%arg0: i32) -> (i32, i32, i32) {
    %c0_i32 = arith.constant 0 : i32
    %c0_i32_0 = arith.constant 0 : i32
    %c0_i32_1 = arith.constant 0 : i32
    return %arg0, %c0_i32, %c0_i32_0 : i32, i32, i32
  }
  func.func @transform_5(%arg0: i32) -> (i32, i32, i32) {
    %c0_i32 = arith.constant 0 : i32
    %c0_i32_0 = arith.constant 0 : i32
    %c0_i32_1 = arith.constant 0 : i32
    return %arg0, %c0_i32, %c0_i32_0 : i32, i32, i32
  }
}

module attributes {stable_mosaic.version = 11 : i64} {
  func.func @_head_kernel(%arg0: i32, %arg1: memref<4x256xf32, #tpu.memory_space<vmem>>, %arg2: memref<256x512xf32, #tpu.memory_space<vmem>>, %arg3: memref<1x512xf32, #tpu.memory_space<vmem>>, %arg4: memref<512x96xf32, #tpu.memory_space<vmem>>, %arg5: memref<1x96xf32, #tpu.memory_space<vmem>>, %arg6: memref<4x96xf32, #tpu.memory_space<vmem>>) attributes {dimension_semantics = [#tpu.dimension_semantics<parallel>], iteration_bounds = array<i64: 1>, scalar_prefetch = 0 : i64, scratch_operands = 0 : i64, tpu.core_type = #tpu.core_type<tc>, window_params = [{transform_indices = @transform_0, window_bounds = array<i64: 4, 256>}, {pipeline_mode = #tpu.pipeline_mode<synchronous>, transform_indices = @transform_1, window_bounds = array<i64: 256, 512>}, {pipeline_mode = #tpu.pipeline_mode<synchronous>, transform_indices = @transform_2, window_bounds = array<i64: 1, 512>}, {pipeline_mode = #tpu.pipeline_mode<synchronous>, transform_indices = @transform_3, window_bounds = array<i64: 512, 96>}, {pipeline_mode = #tpu.pipeline_mode<synchronous>, transform_indices = @transform_4, window_bounds = array<i64: 1, 96>}, {transform_indices = @transform_5, window_bounds = array<i64: 4, 96>}]} {
    %c0 = arith.constant 0 : index
    %c0_0 = arith.constant 0 : index
    %0 = vector.load %arg1[%c0, %c0_0] : memref<4x256xf32, #tpu.memory_space<vmem>>, vector<4x256xf32>
    %cst = arith.constant 0.000000e+00 : f32
    %1 = vector.broadcast %cst : f32 to vector<4x256xf32>
    %2 = arith.maximumf %0, %1 : vector<4x256xf32>
    %c0_1 = arith.constant 0 : index
    %c0_2 = arith.constant 0 : index
    %3 = vector.load %arg2[%c0_1, %c0_2] : memref<256x512xf32, #tpu.memory_space<vmem>>, vector<256x512xf32>
    %cst_3 = arith.constant dense<0.000000e+00> : vector<4x512xf32>
    %4 = tpu.matmul %2, %3, %cst_3 {dimension_numbers = #tpu.dot_dimension_numbers<[1], [0], [0], [1], [0, 0, 1, 1], [], []>} : vector<4x256xf32>, vector<256x512xf32>, vector<4x512xf32> -> vector<4x512xf32>
    %c0_4 = arith.constant 0 : index
    %c0_5 = arith.constant 0 : index
    %5 = vector.load %arg3[%c0_4, %c0_5] : memref<1x512xf32, #tpu.memory_space<vmem>>, vector<1x512xf32>
    %6 = vector.broadcast %5 : vector<1x512xf32> to vector<4x512xf32>
    %7 = arith.addf %4, %6 : vector<4x512xf32>
    %cst_6 = arith.constant 0.000000e+00 : f32
    %8 = vector.broadcast %cst_6 : f32 to vector<4x512xf32>
    %9 = arith.maximumf %7, %8 : vector<4x512xf32>
    %c0_7 = arith.constant 0 : index
    %c0_8 = arith.constant 0 : index
    %10 = vector.load %arg4[%c0_7, %c0_8] : memref<512x96xf32, #tpu.memory_space<vmem>>, vector<512x96xf32>
    %cst_9 = arith.constant dense<0.000000e+00> : vector<4x96xf32>
    %11 = tpu.matmul %9, %10, %cst_9 {dimension_numbers = #tpu.dot_dimension_numbers<[1], [0], [0], [1], [0, 0, 1, 1], [], []>} : vector<4x512xf32>, vector<512x96xf32>, vector<4x96xf32> -> vector<4x96xf32>
    %c0_10 = arith.constant 0 : index
    %c0_11 = arith.constant 0 : index
    %12 = vector.load %arg5[%c0_10, %c0_11] : memref<1x96xf32, #tpu.memory_space<vmem>>, vector<1x96xf32>
    %13 = vector.broadcast %12 : vector<1x96xf32> to vector<4x96xf32>
    %14 = arith.addf %11, %13 : vector<4x96xf32>
    %c0_12 = arith.constant 0 : index
    %c0_13 = arith.constant 0 : index
    %15 = vector.load %arg6[%c0_12, %c0_13] : memref<4x96xf32, #tpu.memory_space<vmem>>, vector<4x96xf32>
    tpu.vector_store %arg6[%c0_12, %c0_13], %14 {strides = array<i32>} : memref<4x96xf32, #tpu.memory_space<vmem>>, vector<4x96xf32>,
    return
  }
  func.func @transform_0(%arg0: i32) -> (i32, i32) {
    %c0_i32 = arith.constant 0 : i32
    %c0_i32_0 = arith.constant 0 : i32
    return %arg0, %c0_i32 : i32, i32
  }
  func.func @transform_1(%arg0: i32) -> (i32, i32) {
    %c0_i32 = arith.constant 0 : i32
    %c0_i32_0 = arith.constant 0 : i32
    %c0_i32_1 = arith.constant 0 : i32
    return %c0_i32, %c0_i32_0 : i32, i32
  }
  func.func @transform_2(%arg0: i32) -> (i32, i32) {
    %c0_i32 = arith.constant 0 : i32
    %c0_i32_0 = arith.constant 0 : i32
    %c0_i32_1 = arith.constant 0 : i32
    return %c0_i32, %c0_i32_0 : i32, i32
  }
  func.func @transform_3(%arg0: i32) -> (i32, i32) {
    %c0_i32 = arith.constant 0 : i32
    %c0_i32_0 = arith.constant 0 : i32
    %c0_i32_1 = arith.constant 0 : i32
    return %c0_i32, %c0_i32_0 : i32, i32
  }
  func.func @transform_4(%arg0: i32) -> (i32, i32) {
    %c0_i32 = arith.constant 0 : i32
    %c0_i32_0 = arith.constant 0 : i32
    %c0_i32_1 = arith.constant 0 : i32
    return %c0_i32, %c0_i32_0 : i32, i32
  }
  func.func @transform_5(%arg0: i32) -> (i32, i32) {
    %c0_i32 = arith.constant 0 : i32
    %c0_i32_0 = arith.constant 0 : i32
    return %arg0, %c0_i32 : i32, i32
  }
}

</mosaic_0001>

<bundles_post_ra>
// kernel: a_call__.21
= control target key start
LH: loop header
LB: loop body
LE: loop exit
PB: predicated region body
PF: predicated region fallthrough
CT: control target
= control target key end

     0   :  { %vm18_vm0 = vcmask 1041408   ;;  %vm14_vm1 = vcmask 80896   ;;  %vm43_vm2 = vcmask 64512   ;;  %s109_s1 = inlined_call_operand.vmem [shape: f32[10,8], index: 1, kind: input, shape index: {}]   ;;  %s110_s0 = inlined_call_operand.vmem [shape: f32[8,10], index: 0, kind: input, shape index: {}]   ;;  %s111_s2 = inlined_call_operand.vmem [shape: f32[8,8], index: 2, kind: output, shape index: {}]  }
   0x1   :  { %v13_v0 = vld [vmem:[%s109_s1 + $0x8] sm:$0x3]  ;;  %v12_v1 = vld [vmem:[%s109_s1] sm:$0xff] }
   0x2   :  { %73 = vmatpush.msk.msra.mxu0 %vm18_vm0, %v13_v0  ;;  %v11_v2 = vld [vmem:[%s110_s0] sm:$0xff] }
   0x4   :  { %37 = vmatpush.msra.mxu0 %v12_v1 }
   0x5   :  { %74 = vmatmul.msk.f32.vlgmr.msra.gmra.mxu0 %vm14_vm1, %v11_v2 }
  0x82   :  { %v39_v3 = vpop.f32.mrf.mxu0 }
  0x83   :  { %v42_v4 = vmax.f32 %v39_v3, 0.0 }
  0x85   :  { %v44_v5 = vsel %vm43_vm2, %v42_v4, -inf }
  0x86   :  { %45 = vmax.xlane.f32.xlu0 %v44_v5 }
  0xf9   :  { %v46_v6 = vpop.xlane.xlu0 %45 }
  0xfa   :  { %v47_v7 = vsub.f32 %v42_v4, %v46_v6 }
  0xfc   :  { %v48_v8 = vmul.f32 1.442695, %v47_v7 }
  0xfe   :  { %75 = vpow2.f32 %v48_v8 }
 0x104   :  { %v76_v9 = vpop.eup %75 }
 0x105   :  { %v50_v10 = vsel %vm43_vm2, %v76_v9, 0.0 }
 0x106   :  { %51 = vadd.xlane.f32.xlu0 %v50_v10 }
 0x179   :  { %v52_v11 = vpop.xlane.xlu0 %51 }
 0x17a   :  { %77 = vrcp.f32 %v52_v11  ;;  %v64_v15 = vand.u32 2147483648, %v52_v11  ;;  %v62_v17 = vand.u32 2147483647, %v52_v11  ;;  %vm58_vm4 = vweird.f32 %v52_v11 }
 0x17c   :  { %v65_v19 = vor.u32 1.1754944e-38, %v64_v15  ;;  %vm63_vm6 = vcmp.eq.f32.partialorder %v62_v17, 8.507059e+37 }
 0x180   :  { %v78_v12 = vpop.eup %77 }
 0x181   :  { %v54_v13 = vmul.f32 %v78_v12, %v52_v11  ;;  %vm59_vm3 = vweird.f32 %v78_v12 }
 0x182   :  { %vm60_vm5 = vmor %vm58_vm4, %vm59_vm3 }
 0x183   :  { %v55_v14 = vsub.f32 1.0, %v54_v13 }
 0x185   :  { %v56_v16 = vmul.f32 %v78_v12, %v55_v14 }
 0x187   :  { %v57_v18 = vadd.f32 %v78_v12, %v56_v16 }
 0x189   :  { %v61_v20 = vsel %vm60_vm5, %v78_v12, %v57_v18 }
 0x18a   :  { %v66_v21 = vsel %vm63_vm6, %v65_v19, %v61_v20 }
 0x18b   :  { %v67_v22 = vmul.f32 %v76_v9, %v66_v21 }
 0x18d   :  { %68 = vst.msk [vmem:[%s111_s2] sm:$0xff] %vm43_vm2, %v67_v22 }

// kernel: a_call__.20
= control target key start
LH: loop header
LB: loop body
LE: loop exit
PB: predicated region body
PF: predicated region fallthrough
CT: control target
= control target key end

     0   :  { %vm21_vm0 = vcmask 64512   ;;  %s99_s1 = inlined_call_operand.vmem [shape: f32[8,128], index: 1, kind: input, shape index: {}]   ;;  %s100_s0 = inlined_call_operand.vmem [shape: f32[16,8], index: 0, kind: input, shape index: {}]   ;;  %s101_s2 = inlined_call_operand.vmem [shape: f32[1,128], index: 2, kind: input, shape index: {}]   ;;  %s102_s3 = inlined_call_operand.vmem [shape: f32[16,128], index: 3, kind: output, shape index: {}]  }
   0x1   :  { %v16_v0 = vld [vmem:[%s99_s1] sm:$0xff]  ;;  %v15_v2 = vld [vmem:[%s100_s0 + $0x8] sm:$0xff] }
   0x2   :  { %v14_v1 = vld [vmem:[%s100_s0] sm:$0xff]  ;;  %43 = vmatpush.msra.mxu0 %v16_v0  ;;  %59 = vmatpush.msra.mxu1 %v16_v0 }
   0x3   :  { %57 = vmatmul.msk.f32.vlgmr.msra.gmra.mxu0 %vm21_vm0, %v14_v1  ;;  %58 = vmatmul.msk.f32.vlgmr.msra.gmra.mxu1 %vm21_vm0, %v15_v2  ;;  %v60_v3 = vld [vmem:[%s101_s2] ss:$0 sm:$0xff] }
  0x80   :  { %v45_v4 = vpop.f32.mrf.mxu0  ;;  %v48_v5 = vpop.f32.mrf.mxu1 }
  0x81   :  { %v46_v6 = vadd.f32 %v60_v3, %v45_v4  ;;  %v49_v7 = vadd.f32 %v60_v3, %v48_v5 }
  0x83   :  { %51 = vst [vmem:[%s102_s3] sm:$0xff] %v46_v6 }
  0x84   :  { %52 = vst [vmem:[%s102_s3 + $0x8] sm:$0xff] %v49_v7 }

// kernel: a_call__.23
= control target key start
LH: loop header
LB: loop body
LE: loop exit
PB: predicated region body
PF: predicated region fallthrough
CT: control target
= control target key end

     0   :  { %s242_s9 = smov 0   ;;  %s270_s0 = inlined_call_operand.vmem [shape: f32[8,8], index: 0, kind: input, shape index: {}]   ;;  %s271_s1 = inlined_call_operand.vmem [shape: f32[2,8,112], index: 1, kind: input, shape index: {}]   ;;  %s272_s2 = inlined_call_operand.vmem [shape: f32[2,8,112], index: 2, kind: output, shape index: {}]  }
   0x1 LB: > { %s220_s10 = sadd.s32 4294967295, %s244_s9   ;;  %p224_p0 = scmp.ge.s32.totalorder %s244_s9, 1  ;;  %s244_s9 = sphi %s242_s9, %s12_s9  }
   0x2   : > { %p111_p1 = scmp.lt.s32.totalorder %s244_s9, 3 }
   0x4   : > { %p112_p2 = pnand %p224_p0, %p111_p1 }
   0x5   : > { %p131_p3 = scmp.lt.s32.totalorder (!%p112_p2), %s220_s10, 1 }
   0x6   : > { %115 = sbr.rel (%p112_p2) target bundleno = 143 (0x8f), region = 28 }
   0xb   : > { %s274_s10 = smov (!%p131_p3, %s220_s10), 1  ;;  %v139_v0 = vld [vmem:[%s270_s0] sm:$0xff]  ;;  %vm141_vm0 = vcmask 64512   ;;  %vm165_vm1 = vcmask 916480  }
   0xc   : > { %s225_s11 = sshll.u32 %s274_s10, 3 }
   0xd   : > { %s134_s14 = scalar_lea.vmem %s271_s1, %s225_s11  ;;  %s138_s19 = scalar_lea.vmem %s272_s2, %s225_s11 }
   0xe   : > { %v140_v1 = vld [vmem:[%s134_s14] sm:$0xff] }
   0xf   : > { %160 = vmatpush.msra.mxu0 %v140_v1 }
  0x10   : > { %227 = vmatmul.msk.f32.vlgmr.msra.gmra.mxu0 %vm141_vm0, %v139_v0 }
  0x8d   : > { %v162_v2 = vpop.f32.mrf.mxu0 }
  0x8e   : > { %166 = vst.msk [vmem:[%s138_s19] sm:$0xff] %vm165_vm1, %v162_v2 }
  0x8f PF: > { %s12_s9 = sadd.s32 1, %s244_s9  }
  0x90   : > { %p9_p4 = scmp.ge.s32.totalorder %s12_s9, 4  }
  0x92   :  { %11 = sbr.rel (!%p9_p4) target bundleno = 1 (0x1), region = 58 }

// kernel: a_call__.22
= control target key start
LH: loop header
LB: loop body
LE: loop exit
PB: predicated region body
PF: predicated region fallthrough
CT: control target
= control target key end

     0   :  { %s753_s2 = inlined_call_operand.vmem [shape: f32[128,256], index: 2, kind: input, shape index: {}]   ;;  %s754_s3 = inlined_call_operand.vmem [shape: f32[128,256], index: 3, kind: input, shape index: {}]   ;;  %s755_s0 = inlined_call_operand.vmem [shape: f32[14,128], index: 0, kind: input, shape index: {}]   ;;  %s756_s1 = inlined_call_operand.vmem [shape: f32[14,128], index: 1, kind: input, shape index: {}]   ;;  %s757_s5 = inlined_call_operand.vmem [shape: f32[128,256], index: 5, kind: input, shape index: {}]   ;;  %s758_s4 = inlined_call_operand.vmem [shape: f32[1,256], index: 4, kind: input, shape index: {}]   ;;  %s759_s7 = inlined_call_operand.vmem [shape: f32[14,128], index: 7, kind: output, shape index: {0}]   ;;  %s760_s6 = inlined_call_operand.vmem [shape: f32[1,256], index: 6, kind: input, shape index: {}]   ;;  %s761_s8 = inlined_call_operand.vmem [shape: f32[14,256], index: 8, kind: output, shape index: {1}]  }
   0x1   :  { %v61_v0 = vld [vmem:[%s753_s2 + $0xf8] sm:$0xff]  ;;  %v59_v1 = vld [vmem:[%s753_s2 + $0xe8] sm:$0xff]  ;;  %v60_v9 = vld [vmem:[%s753_s2 + $0xf0] sm:$0xff] }
   0x2   :  { %165 = vmatpush.msra.mxu3 %v61_v0  ;;  %v95_v2 = vld [vmem:[%s754_s3 + $0xf8] sm:$0xff]  ;;  %v93_v3 = vld [vmem:[%s754_s3 + $0xe8] sm:$0xff]  ;;  %142 = vmatpush.msra.mxu2 %v60_v9  ;;  %v58_v11 = vld [vmem:[%s753_s2 + $0xe0] sm:$0xff] }
   0x3   :  { %v57_v4 = vld [vmem:[%s753_s2 + $0xd8] sm:$0xff]  ;;  %119 = vmatpush.msra.mxu1 %v95_v2  ;;  %v55_v6 = vld [vmem:[%s753_s2 + $0xc8] sm:$0xff]  ;;  %v56_v13 = vld [vmem:[%s753_s2 + $0xd0] sm:$0xff] }
   0x4   :  { %166 = vmatpush.msra.mxu3 %v59_v1  ;;  %v91_v5 = vld [vmem:[%s754_s3 + $0xd8] sm:$0xff]  ;;  %v89_v7 = vld [vmem:[%s754_s3 + $0xc8] sm:$0xff]  ;;  %143 = vmatpush.msra.mxu2 %v58_v11  ;;  %v94_v15 = vld [vmem:[%s754_s3 + $0xf0] sm:$0xff] }
   0x5   :  { %120 = vmatpush.msra.mxu1 %v93_v3  ;;  %v53_v8 = vld [vmem:[%s753_s2 + $0xb8] sm:$0xff]  ;;  %v51_v12 = vld [vmem:[%s753_s2 + $0xa8] sm:$0xff]  ;;  %96 = vmatpush.msra.mxu0 %v94_v15  ;;  %v54_v17 = vld [vmem:[%s753_s2 + $0xc0] sm:$0xff] }
   0x6   :  { %167 = vmatpush.msra.mxu3 %v57_v4  ;;  %v87_v10 = vld [vmem:[%s754_s3 + $0xb8] sm:$0xff]  ;;  %v85_v14 = vld [vmem:[%s754_s3 + $0xa8] sm:$0xff]  ;;  %v92_v18 = vld [vmem:[%s754_s3 + $0xe0] sm:$0xff]  ;;  %144 = vmatpush.msra.mxu2 %v56_v13 }
   0x7   :  { %121 = vmatpush.msra.mxu1 %v91_v5  ;;  %v49_v16 = vld [vmem:[%s753_s2 + $0x98] sm:$0xff]  ;;  %v47_v20 = vld [vmem:[%s753_s2 + $0x88] sm:$0xff]  ;;  %97 = vmatpush.msra.mxu0 %v92_v18  ;;  %v52_v21 = vld [vmem:[%s753_s2 + $0xb0] sm:$0xff] }
   0x8   :  { %168 = vmatpush.msra.mxu3 %v55_v6  ;;  %v83_v19 = vld [vmem:[%s754_s3 + $0x98] sm:$0xff]  ;;  %v90_v22 = vld [vmem:[%s754_s3 + $0xd0] sm:$0xff]  ;;  %v81_v23 = vld [vmem:[%s754_s3 + $0x88] sm:$0xff]  ;;  %145 = vmatpush.msra.mxu2 %v54_v17 }
   0x9   :  { %122 = vmatpush.msra.mxu1 %v89_v7  ;;  %v88_v24 = vld [vmem:[%s754_s3 + $0xc0] sm:$0xff]  ;;  %v45_v25 = vld [vmem:[%s753_s2 + $0x78] sm:$0xff]  ;;  %98 = vmatpush.msra.mxu0 %v90_v22  ;;  %v86_v28 = vld [vmem:[%s754_s3 + $0xb0] sm:$0xff] }
   0xa   :  { %169 = vmatpush.msra.mxu3 %v53_v8  ;;  %v50_v26 = vld [vmem:[%s753_s2 + $0xa0] sm:$0xff]  ;;  %v79_v27 = vld [vmem:[%s754_s3 + $0x78] sm:$0xff]  ;;  %146 = vmatpush.msra.mxu2 %v52_v21  ;;  %v43_v29 = vld [vmem:[%s753_s2 + $0x68] sm:$0xff] }
   0xb   :  { %123 = vmatpush.msra.mxu1 %v87_v10  ;;  %99 = vmatpush.msra.mxu0 %v88_v24  ;;  %v48_v30 = vld [vmem:[%s753_s2 + $0x90] sm:$0xff]  ;;  %v77_v31 = vld [vmem:[%s754_s3 + $0x68] sm:$0xff]  ;;  %v84_v32 = vld [vmem:[%s754_s3 + $0xa0] sm:$0xff] }
   0xc   :  { %170 = vmatpush.msra.mxu3 %v51_v12  ;;  %147 = vmatpush.msra.mxu2 %v50_v26  ;;  %v41_v33 = vld [vmem:[%s753_s2 + $0x58] sm:$0xff]  ;;  %v46_v34 = vld [vmem:[%s753_s2 + $0x80] sm:$0xff]  ;;  %v82_v36 = vld [vmem:[%s754_s3 + $0x90] sm:$0xff] }
   0xd   :  { %124 = vmatpush.msra.mxu1 %v85_v14  ;;  %100 = vmatpush.msra.mxu0 %v86_v28  ;;  %v75_v35 = vld [vmem:[%s754_s3 + $0x58] sm:$0xff]  ;;  %v39_v37 = vld [vmem:[%s753_s2 + $0x48] sm:$0xff]  ;;  %v44_v38 = vld [vmem:[%s753_s2 + $0x70] sm:$0xff] }
   0xe   :  { %171 = vmatpush.msra.mxu3 %v49_v16  ;;  %148 = vmatpush.msra.mxu2 %v48_v30  ;;  %v73_v39 = vld [vmem:[%s754_s3 + $0x48] sm:$0xff]  ;;  %v80_v40 = vld [vmem:[%s754_s3 + $0x80] sm:$0xff]  ;;  %v37_v41 = vld [vmem:[%s753_s2 + $0x38] sm:$0xff] }
   0xf   :  { %125 = vmatpush.msra.mxu1 %v83_v19  ;;  %101 = vmatpush.msra.mxu0 %v84_v32  ;;  %v42_v42 = vld [vmem:[%s753_s2 + $0x60] sm:$0xff]  ;;  %v71_v43 = vld [vmem:[%s754_s3 + $0x38] sm:$0xff]  ;;  %v78_v44 = vld [vmem:[%s754_s3 + $0x70] sm:$0xff] }
  0x10   :  { %172 = vmatpush.msra.mxu3 %v47_v20  ;;  %149 = vmatpush.msra.mxu2 %v46_v34  ;;  %v35_v45 = vld [vmem:[%s753_s2 + $0x28] sm:$0xff]  ;;  %v40_v46 = vld [vmem:[%s753_s2 + $0x50] sm:$0xff]  ;;  %v76_v48 = vld [vmem:[%s754_s3 + $0x60] sm:$0xff] }
  0x11   :  { %126 = vmatpush.msra.mxu1 %v81_v23  ;;  %102 = vmatpush.msra.mxu0 %v82_v36  ;;  %v69_v47 = vld [vmem:[%s754_s3 + $0x28] sm:$0xff]  ;;  %v33_v49 = vld [vmem:[%s753_s2 + $0x18] sm:$0xff]  ;;  %v38_v50 = vld [vmem:[%s753_s2 + $0x40] sm:$0xff] }
  0x12   :  { %173 = vmatpush.msra.mxu3 %v45_v25  ;;  %150 = vmatpush.msra.mxu2 %v44_v38  ;;  %v67_v51 = vld [vmem:[%s754_s3 + $0x18] sm:$0xff]  ;;  %v74_v52 = vld [vmem:[%s754_s3 + $0x50] sm:$0xff]  ;;  %v31_v53 = vld [vmem:[%s753_s2 + $0x8] sm:$0xff] }
  0x13   :  { %127 = vmatpush.msra.mxu1 %v79_v27  ;;  %103 = vmatpush.msra.mxu0 %v80_v40  ;;  %v36_v54 = vld [vmem:[%s753_s2 + $0x30] sm:$0xff]  ;;  %v28_v55 = vld [vmem:[%s755_s0] sm:$0xff]  ;;  %v65_v56 = vld [vmem:[%s754_s3 + $0x8] sm:$0xff] }
  0x14   :  { %174 = vmatpush.msra.mxu3 %v43_v29  ;;  %151 = vmatpush.msra.mxu2 %v42_v42  ;;  %v62_v57 = vld [vmem:[%s756_s1] sm:$0xff]  ;;  %v32_v60 = vld [vmem:[%s753_s2 + $0x10] sm:$0xff]  ;;  %v29_v0 = vld [vmem:[%s755_s0 + $0x8] sm:$0x3f] }
  0x15   :  { %128 = vmatpush.msra.mxu1 %v77_v31  ;;  %104 = vmatpush.msra.mxu0 %v78_v44  ;;  %v34_v58 = vld [vmem:[%s753_s2 + $0x20] sm:$0xff]  ;;  %v70_v61 = vld [vmem:[%s754_s3 + $0x30] sm:$0xff]  ;;  %v63_v2 = vld [vmem:[%s756_s1 + $0x8] sm:$0x3f] }
  0x16   :  { %175 = vmatpush.msra.mxu3 %v41_v33  ;;  %152 = vmatpush.msra.mxu2 %v40_v46  ;;  %v72_v59 = vld [vmem:[%s754_s3 + $0x40] sm:$0xff]  ;;  %v66_v1 = vld [vmem:[%s754_s3 + $0x10] sm:$0xff]  ;;  %v273_v5 = vld [vmem:[%s757_s5 + $0xf8] sm:$0xff] }
  0x17   :  { %129 = vmatpush.msra.mxu1 %v75_v35  ;;  %105 = vmatpush.msra.mxu0 %v76_v48  ;;  %v30_v62 = vld [vmem:[%s753_s2] sm:$0xff]  ;;  %v272_v4 = vld [vmem:[%s757_s5 + $0xf0] sm:$0xff]  ;;  %v271_v7 = vld [vmem:[%s757_s5 + $0xe8] sm:$0xff] }
  0x18   :  { %176 = vmatpush.msra.mxu3 %v39_v37  ;;  %153 = vmatpush.msra.mxu2 %v38_v50  ;;  %v68_v63 = vld [vmem:[%s754_s3 + $0x20] sm:$0xff]  ;;  %v268_v8 = vld [vmem:[%s757_s5 + $0xd0] sm:$0xff]  ;;  %v269_v9 = vld [vmem:[%s757_s5 + $0xd8] sm:$0xff] }
  0x19   :  { %130 = vmatpush.msra.mxu1 %v73_v39  ;;  %106 = vmatpush.msra.mxu0 %v74_v52  ;;  %v64_v3 = vld [vmem:[%s754_s3] sm:$0xff]  ;;  %v267_v11 = vld [vmem:[%s757_s5 + $0xc8] sm:$0xff]  ;;  %v264_v12 = vld [vmem:[%s757_s5 + $0xb0] sm:$0xff] }
  0x1a   :  { %177 = vmatpush.msra.mxu3 %v37_v41  ;;  %154 = vmatpush.msra.mxu2 %v36_v54  ;;  %v270_v6 = vld [vmem:[%s757_s5 + $0xe0] sm:$0xff]  ;;  %v265_v13 = vld [vmem:[%s757_s5 + $0xb8] sm:$0xff]  ;;  %v263_v15 = vld [vmem:[%s757_s5 + $0xa8] sm:$0xff] }
  0x1b   :  { %131 = vmatpush.msra.mxu1 %v71_v43  ;;  %107 = vmatpush.msra.mxu0 %v72_v59  ;;  %v266_v10 = vld [vmem:[%s757_s5 + $0xc0] sm:$0xff]  ;;  %v260_v16 = vld [vmem:[%s757_s5 + $0x90] sm:$0xff]  ;;  %v261_v17 = vld [vmem:[%s757_s5 + $0x98] sm:$0xff] }
  0x1c   :  { %178 = vmatpush.msra.mxu3 %v35_v45  ;;  %155 = vmatpush.msra.mxu2 %v34_v58  ;;  %v262_v14 = vld [vmem:[%s757_s5 + $0xa0] sm:$0xff]  ;;  %v259_v19 = vld [vmem:[%s757_s5 + $0x88] sm:$0xff]  ;;  %v256_v20 = vld [vmem:[%s757_s5 + $0x70] sm:$0xff] }
  0x1d   :  { %132 = vmatpush.msra.mxu1 %v69_v47  ;;  %108 = vmatpush.msra.mxu0 %v70_v61  ;;  %v258_v18 = vld [vmem:[%s757_s5 + $0x80] sm:$0xff]  ;;  %v257_v21 = vld [vmem:[%s757_s5 + $0x78] sm:$0xff]  ;;  %v255_v23 = vld [vmem:[%s757_s5 + $0x68] sm:$0xff] }
  0x1e   :  { %179 = vmatpush.msra.mxu3 %v33_v49  ;;  %156 = vmatpush.msra.mxu2 %v32_v60  ;;  %v254_v22 = vld [vmem:[%s757_s5 + $0x60] sm:$0xff]  ;;  %v252_v24 = vld [vmem:[%s757_s5 + $0x50] sm:$0xff]  ;;  %v253_v25 = vld [vmem:[%s757_s5 + $0x58] sm:$0xff] }
  0x1f   :  { %133 = vmatpush.msra.mxu1 %v67_v51  ;;  %109 = vmatpush.msra.mxu0 %v68_v63  ;;  %v250_v26 = vld [vmem:[%s757_s5 + $0x40] sm:$0xff]  ;;  %v251_v27 = vld [vmem:[%s757_s5 + $0x48] sm:$0xff]  ;;  %v248_v28 = vld [vmem:[%s757_s5 + $0x30] sm:$0xff] }
  0x20   :  { %180 = vmatpush.msra.mxu3 %v31_v53  ;;  %157 = vmatpush.msra.mxu2 %v30_v62  ;;  %v249_v29 = vld [vmem:[%s757_s5 + $0x38] sm:$0xff]  ;;  %v246_v30 = vld [vmem:[%s757_s5 + $0x20] sm:$0xff]  ;;  %v247_v31 = vld [vmem:[%s757_s5 + $0x28] sm:$0xff] }
  0x21   :  { %181 = vmatmul.f32.vlgmr.msra.gmra.mxu3 %v28_v55  ;;  %134 = vmatpush.msra.mxu1 %v65_v56  ;;  %v188_v33 = vld [vmem:[%s758_s4] sm:$0x3]  ;;  %v244_v34 = vld [vmem:[%s757_s5 + $0x10] sm:$0xff]  ;;  %v245_v35 = vld [vmem:[%s757_s5 + $0x18] sm:$0xff] }
  0x22   :  { %135 = vmatmul.f32.vlgmr.msra.gmra.mxu1 %v62_v57  ;;  %158 = vmatmul.f32.vlgmr.msra.gmra.mxu2 %v28_v55  ;;  %v191_v36 = vperm.slane %v188_v33, 1  ;;  %v242_v37 = vld [vmem:[%s757_s5] sm:$0xff]  ;;  %v243_v38 = vld [vmem:[%s757_s5 + $0x8] sm:$0xff]  ;;  %v190_v53 = vperm.slane %v188_v33, 0 }
  0x23   :  { %110 = vmatpush.msra.mxu0 %v66_v1  ;;  %303 = vmatpush.msrb.mxu1 %v273_v5 }
  0x24   :  { %340 = vmatpush.msrb.mxu2 %v272_v4  ;;  %356 = vmatpush.msrb.mxu3 %v273_v5 }
  0x25   :  { %111 = vmatpush.msra.mxu0 %v64_v3  ;;  %304 = vmatpush.msrb.mxu1 %v271_v7 }
  0x26   :  { %112 = vmatmul.f32.vlgmr.msra.gmra.mxu0 %v62_v57  ;;  %341 = vmatpush.msrb.mxu2 %v270_v6 }
  0x27   :  { %280 = vmatpush.msrb.mxu0 %v272_v4  ;;  %357 = vmatpush.msrb.mxu3 %v271_v7 }
  0x28   :  { %305 = vmatpush.msrb.mxu1 %v269_v9  ;;  %342 = vmatpush.msrb.mxu2 %v268_v8 }
  0x29   :  { %184 = vmatmul.f32.gmra.mxu3 %v29_v0  ;;  %281 = vmatpush.msrb.mxu0 %v270_v6 }
  0x2a   :  { %138 = vmatmul.f32.gmra.mxu1 %v63_v2  ;;  %161 = vmatmul.f32.gmra.mxu2 %v29_v0 }
  0x2b   :  { %282 = vmatpush.msrb.mxu0 %v268_v8  ;;  %358 = vmatpush.msrb.mxu3 %v269_v9 }
  0x2c   :  { %306 = vmatpush.msrb.mxu1 %v267_v11  ;;  %343 = vmatpush.msrb.mxu2 %v266_v10 }
  0x2d   :  { %283 = vmatpush.msrb.mxu0 %v266_v10  ;;  %359 = vmatpush.msrb.mxu3 %v267_v11 }
  0x2e   :  { %115 = vmatmul.f32.gmra.mxu0 %v63_v2  ;;  %307 = vmatpush.msrb.mxu1 %v265_v13 }
  0x2f   :  { %284 = vmatpush.msrb.mxu0 %v264_v12  ;;  %344 = vmatpush.msrb.mxu2 %v264_v12 }
  0x30   :  { %360 = vmatpush.msrb.mxu3 %v265_v13  ;;  %308 = vmatpush.msrb.mxu1 %v263_v15 }
  0x31   :  { %285 = vmatpush.msrb.mxu0 %v262_v14  ;;  %345 = vmatpush.msrb.mxu2 %v262_v14 }
  0x32   :  { %361 = vmatpush.msrb.mxu3 %v263_v15  ;;  %309 = vmatpush.msrb.mxu1 %v261_v17 }
  0x33   :  { %286 = vmatpush.msrb.mxu0 %v260_v16  ;;  %346 = vmatpush.msrb.mxu2 %v260_v16 }
  0x34   :  { %362 = vmatpush.msrb.mxu3 %v261_v17  ;;  %310 = vmatpush.msrb.mxu1 %v259_v19 }
  0x35   :  { %287 = vmatpush.msrb.mxu0 %v258_v18  ;;  %347 = vmatpush.msrb.mxu2 %v258_v18 }
  0x36   :  { %363 = vmatpush.msrb.mxu3 %v259_v19  ;;  %311 = vmatpush.msrb.mxu1 %v257_v21 }
  0x37   :  { %288 = vmatpush.msrb.mxu0 %v256_v20  ;;  %348 = vmatpush.msrb.mxu2 %v256_v20 }
  0x38   :  { %364 = vmatpush.msrb.mxu3 %v257_v21  ;;  %312 = vmatpush.msrb.mxu1 %v255_v23  ;;  %v274_v21 = vld [vmem:[%s760_s6] sm:$0x3] }
  0x39   :  { %289 = vmatpush.msrb.mxu0 %v254_v22  ;;  %349 = vmatpush.msrb.mxu2 %v254_v22  ;;  %v276_v22 = vperm.slane %v274_v21, 0 }
  0x3a   :  { %365 = vmatpush.msrb.mxu3 %v255_v23  ;;  %313 = vmatpush.msrb.mxu1 %v253_v25  ;;  %v277_v23 = vperm.slane %v274_v21, 1 }
  0x3b   :  { %290 = vmatpush.msrb.mxu0 %v252_v24  ;;  %350 = vmatpush.msrb.mxu2 %v252_v24 }
  0x3c   :  { %366 = vmatpush.msrb.mxu3 %v253_v25  ;;  %314 = vmatpush.msrb.mxu1 %v251_v27 }
  0x3d   :  { %291 = vmatpush.msrb.mxu0 %v250_v26  ;;  %351 = vmatpush.msrb.mxu2 %v250_v26 }
  0x3e   :  { %367 = vmatpush.msrb.mxu3 %v251_v27  ;;  %315 = vmatpush.msrb.mxu1 %v249_v29 }
  0x3f   :  { %292 = vmatpush.msrb.mxu0 %v248_v28  ;;  %352 = vmatpush.msrb.mxu2 %v248_v28 }
  0x40   :  { %368 = vmatpush.msrb.mxu3 %v249_v29  ;;  %316 = vmatpush.msrb.mxu1 %v247_v31 }
  0x41   :  { %293 = vmatpush.msrb.mxu0 %v246_v30  ;;  %353 = vmatpush.msrb.mxu2 %v246_v30 }
  0x42   :  { %369 = vmatpush.msrb.mxu3 %v247_v31  ;;  %317 = vmatpush.msrb.mxu1 %v245_v35 }
  0x43   :  { %294 = vmatpush.msrb.mxu0 %v244_v34  ;;  %354 = vmatpush.msrb.mxu2 %v244_v34 }
  0x44   :  { %370 = vmatpush.msrb.mxu3 %v245_v35  ;;  %318 = vmatpush.msrb.mxu1 %v243_v38 }
  0x45   :  { %295 = vmatpush.msrb.mxu0 %v242_v37  ;;  %355 = vmatpush.msrb.mxu2 %v242_v37 }
  0x46   :  { %371 = vmatpush.msrb.mxu3 %v243_v38 }
  0x9f   :  { %v136_v32 = vpop.f32.mrf.mxu1 }
  0xa3   :  { %v113_v47 = vpop.f32.mrf.mxu0 }
  0xa4   :  { %v182_v39 = vpop.f32.mrf.mxu3 }
  0xa5   :  { %v183_v40 = vadd.f32 %v182_v39, %v136_v32  ;;  %v159_v48 = vpop.f32.mrf.mxu2 }
  0xa6   :  { %v160_v52 = vadd.f32 %v159_v48, %v113_v47 }
  0xa7   :  { %v195_v41 = vadd.f32 %v191_v36, %v183_v40  ;;  %v139_v43 = vpop.f32.mrf.mxu1 }
  0xa8   :  { %v194_v54 = vadd.f32 %v190_v53, %v160_v52 }
  0xa9   :  { %v338_v42 = vmul.f32 -1.442695, %v195_v41 }
  0xab   :  { %372 = vpow2.f32 %v338_v42  ;;  %v116_v56 = vpop.f32.mrf.mxu0 }
  0xac   :  { %v185_v44 = vpop.f32.mrf.mxu3 }
  0xad   :  { %v186_v45 = vadd.f32 %v185_v44, %v139_v43  ;;  %v162_v57 = vpop.f32.mrf.mxu2 }
  0xae   :  { %v163_v61 = vadd.f32 %v162_v57, %v116_v56 }
  0xaf   :  { %v197_v46 = vadd.f32 %v191_v36, %v186_v45 }
  0xb0   :  { %v196_v2 = vadd.f32 %v190_v53, %v163_v61 }
  0xb1   :  { %v373_v49 = vpop.eup %372  ;;  %v339_v50 = vmul.f32 -1.442695, %v197_v46 }
  0xb2   :  { %v206_v51 = vadd.f32 1.0, %v373_v49 }
  0xb3   :  { %374 = vpow2.f32 %v339_v50 }
  0xb4   :  { %376 = vrcp.f32 %v206_v51  ;;  %v219_v63 = vand.u32 2147483648, %v206_v51  ;;  %v217_v1 = vand.u32 2147483647, %v206_v51  ;;  %vm213_vm1 = vweird.f32 %v206_v51 }
  0xb5   :  { %378 = vtanh.f32 %v194_v54 }
  0xb6   :  { %v220_v6 = vor.u32 1.1754944e-38, %v219_v63  ;;  %vm218_vm3 = vcmp.eq.f32.partialorder %v217_v1, 8.507059e+37 }
  0xb9   :  { %v375_v55 = vpop.eup %374 }
  0xba   :  { %v377_v58 = vpop.eup %376  ;;  %v207_v59 = vadd.f32 1.0, %v375_v55 }
  0xbb   :  { %v209_v60 = vmul.f32 %v377_v58, %v206_v51  ;;  %vm214_vm0 = vweird.f32 %v377_v58  ;;  %v379_v3 = vpop.eup %378 }
  0xbc   :  { %380 = vrcp.f32 %v207_v59  ;;  %vm215_vm2 = vmor %vm213_vm1, %vm214_vm0  ;;  %v234_v12 = vand.u32 2147483648, %v207_v59  ;;  %v232_v14 = vand.u32 2147483647, %v207_v59  ;;  %vm228_vm5 = vweird.f32 %v207_v59 }
  0xbd   :  { %v210_v62 = vsub.f32 1.0, %v209_v60  ;;  %382 = vtanh.f32 %v196_v2 }
  0xbe   :  { %v235_v17 = vor.u32 1.1754944e-38, %v234_v12  ;;  %vm233_vm7 = vcmp.eq.f32.partialorder %v232_v14, 8.507059e+37 }
  0xbf   :  { %v211_v0 = vmul.f32 %v377_v58, %v210_v62 }
  0xc1   :  { %v212_v4 = vadd.f32 %v377_v58, %v211_v0 }
  0xc2   :  { %v381_v5 = vpop.eup %380 }
  0xc3   :  { %v216_v7 = vsel %vm215_vm2, %v377_v58, %v212_v4  ;;  %v224_v8 = vmul.f32 %v381_v5, %v207_v59  ;;  %vm229_vm4 = vweird.f32 %v381_v5  ;;  %v383_v16 = vpop.eup %382 }
  0xc4   :  { %v221_v9 = vsel %vm218_vm3, %v220_v6, %v216_v7  ;;  %vm230_vm6 = vmor %vm228_vm5, %vm229_vm4 }
  0xc5   :  { %v238_v10 = vmul.f32 %v379_v3, %v221_v9  ;;  %v225_v11 = vsub.f32 1.0, %v224_v8 }
  0xc7   :  { %240 = vst [vmem:[%s759_s7] sm:$0xff] %v238_v10  ;;  %296 = vmatmul.f32.vlgmr.msrb.gmra.mxu0 %v238_v10  ;;  %319 = vmatmul.f32.vlgmr.msrb.gmra.mxu1 %v238_v10  ;;  %v226_v13 = vmul.f32 %v381_v5, %v225_v11 }
  0xc9   :  { %v227_v15 = vadd.f32 %v381_v5, %v226_v13 }
  0xcb   :  { %v231_v18 = vsel %vm230_vm6, %v381_v5, %v227_v15 }
  0xcc   :  { %v236_v19 = vsel %vm233_vm7, %v235_v17, %v231_v18 }
  0xcd   :  { %v239_v20 = vmul.f32 %v383_v16, %v236_v19 }
  0xcf   :  { %241 = vst [vmem:[%s759_s7 + $0x8] sm:$0x3f] %v239_v20  ;;  %299 = vmatmul.f32.vlgmr.msrb.gmra.mxu2 %v239_v20  ;;  %322 = vmatmul.f32.vlgmr.msrb.gmra.mxu3 %v239_v20 }
 0x144   :  { %v297_v24 = vpop.f32.mrf.mxu0  ;;  %v320_v25 = vpop.f32.mrf.mxu1 }
 0x145   :  { %v298_v26 = vadd.f32 %v297_v24, %v276_v22  ;;  %v321_v27 = vadd.f32 %v320_v25, %v277_v23 }
 0x147   :  { %326 = vst [vmem:[%s761_s8] sm:$0xff] %v298_v26 }
 0x148   :  { %327 = vst [vmem:[%s761_s8 + $0x8] sm:$0xff] %v321_v27 }
 0x152   :  { %v300_v28 = vpop.f32.mrf.mxu2  ;;  %v323_v29 = vpop.f32.mrf.mxu3 }
 0x153   :  { %v301_v30 = vadd.f32 %v300_v28, %v276_v22  ;;  %v324_v31 = vadd.f32 %v323_v29, %v277_v23 }
 0x155   :  { %328 = vst [vmem:[%s761_s8 + $0x10] sm:$0x3f] %v301_v30 }
 0x156   :  { %329 = vst [vmem:[%s761_s8 + $0x18] sm:$0x3f] %v324_v31 }

// kernel: a_call__.26
= control target key start
LH: loop header
LB: loop body
LE: loop exit
PB: predicated region body
PF: predicated region fallthrough
CT: control target
= control target key end

     0   :  { %s350_s4 = inlined_call_operand.vmem [shape: f32[128,128], index: 4, kind: input, shape index: {}]   ;;  %s351_s3 = inlined_call_operand.vmem [shape: f32[128,128], index: 3, kind: input, shape index: {}]   ;;  %s352_s1 = inlined_call_operand.vmem [shape: f32[14,128], index: 1, kind: input, shape index: {}]   ;;  %s353_s0 = inlined_call_operand.vmem [shape: f32[14,128], index: 0, kind: input, shape index: {}]   ;;  %s354_s5 = inlined_call_operand.vmem [shape: f32[1,128], index: 5, kind: input, shape index: {}]   ;;  %s355_s6 = inlined_call_operand.vmem [shape: f32[1,128], index: 6, kind: input, shape index: {}]   ;;  %s356_s7 = inlined_call_operand.vmem [shape: f32[1,128], index: 7, kind: input, shape index: {}]   ;;  %s357_s2 = inlined_call_operand.vmem [shape: f32[14,128], index: 2, kind: input, shape index: {}]   ;;  %s358_s8 = inlined_call_operand.vmem [shape: f32[14,128], index: 8, kind: output, shape index: {}]  }
   0x1   :  { %v64_v0 = vld [vmem:[%s350_s4 + $0x78] sm:$0xff]  ;;  %v63_v2 = vld [vmem:[%s350_s4 + $0x70] sm:$0xff]  ;;  %v62_v4 = vld [vmem:[%s350_s4 + $0x68] sm:$0xff] }
   0x2   :  { %v46_v1 = vld [vmem:[%s351_s3 + $0x78] sm:$0xff]  ;;  %141 = vmatpush.msra.mxu2 %v64_v0  ;;  %v45_v3 = vld [vmem:[%s351_s3 + $0x70] sm:$0xff]  ;;  %v44_v5 = vld [vmem:[%s351_s3 + $0x68] sm:$0xff]  ;;  %65 = vmatpush.msra.mxu0 %v64_v0 }
   0x3   :  { %157 = vmatpush.msra.mxu3 %v46_v1  ;;  %88 = vmatpush.msra.mxu1 %v46_v1  ;;  %v61_v6 = vld [vmem:[%s350_s4 + $0x60] sm:$0xff]  ;;  %v60_v8 = vld [vmem:[%s350_s4 + $0x58] sm:$0xff]  ;;  %v59_v10 = vld [vmem:[%s350_s4 + $0x50] sm:$0xff] }
   0x4   :  { %142 = vmatpush.msra.mxu2 %v63_v2  ;;  %v43_v7 = vld [vmem:[%s351_s3 + $0x60] sm:$0xff]  ;;  %66 = vmatpush.msra.mxu0 %v63_v2  ;;  %v42_v9 = vld [vmem:[%s351_s3 + $0x58] sm:$0xff]  ;;  %v41_v11 = vld [vmem:[%s351_s3 + $0x50] sm:$0xff] }
   0x5   :  { %158 = vmatpush.msra.mxu3 %v45_v3  ;;  %89 = vmatpush.msra.mxu1 %v45_v3  ;;  %v58_v12 = vld [vmem:[%s350_s4 + $0x48] sm:$0xff]  ;;  %v57_v14 = vld [vmem:[%s350_s4 + $0x40] sm:$0xff]  ;;  %v56_v16 = vld [vmem:[%s350_s4 + $0x38] sm:$0xff] }
   0x6   :  { %143 = vmatpush.msra.mxu2 %v62_v4  ;;  %67 = vmatpush.msra.mxu0 %v62_v4  ;;  %v40_v13 = vld [vmem:[%s351_s3 + $0x48] sm:$0xff]  ;;  %v39_v15 = vld [vmem:[%s351_s3 + $0x40] sm:$0xff]  ;;  %v38_v17 = vld [vmem:[%s351_s3 + $0x38] sm:$0xff] }
   0x7   :  { %159 = vmatpush.msra.mxu3 %v44_v5  ;;  %90 = vmatpush.msra.mxu1 %v44_v5  ;;  %v55_v18 = vld [vmem:[%s350_s4 + $0x30] sm:$0xff]  ;;  %v54_v20 = vld [vmem:[%s350_s4 + $0x28] sm:$0xff]  ;;  %v53_v22 = vld [vmem:[%s350_s4 + $0x20] sm:$0xff] }
   0x8   :  { %144 = vmatpush.msra.mxu2 %v61_v6  ;;  %68 = vmatpush.msra.mxu0 %v61_v6  ;;  %v37_v19 = vld [vmem:[%s351_s3 + $0x30] sm:$0xff]  ;;  %v36_v21 = vld [vmem:[%s351_s3 + $0x28] sm:$0xff]  ;;  %v35_v23 = vld [vmem:[%s351_s3 + $0x20] sm:$0xff] }
   0x9   :  { %160 = vmatpush.msra.mxu3 %v43_v7  ;;  %91 = vmatpush.msra.mxu1 %v43_v7  ;;  %v52_v24 = vld [vmem:[%s350_s4 + $0x18] sm:$0xff]  ;;  %v51_v26 = vld [vmem:[%s350_s4 + $0x10] sm:$0xff]  ;;  %v50_v28 = vld [vmem:[%s350_s4 + $0x8] sm:$0xff] }
   0xa   :  { %145 = vmatpush.msra.mxu2 %v60_v8  ;;  %69 = vmatpush.msra.mxu0 %v60_v8  ;;  %v34_v25 = vld [vmem:[%s351_s3 + $0x18] sm:$0xff]  ;;  %v33_v27 = vld [vmem:[%s351_s3 + $0x10] sm:$0xff]  ;;  %v32_v29 = vld [vmem:[%s351_s3 + $0x8] sm:$0xff] }
   0xb   :  { %161 = vmatpush.msra.mxu3 %v42_v9  ;;  %92 = vmatpush.msra.mxu1 %v42_v9  ;;  %v49_v30 = vld [vmem:[%s350_s4] sm:$0xff]  ;;  %v48_v32 = vld [vmem:[%s352_s1 + $0x8] sm:$0x3f] }
   0xc   :  { %146 = vmatpush.msra.mxu2 %v59_v10  ;;  %70 = vmatpush.msra.mxu0 %v59_v10  ;;  %v31_v31 = vld [vmem:[%s351_s3] sm:$0xff]  ;;  %v30_v33 = vld [vmem:[%s353_s0 + $0x8] sm:$0x3f] }
   0xd   :  { %162 = vmatpush.msra.mxu3 %v41_v11  ;;  %93 = vmatpush.msra.mxu1 %v41_v11  ;;  %v47_v34 = vld [vmem:[%s352_s1] sm:$0xff]  ;;  %v120_v50 = vld [vmem:[%s357_s2 + $0x8] sm:$0x3f] }
   0xe   :  { %147 = vmatpush.msra.mxu2 %v58_v12  ;;  %71 = vmatpush.msra.mxu0 %v58_v12  ;;  %v29_v35 = vld [vmem:[%s353_s0] sm:$0xff] }
   0xf   :  { %163 = vmatpush.msra.mxu3 %v40_v13  ;;  %94 = vmatpush.msra.mxu1 %v40_v13  ;;  %v173_v36 = vld [vmem:[%s354_s5] ss:$0 sm:$0xff] }
  0x10   :  { %148 = vmatpush.msra.mxu2 %v57_v14  ;;  %72 = vmatpush.msra.mxu0 %v57_v14  ;;  %v119_v42 = vld [vmem:[%s357_s2] sm:$0xff] }
  0x11   :  { %164 = vmatpush.msra.mxu3 %v39_v15  ;;  %95 = vmatpush.msra.mxu1 %v39_v15  ;;  %v174_v45 = vld [vmem:[%s355_s6] ss:$0 sm:$0xff] }
  0x12   :  { %149 = vmatpush.msra.mxu2 %v56_v16  ;;  %73 = vmatpush.msra.mxu0 %v56_v16  ;;  %v175_v48 = vld [vmem:[%s356_s7] ss:$0 sm:$0xff] }
  0x13   :  { %165 = vmatpush.msra.mxu3 %v38_v17  ;;  %96 = vmatpush.msra.mxu1 %v38_v17 }
  0x14   :  { %150 = vmatpush.msra.mxu2 %v55_v18  ;;  %74 = vmatpush.msra.mxu0 %v55_v18 }
  0x15   :  { %166 = vmatpush.msra.mxu3 %v37_v19  ;;  %97 = vmatpush.msra.mxu1 %v37_v19 }
  0x16   :  { %151 = vmatpush.msra.mxu2 %v54_v20  ;;  %75 = vmatpush.msra.mxu0 %v54_v20 }
  0x17   :  { %167 = vmatpush.msra.mxu3 %v36_v21  ;;  %98 = vmatpush.msra.mxu1 %v36_v21 }
  0x18   :  { %152 = vmatpush.msra.mxu2 %v53_v22  ;;  %76 = vmatpush.msra.mxu0 %v53_v22 }
  0x19   :  { %168 = vmatpush.msra.mxu3 %v35_v23  ;;  %99 = vmatpush.msra.mxu1 %v35_v23 }
  0x1a   :  { %153 = vmatpush.msra.mxu2 %v52_v24  ;;  %77 = vmatpush.msra.mxu0 %v52_v24 }
  0x1b   :  { %169 = vmatpush.msra.mxu3 %v34_v25  ;;  %100 = vmatpush.msra.mxu1 %v34_v25 }
  0x1c   :  { %154 = vmatpush.msra.mxu2 %v51_v26  ;;  %78 = vmatpush.msra.mxu0 %v51_v26 }
  0x1d   :  { %170 = vmatpush.msra.mxu3 %v33_v27  ;;  %101 = vmatpush.msra.mxu1 %v33_v27 }
  0x1e   :  { %155 = vmatpush.msra.mxu2 %v50_v28  ;;  %79 = vmatpush.msra.mxu0 %v50_v28 }
  0x1f   :  { %171 = vmatpush.msra.mxu3 %v32_v29  ;;  %102 = vmatpush.msra.mxu1 %v32_v29 }
  0x20   :  { %156 = vmatpush.msra.mxu2 %v49_v30  ;;  %80 = vmatpush.msra.mxu0 %v49_v30 }
  0x21   :  { %172 = vmatpush.msra.mxu3 %v31_v31  ;;  %84 = vmatmul.f32.vlgmr.msra.gmra.mxu2 %v48_v32 }
  0x22   :  { %107 = vmatmul.f32.vlgmr.msra.gmra.mxu3 %v30_v33  ;;  %103 = vmatpush.msra.mxu1 %v31_v31 }
  0x23   :  { %81 = vmatmul.f32.vlgmr.msra.gmra.mxu0 %v47_v34  ;;  %104 = vmatmul.f32.vlgmr.msra.gmra.mxu1 %v29_v35 }
  0xa0   :  { %v82_v37 = vpop.f32.mrf.mxu0  ;;  %v105_v38 = vpop.f32.mrf.mxu1 }
  0xa1   :  { %v106_v39 = vadd.f32 %v105_v38, %v82_v37 }
  0xa3   :  { %v115_v40 = vadd.f32 %v173_v36, %v106_v39 }
  0xa4   :  { %v85_v41 = vpop.f32.mrf.mxu2 }
  0xa5   :  { %v108_v43 = vpop.f32.mrf.mxu3  ;;  %v117_v44 = vmax.f32 %v115_v40, 0.0 }
  0xa6   :  { %v109_v46 = vadd.f32 %v108_v43, %v85_v41 }
  0xa7   :  { %v121_v47 = vadd.f32 %v119_v42, %v117_v44 }
  0xa8   :  { %v116_v49 = vadd.f32 %v173_v36, %v109_v46 }
  0xa9   :  { %v127_v51 = vmul.f32 %v174_v45, %v121_v47 }
  0xaa   :  { %v118_v52 = vmax.f32 %v116_v49, 0.0 }
  0xab   :  { %v133_v53 = vadd.f32 %v175_v48, %v127_v51 }
  0xac   :  { %v122_v54 = vadd.f32 %v120_v50, %v118_v52 }
  0xad   :  { %135 = vst [vmem:[%s358_s8] sm:$0xff] %v133_v53 }
  0xae   :  { %v128_v55 = vmul.f32 %v174_v45, %v122_v54 }
  0xb0   :  { %v134_v56 = vadd.f32 %v175_v48, %v128_v55 }
  0xb2   :  { %136 = vst [vmem:[%s358_s8 + $0x8] sm:$0x3f] %v134_v56 }

// kernel: a_call__.24
= control target key start
LH: loop header
LB: loop body
LE: loop exit
PB: predicated region body
PF: predicated region fallthrough
CT: control target
= control target key end

     0   :  { %s296_s3 = inlined_call_operand.vmem [shape: f32[128,128], index: 3, kind: input, shape index: {}]   ;;  %s297_s2 = inlined_call_operand.vmem [shape: f32[128,128], index: 2, kind: input, shape index: {}]   ;;  %s298_s1 = inlined_call_operand.vmem [shape: f32[14,128], index: 1, kind: input, shape index: {}]   ;;  %s299_s0 = inlined_call_operand.vmem [shape: f32[14,128], index: 0, kind: input, shape index: {}]   ;;  %s300_s4 = inlined_call_operand.vmem [shape: f32[1,128], index: 4, kind: input, shape index: {}]   ;;  %s301_s5 = inlined_call_operand.vmem [shape: f32[14,128], index: 5, kind: output, shape index: {}]  }
   0x1   :  { %v55_v0 = vld [vmem:[%s296_s3 + $0x78] sm:$0xff]  ;;  %v54_v2 = vld [vmem:[%s296_s3 + $0x70] sm:$0xff]  ;;  %v53_v4 = vld [vmem:[%s296_s3 + $0x68] sm:$0xff] }
   0x2   :  { %v37_v1 = vld [vmem:[%s297_s2 + $0x78] sm:$0xff]  ;;  %116 = vmatpush.msra.mxu2 %v55_v0  ;;  %v36_v3 = vld [vmem:[%s297_s2 + $0x70] sm:$0xff]  ;;  %v35_v5 = vld [vmem:[%s297_s2 + $0x68] sm:$0xff]  ;;  %56 = vmatpush.msra.mxu0 %v55_v0 }
   0x3   :  { %132 = vmatpush.msra.mxu3 %v37_v1  ;;  %79 = vmatpush.msra.mxu1 %v37_v1  ;;  %v52_v6 = vld [vmem:[%s296_s3 + $0x60] sm:$0xff]  ;;  %v51_v8 = vld [vmem:[%s296_s3 + $0x58] sm:$0xff]  ;;  %v50_v10 = vld [vmem:[%s296_s3 + $0x50] sm:$0xff] }
   0x4   :  { %117 = vmatpush.msra.mxu2 %v54_v2  ;;  %v34_v7 = vld [vmem:[%s297_s2 + $0x60] sm:$0xff]  ;;  %57 = vmatpush.msra.mxu0 %v54_v2  ;;  %v33_v9 = vld [vmem:[%s297_s2 + $0x58] sm:$0xff]  ;;  %v32_v11 = vld [vmem:[%s297_s2 + $0x50] sm:$0xff] }
   0x5   :  { %133 = vmatpush.msra.mxu3 %v36_v3  ;;  %80 = vmatpush.msra.mxu1 %v36_v3  ;;  %v49_v12 = vld [vmem:[%s296_s3 + $0x48] sm:$0xff]  ;;  %v48_v14 = vld [vmem:[%s296_s3 + $0x40] sm:$0xff]  ;;  %v47_v16 = vld [vmem:[%s296_s3 + $0x38] sm:$0xff] }
   0x6   :  { %118 = vmatpush.msra.mxu2 %v53_v4  ;;  %58 = vmatpush.msra.mxu0 %v53_v4  ;;  %v31_v13 = vld [vmem:[%s297_s2 + $0x48] sm:$0xff]  ;;  %v30_v15 = vld [vmem:[%s297_s2 + $0x40] sm:$0xff]  ;;  %v29_v17 = vld [vmem:[%s297_s2 + $0x38] sm:$0xff] }
   0x7   :  { %134 = vmatpush.msra.mxu3 %v35_v5  ;;  %81 = vmatpush.msra.mxu1 %v35_v5  ;;  %v46_v18 = vld [vmem:[%s296_s3 + $0x30] sm:$0xff]  ;;  %v45_v20 = vld [vmem:[%s296_s3 + $0x28] sm:$0xff]  ;;  %v44_v22 = vld [vmem:[%s296_s3 + $0x20] sm:$0xff] }
   0x8   :  { %119 = vmatpush.msra.mxu2 %v52_v6  ;;  %59 = vmatpush.msra.mxu0 %v52_v6  ;;  %v28_v19 = vld [vmem:[%s297_s2 + $0x30] sm:$0xff]  ;;  %v27_v21 = vld [vmem:[%s297_s2 + $0x28] sm:$0xff]  ;;  %v26_v23 = vld [vmem:[%s297_s2 + $0x20] sm:$0xff] }
   0x9   :  { %135 = vmatpush.msra.mxu3 %v34_v7  ;;  %82 = vmatpush.msra.mxu1 %v34_v7  ;;  %v43_v24 = vld [vmem:[%s296_s3 + $0x18] sm:$0xff]  ;;  %v42_v26 = vld [vmem:[%s296_s3 + $0x10] sm:$0xff]  ;;  %v41_v28 = vld [vmem:[%s296_s3 + $0x8] sm:$0xff] }
   0xa   :  { %120 = vmatpush.msra.mxu2 %v51_v8  ;;  %60 = vmatpush.msra.mxu0 %v51_v8  ;;  %v25_v25 = vld [vmem:[%s297_s2 + $0x18] sm:$0xff]  ;;  %v24_v27 = vld [vmem:[%s297_s2 + $0x10] sm:$0xff]  ;;  %v23_v29 = vld [vmem:[%s297_s2 + $0x8] sm:$0xff] }
   0xb   :  { %136 = vmatpush.msra.mxu3 %v33_v9  ;;  %83 = vmatpush.msra.mxu1 %v33_v9  ;;  %v40_v30 = vld [vmem:[%s296_s3] sm:$0xff]  ;;  %v39_v32 = vld [vmem:[%s298_s1 + $0x8] sm:$0x3f] }
   0xc   :  { %121 = vmatpush.msra.mxu2 %v50_v10  ;;  %61 = vmatpush.msra.mxu0 %v50_v10  ;;  %v22_v31 = vld [vmem:[%s297_s2] sm:$0xff]  ;;  %v21_v33 = vld [vmem:[%s299_s0 + $0x8] sm:$0x3f] }
   0xd   :  { %137 = vmatpush.msra.mxu3 %v32_v11  ;;  %84 = vmatpush.msra.mxu1 %v32_v11  ;;  %v38_v34 = vld [vmem:[%s298_s1] sm:$0xff] }
   0xe   :  { %122 = vmatpush.msra.mxu2 %v49_v12  ;;  %62 = vmatpush.msra.mxu0 %v49_v12  ;;  %v20_v35 = vld [vmem:[%s299_s0] sm:$0xff] }
   0xf   :  { %138 = vmatpush.msra.mxu3 %v31_v13  ;;  %85 = vmatpush.msra.mxu1 %v31_v13  ;;  %v148_v36 = vld [vmem:[%s300_s4] ss:$0 sm:$0xff] }
  0x10   :  { %123 = vmatpush.msra.mxu2 %v48_v14  ;;  %63 = vmatpush.msra.mxu0 %v48_v14 }
  0x11   :  { %139 = vmatpush.msra.mxu3 %v30_v15  ;;  %86 = vmatpush.msra.mxu1 %v30_v15 }
  0x12   :  { %124 = vmatpush.msra.mxu2 %v47_v16  ;;  %64 = vmatpush.msra.mxu0 %v47_v16 }
  0x13   :  { %140 = vmatpush.msra.mxu3 %v29_v17  ;;  %87 = vmatpush.msra.mxu1 %v29_v17 }
  0x14   :  { %125 = vmatpush.msra.mxu2 %v46_v18  ;;  %65 = vmatpush.msra.mxu0 %v46_v18 }
  0x15   :  { %141 = vmatpush.msra.mxu3 %v28_v19  ;;  %88 = vmatpush.msra.mxu1 %v28_v19 }
  0x16   :  { %126 = vmatpush.msra.mxu2 %v45_v20  ;;  %66 = vmatpush.msra.mxu0 %v45_v20 }
  0x17   :  { %142 = vmatpush.msra.mxu3 %v27_v21  ;;  %89 = vmatpush.msra.mxu1 %v27_v21 }
  0x18   :  { %127 = vmatpush.msra.mxu2 %v44_v22  ;;  %67 = vmatpush.msra.mxu0 %v44_v22 }
  0x19   :  { %143 = vmatpush.msra.mxu3 %v26_v23  ;;  %90 = vmatpush.msra.mxu1 %v26_v23 }
  0x1a   :  { %128 = vmatpush.msra.mxu2 %v43_v24  ;;  %68 = vmatpush.msra.mxu0 %v43_v24 }
  0x1b   :  { %144 = vmatpush.msra.mxu3 %v25_v25  ;;  %91 = vmatpush.msra.mxu1 %v25_v25 }
  0x1c   :  { %129 = vmatpush.msra.mxu2 %v42_v26  ;;  %69 = vmatpush.msra.mxu0 %v42_v26 }
  0x1d   :  { %145 = vmatpush.msra.mxu3 %v24_v27  ;;  %92 = vmatpush.msra.mxu1 %v24_v27 }
  0x1e   :  { %130 = vmatpush.msra.mxu2 %v41_v28  ;;  %70 = vmatpush.msra.mxu0 %v41_v28 }
  0x1f   :  { %146 = vmatpush.msra.mxu3 %v23_v29  ;;  %93 = vmatpush.msra.mxu1 %v23_v29 }
  0x20   :  { %131 = vmatpush.msra.mxu2 %v40_v30  ;;  %71 = vmatpush.msra.mxu0 %v40_v30 }
  0x21   :  { %147 = vmatpush.msra.mxu3 %v22_v31  ;;  %75 = vmatmul.f32.vlgmr.msra.gmra.mxu2 %v39_v32 }
  0x22   :  { %98 = vmatmul.f32.vlgmr.msra.gmra.mxu3 %v21_v33  ;;  %94 = vmatpush.msra.mxu1 %v22_v31 }
  0x23   :  { %72 = vmatmul.f32.vlgmr.msra.gmra.mxu0 %v38_v34  ;;  %95 = vmatmul.f32.vlgmr.msra.gmra.mxu1 %v20_v35 }
  0xa0   :  { %v73_v37 = vpop.f32.mrf.mxu0  ;;  %v96_v38 = vpop.f32.mrf.mxu1 }
  0xa1   :  { %v97_v39 = vadd.f32 %v96_v38, %v73_v37 }
  0xa3   :  { %v106_v40 = vadd.f32 %v148_v36, %v97_v39 }
  0xa4   :  { %v76_v41 = vpop.f32.mrf.mxu2 }
  0xa5   :  { %v99_v42 = vpop.f32.mrf.mxu3  ;;  %v108_v43 = vmax.f32 %v106_v40, 0.0 }
  0xa6   :  { %v100_v44 = vadd.f32 %v99_v42, %v76_v41 }
  0xa7   :  { %110 = vst [vmem:[%s301_s5] sm:$0xff] %v108_v43 }
  0xa8   :  { %v107_v45 = vadd.f32 %v148_v36, %v100_v44 }
  0xaa   :  { %v109_v46 = vmax.f32 %v107_v45, 0.0 }
  0xac   :  { %111 = vst [vmem:[%s301_s5 + $0x8] sm:$0x3f] %v109_v46 }

// kernel: a_call__.30
= control target key start
LH: loop header
LB: loop body
LE: loop exit
PB: predicated region body
PF: predicated region fallthrough
CT: control target
= control target key end

     0   :  { %s242_s9 = smov 0   ;;  %s270_s0 = inlined_call_operand.vmem [shape: f32[8,8], index: 0, kind: input, shape index: {}]   ;;  %s271_s1 = inlined_call_operand.vmem [shape: f32[2,8,80], index: 1, kind: input, shape index: {}]   ;;  %s272_s2 = inlined_call_operand.vmem [shape: f32[2,8,80], index: 2, kind: output, shape index: {}]  }
   0x1 LB: > { %s220_s10 = sadd.s32 4294967295, %s244_s9   ;;  %p224_p0 = scmp.ge.s32.totalorder %s244_s9, 1  ;;  %s244_s9 = sphi %s242_s9, %s12_s9  }
   0x2   : > { %p111_p1 = scmp.lt.s32.totalorder %s244_s9, 3 }
   0x4   : > { %p112_p2 = pnand %p224_p0, %p111_p1 }
   0x5   : > { %p131_p3 = scmp.lt.s32.totalorder (!%p112_p2), %s220_s10, 1 }
   0x6   : > { %115 = sbr.rel (%p112_p2) target bundleno = 143 (0x8f), region = 28 }
   0xb   : > { %s274_s10 = smov (!%p131_p3, %s220_s10), 1  ;;  %v139_v0 = vld [vmem:[%s270_s0] sm:$0xff]  ;;  %vm141_vm0 = vcmask 64512   ;;  %vm165_vm1 = vcmask 654336  }
   0xc   : > { %s225_s11 = sshll.u32 %s274_s10, 3 }
   0xd   : > { %s134_s14 = scalar_lea.vmem %s271_s1, %s225_s11  ;;  %s138_s19 = scalar_lea.vmem %s272_s2, %s225_s11 }
   0xe   : > { %v140_v1 = vld [vmem:[%s134_s14] sm:$0xff] }
   0xf   : > { %160 = vmatpush.msra.mxu0 %v140_v1 }
  0x10   : > { %227 = vmatmul.msk.f32.vlgmr.msra.gmra.mxu0 %vm141_vm0, %v139_v0 }
  0x8d   : > { %v162_v2 = vpop.f32.mrf.mxu0 }
  0x8e   : > { %166 = vst.msk [vmem:[%s138_s19] sm:$0xff] %vm165_vm1, %v162_v2 }
  0x8f PF: > { %s12_s9 = sadd.s32 1, %s244_s9  }
  0x90   : > { %p9_p4 = scmp.ge.s32.totalorder %s12_s9, 4  }
  0x92   :  { %11 = sbr.rel (!%p9_p4) target bundleno = 1 (0x1), region = 58 }

// kernel: a_call__.27
= control target key start
LH: loop header
LB: loop body
LE: loop exit
PB: predicated region body
PF: predicated region fallthrough
CT: control target
= control target key end

     0   :  { %s753_s2 = inlined_call_operand.vmem [shape: f32[128,256], index: 2, kind: input, shape index: {}]   ;;  %s754_s3 = inlined_call_operand.vmem [shape: f32[128,256], index: 3, kind: input, shape index: {}]   ;;  %s755_s0 = inlined_call_operand.vmem [shape: f32[10,128], index: 0, kind: input, shape index: {}]   ;;  %s756_s1 = inlined_call_operand.vmem [shape: f32[10,128], index: 1, kind: input, shape index: {}]   ;;  %s757_s5 = inlined_call_operand.vmem [shape: f32[128,256], index: 5, kind: input, shape index: {}]   ;;  %s758_s4 = inlined_call_operand.vmem [shape: f32[1,256], index: 4, kind: input, shape index: {}]   ;;  %s759_s7 = inlined_call_operand.vmem [shape: f32[10,128], index: 7, kind: output, shape index: {0}]   ;;  %s760_s6 = inlined_call_operand.vmem [shape: f32[1,256], index: 6, kind: input, shape index: {}]   ;;  %s761_s8 = inlined_call_operand.vmem [shape: f32[10,256], index: 8, kind: output, shape index: {1}]  }
   0x1   :  { %v61_v0 = vld [vmem:[%s753_s2 + $0xf8] sm:$0xff]  ;;  %v59_v1 = vld [vmem:[%s753_s2 + $0xe8] sm:$0xff]  ;;  %v60_v9 = vld [vmem:[%s753_s2 + $0xf0] sm:$0xff] }
   0x2   :  { %165 = vmatpush.msra.mxu3 %v61_v0  ;;  %v95_v2 = vld [vmem:[%s754_s3 + $0xf8] sm:$0xff]  ;;  %v93_v3 = vld [vmem:[%s754_s3 + $0xe8] sm:$0xff]  ;;  %142 = vmatpush.msra.mxu2 %v60_v9  ;;  %v58_v11 = vld [vmem:[%s753_s2 + $0xe0] sm:$0xff] }
   0x3   :  { %v57_v4 = vld [vmem:[%s753_s2 + $0xd8] sm:$0xff]  ;;  %119 = vmatpush.msra.mxu1 %v95_v2  ;;  %v55_v6 = vld [vmem:[%s753_s2 + $0xc8] sm:$0xff]  ;;  %v56_v13 = vld [vmem:[%s753_s2 + $0xd0] sm:$0xff] }
   0x4   :  { %166 = vmatpush.msra.mxu3 %v59_v1  ;;  %v91_v5 = vld [vmem:[%s754_s3 + $0xd8] sm:$0xff]  ;;  %v89_v7 = vld [vmem:[%s754_s3 + $0xc8] sm:$0xff]  ;;  %143 = vmatpush.msra.mxu2 %v58_v11  ;;  %v94_v15 = vld [vmem:[%s754_s3 + $0xf0] sm:$0xff] }
   0x5   :  { %120 = vmatpush.msra.mxu1 %v93_v3  ;;  %v53_v8 = vld [vmem:[%s753_s2 + $0xb8] sm:$0xff]  ;;  %v51_v12 = vld [vmem:[%s753_s2 + $0xa8] sm:$0xff]  ;;  %96 = vmatpush.msra.mxu0 %v94_v15  ;;  %v54_v17 = vld [vmem:[%s753_s2 + $0xc0] sm:$0xff] }
   0x6   :  { %167 = vmatpush.msra.mxu3 %v57_v4  ;;  %v87_v10 = vld [vmem:[%s754_s3 + $0xb8] sm:$0xff]  ;;  %v85_v14 = vld [vmem:[%s754_s3 + $0xa8] sm:$0xff]  ;;  %v92_v18 = vld [vmem:[%s754_s3 + $0xe0] sm:$0xff]  ;;  %144 = vmatpush.msra.mxu2 %v56_v13 }
   0x7   :  { %121 = vmatpush.msra.mxu1 %v91_v5  ;;  %v49_v16 = vld [vmem:[%s753_s2 + $0x98] sm:$0xff]  ;;  %v47_v20 = vld [vmem:[%s753_s2 + $0x88] sm:$0xff]  ;;  %97 = vmatpush.msra.mxu0 %v92_v18  ;;  %v52_v21 = vld [vmem:[%s753_s2 + $0xb0] sm:$0xff] }
   0x8   :  { %168 = vmatpush.msra.mxu3 %v55_v6  ;;  %v83_v19 = vld [vmem:[%s754_s3 + $0x98] sm:$0xff]  ;;  %v90_v22 = vld [vmem:[%s754_s3 + $0xd0] sm:$0xff]  ;;  %v81_v23 = vld [vmem:[%s754_s3 + $0x88] sm:$0xff]  ;;  %145 = vmatpush.msra.mxu2 %v54_v17 }
   0x9   :  { %122 = vmatpush.msra.mxu1 %v89_v7  ;;  %v88_v24 = vld [vmem:[%s754_s3 + $0xc0] sm:$0xff]  ;;  %v45_v25 = vld [vmem:[%s753_s2 + $0x78] sm:$0xff]  ;;  %98 = vmatpush.msra.mxu0 %v90_v22  ;;  %v86_v28 = vld [vmem:[%s754_s3 + $0xb0] sm:$0xff] }
   0xa   :  { %169 = vmatpush.msra.mxu3 %v53_v8  ;;  %v50_v26 = vld [vmem:[%s753_s2 + $0xa0] sm:$0xff]  ;;  %v79_v27 = vld [vmem:[%s754_s3 + $0x78] sm:$0xff]  ;;  %146 = vmatpush.msra.mxu2 %v52_v21  ;;  %v43_v29 = vld [vmem:[%s753_s2 + $0x68] sm:$0xff] }
   0xb   :  { %123 = vmatpush.msra.mxu1 %v87_v10  ;;  %99 = vmatpush.msra.mxu0 %v88_v24  ;;  %v48_v30 = vld [vmem:[%s753_s2 + $0x90] sm:$0xff]  ;;  %v77_v31 = vld [vmem:[%s754_s3 + $0x68] sm:$0xff]  ;;  %v84_v32 = vld [vmem:[%s754_s3 + $0xa0] sm:$0xff] }
   0xc   :  { %170 = vmatpush.msra.mxu3 %v51_v12  ;;  %147 = vmatpush.msra.mxu2 %v50_v26  ;;  %v41_v33 = vld [vmem:[%s753_s2 + $0x58] sm:$0xff]  ;;  %v46_v34 = vld [vmem:[%s753_s2 + $0x80] sm:$0xff]  ;;  %v82_v36 = vld [vmem:[%s754_s3 + $0x90] sm:$0xff] }
   0xd   :  { %124 = vmatpush.msra.mxu1 %v85_v14  ;;  %100 = vmatpush.msra.mxu0 %v86_v28  ;;  %v75_v35 = vld [vmem:[%s754_s3 + $0x58] sm:$0xff]  ;;  %v39_v37 = vld [vmem:[%s753_s2 + $0x48] sm:$0xff]  ;;  %v44_v38 = vld [vmem:[%s753_s2 + $0x70] sm:$0xff] }
   0xe   :  { %171 = vmatpush.msra.mxu3 %v49_v16  ;;  %148 = vmatpush.msra.mxu2 %v48_v30  ;;  %v73_v39 = vld [vmem:[%s754_s3 + $0x48] sm:$0xff]  ;;  %v80_v40 = vld [vmem:[%s754_s3 + $0x80] sm:$0xff]  ;;  %v37_v41 = vld [vmem:[%s753_s2 + $0x38] sm:$0xff] }
   0xf   :  { %125 = vmatpush.msra.mxu1 %v83_v19  ;;  %101 = vmatpush.msra.mxu0 %v84_v32  ;;  %v42_v42 = vld [vmem:[%s753_s2 + $0x60] sm:$0xff]  ;;  %v71_v43 = vld [vmem:[%s754_s3 + $0x38] sm:$0xff]  ;;  %v78_v44 = vld [vmem:[%s754_s3 + $0x70] sm:$0xff] }
  0x10   :  { %172 = vmatpush.msra.mxu3 %v47_v20  ;;  %149 = vmatpush.msra.mxu2 %v46_v34  ;;  %v35_v45 = vld [vmem:[%s753_s2 + $0x28] sm:$0xff]  ;;  %v40_v46 = vld [vmem:[%s753_s2 + $0x50] sm:$0xff]  ;;  %v76_v48 = vld [vmem:[%s754_s3 + $0x60] sm:$0xff] }
  0x11   :  { %126 = vmatpush.msra.mxu1 %v81_v23  ;;  %102 = vmatpush.msra.mxu0 %v82_v36  ;;  %v69_v47 = vld [vmem:[%s754_s3 + $0x28] sm:$0xff]  ;;  %v33_v49 = vld [vmem:[%s753_s2 + $0x18] sm:$0xff]  ;;  %v38_v50 = vld [vmem:[%s753_s2 + $0x40] sm:$0xff] }
  0x12   :  { %173 = vmatpush.msra.mxu3 %v45_v25  ;;  %150 = vmatpush.msra.mxu2 %v44_v38  ;;  %v67_v51 = vld [vmem:[%s754_s3 + $0x18] sm:$0xff]  ;;  %v74_v52 = vld [vmem:[%s754_s3 + $0x50] sm:$0xff]  ;;  %v31_v53 = vld [vmem:[%s753_s2 + $0x8] sm:$0xff] }
  0x13   :  { %127 = vmatpush.msra.mxu1 %v79_v27  ;;  %103 = vmatpush.msra.mxu0 %v80_v40  ;;  %v36_v54 = vld [vmem:[%s753_s2 + $0x30] sm:$0xff]  ;;  %v28_v55 = vld [vmem:[%s755_s0] sm:$0xff]  ;;  %v65_v56 = vld [vmem:[%s754_s3 + $0x8] sm:$0xff] }
  0x14   :  { %174 = vmatpush.msra.mxu3 %v43_v29  ;;  %151 = vmatpush.msra.mxu2 %v42_v42  ;;  %v62_v57 = vld [vmem:[%s756_s1] sm:$0xff]  ;;  %v32_v60 = vld [vmem:[%s753_s2 + $0x10] sm:$0xff]  ;;  %v29_v0 = vld [vmem:[%s755_s0 + $0x8] sm:$0x3] }
  0x15   :  { %128 = vmatpush.msra.mxu1 %v77_v31  ;;  %104 = vmatpush.msra.mxu0 %v78_v44  ;;  %v34_v58 = vld [vmem:[%s753_s2 + $0x20] sm:$0xff]  ;;  %v70_v61 = vld [vmem:[%s754_s3 + $0x30] sm:$0xff]  ;;  %v63_v2 = vld [vmem:[%s756_s1 + $0x8] sm:$0x3] }
  0x16   :  { %175 = vmatpush.msra.mxu3 %v41_v33  ;;  %152 = vmatpush.msra.mxu2 %v40_v46  ;;  %v72_v59 = vld [vmem:[%s754_s3 + $0x40] sm:$0xff]  ;;  %v66_v1 = vld [vmem:[%s754_s3 + $0x10] sm:$0xff]  ;;  %v273_v5 = vld [vmem:[%s757_s5 + $0xf8] sm:$0xff] }
  0x17   :  { %129 = vmatpush.msra.mxu1 %v75_v35  ;;  %105 = vmatpush.msra.mxu0 %v76_v48  ;;  %v30_v62 = vld [vmem:[%s753_s2] sm:$0xff]  ;;  %v272_v4 = vld [vmem:[%s757_s5 + $0xf0] sm:$0xff]  ;;  %v271_v7 = vld [vmem:[%s757_s5 + $0xe8] sm:$0xff] }
  0x18   :  { %176 = vmatpush.msra.mxu3 %v39_v37  ;;  %153 = vmatpush.msra.mxu2 %v38_v50  ;;  %v68_v63 = vld [vmem:[%s754_s3 + $0x20] sm:$0xff]  ;;  %v268_v8 = vld [vmem:[%s757_s5 + $0xd0] sm:$0xff]  ;;  %v269_v9 = vld [vmem:[%s757_s5 + $0xd8] sm:$0xff] }
  0x19   :  { %130 = vmatpush.msra.mxu1 %v73_v39  ;;  %106 = vmatpush.msra.mxu0 %v74_v52  ;;  %v64_v3 = vld [vmem:[%s754_s3] sm:$0xff]  ;;  %v267_v11 = vld [vmem:[%s757_s5 + $0xc8] sm:$0xff]  ;;  %v264_v12 = vld [vmem:[%s757_s5 + $0xb0] sm:$0xff] }
  0x1a   :  { %177 = vmatpush.msra.mxu3 %v37_v41  ;;  %154 = vmatpush.msra.mxu2 %v36_v54  ;;  %v270_v6 = vld [vmem:[%s757_s5 + $0xe0] sm:$0xff]  ;;  %v265_v13 = vld [vmem:[%s757_s5 + $0xb8] sm:$0xff]  ;;  %v263_v15 = vld [vmem:[%s757_s5 + $0xa8] sm:$0xff] }
  0x1b   :  { %131 = vmatpush.msra.mxu1 %v71_v43  ;;  %107 = vmatpush.msra.mxu0 %v72_v59  ;;  %v266_v10 = vld [vmem:[%s757_s5 + $0xc0] sm:$0xff]  ;;  %v260_v16 = vld [vmem:[%s757_s5 + $0x90] sm:$0xff]  ;;  %v261_v17 = vld [vmem:[%s757_s5 + $0x98] sm:$0xff] }
  0x1c   :  { %178 = vmatpush.msra.mxu3 %v35_v45  ;;  %155 = vmatpush.msra.mxu2 %v34_v58  ;;  %v262_v14 = vld [vmem:[%s757_s5 + $0xa0] sm:$0xff]  ;;  %v259_v19 = vld [vmem:[%s757_s5 + $0x88] sm:$0xff]  ;;  %v256_v20 = vld [vmem:[%s757_s5 + $0x70] sm:$0xff] }
  0x1d   :  { %132 = vmatpush.msra.mxu1 %v69_v47  ;;  %108 = vmatpush.msra.mxu0 %v70_v61  ;;  %v258_v18 = vld [vmem:[%s757_s5 + $0x80] sm:$0xff]  ;;  %v257_v21 = vld [vmem:[%s757_s5 + $0x78] sm:$0xff]  ;;  %v255_v23 = vld [vmem:[%s757_s5 + $0x68] sm:$0xff] }
  0x1e   :  { %179 = vmatpush.msra.mxu3 %v33_v49  ;;  %156 = vmatpush.msra.mxu2 %v32_v60  ;;  %v254_v22 = vld [vmem:[%s757_s5 + $0x60] sm:$0xff]  ;;  %v252_v24 = vld [vmem:[%s757_s5 + $0x50] sm:$0xff]  ;;  %v253_v25 = vld [vmem:[%s757_s5 + $0x58] sm:$0xff] }
  0x1f   :  { %133 = vmatpush.msra.mxu1 %v67_v51  ;;  %109 = vmatpush.msra.mxu0 %v68_v63  ;;  %v250_v26 = vld [vmem:[%s757_s5 + $0x40] sm:$0xff]  ;;  %v251_v27 = vld [vmem:[%s757_s5 + $0x48] sm:$0xff]  ;;  %v248_v28 = vld [vmem:[%s757_s5 + $0x30] sm:$0xff] }
  0x20   :  { %180 = vmatpush.msra.mxu3 %v31_v53  ;;  %157 = vmatpush.msra.mxu2 %v30_v62  ;;  %v249_v29 = vld [vmem:[%s757_s5 + $0x38] sm:$0xff]  ;;  %v246_v30 = vld [vmem:[%s757_s5 + $0x20] sm:$0xff]  ;;  %v247_v31 = vld [vmem:[%s757_s5 + $0x28] sm:$0xff] }
  0x21   :  { %181 = vmatmul.f32.vlgmr.msra.gmra.mxu3 %v28_v55  ;;  %134 = vmatpush.msra.mxu1 %v65_v56  ;;  %v188_v33 = vld [vmem:[%s758_s4] sm:$0x3]  ;;  %v244_v34 = vld [vmem:[%s757_s5 + $0x10] sm:$0xff]  ;;  %v245_v35 = vld [vmem:[%s757_s5 + $0x18] sm:$0xff] }
  0x22   :  { %135 = vmatmul.f32.vlgmr.msra.gmra.mxu1 %v62_v57  ;;  %158 = vmatmul.f32.vlgmr.msra.gmra.mxu2 %v28_v55  ;;  %v191_v36 = vperm.slane %v188_v33, 1  ;;  %v242_v37 = vld [vmem:[%s757_s5] sm:$0xff]  ;;  %v243_v38 = vld [vmem:[%s757_s5 + $0x8] sm:$0xff]  ;;  %v190_v53 = vperm.slane %v188_v33, 0 }
  0x23   :  { %110 = vmatpush.msra.mxu0 %v66_v1  ;;  %303 = vmatpush.msrb.mxu1 %v273_v5 }
  0x24   :  { %340 = vmatpush.msrb.mxu2 %v272_v4  ;;  %356 = vmatpush.msrb.mxu3 %v273_v5 }
  0x25   :  { %111 = vmatpush.msra.mxu0 %v64_v3  ;;  %304 = vmatpush.msrb.mxu1 %v271_v7 }
  0x26   :  { %112 = vmatmul.f32.vlgmr.msra.gmra.mxu0 %v62_v57  ;;  %341 = vmatpush.msrb.mxu2 %v270_v6 }
  0x27   :  { %280 = vmatpush.msrb.mxu0 %v272_v4  ;;  %357 = vmatpush.msrb.mxu3 %v271_v7 }
  0x28   :  { %305 = vmatpush.msrb.mxu1 %v269_v9  ;;  %342 = vmatpush.msrb.mxu2 %v268_v8 }
  0x29   :  { %184 = vmatmul.f32.gmra.mxu3 %v29_v0  ;;  %281 = vmatpush.msrb.mxu0 %v270_v6 }
  0x2a   :  { %138 = vmatmul.f32.gmra.mxu1 %v63_v2  ;;  %161 = vmatmul.f32.gmra.mxu2 %v29_v0 }
  0x2b   :  { %282 = vmatpush.msrb.mxu0 %v268_v8  ;;  %358 = vmatpush.msrb.mxu3 %v269_v9 }
  0x2c   :  { %306 = vmatpush.msrb.mxu1 %v267_v11  ;;  %343 = vmatpush.msrb.mxu2 %v266_v10 }
  0x2d   :  { %283 = vmatpush.msrb.mxu0 %v266_v10  ;;  %359 = vmatpush.msrb.mxu3 %v267_v11 }
  0x2e   :  { %115 = vmatmul.f32.gmra.mxu0 %v63_v2  ;;  %307 = vmatpush.msrb.mxu1 %v265_v13 }
  0x2f   :  { %284 = vmatpush.msrb.mxu0 %v264_v12  ;;  %344 = vmatpush.msrb.mxu2 %v264_v12 }
  0x30   :  { %360 = vmatpush.msrb.mxu3 %v265_v13  ;;  %308 = vmatpush.msrb.mxu1 %v263_v15 }
  0x31   :  { %285 = vmatpush.msrb.mxu0 %v262_v14  ;;  %345 = vmatpush.msrb.mxu2 %v262_v14 }
  0x32   :  { %361 = vmatpush.msrb.mxu3 %v263_v15  ;;  %309 = vmatpush.msrb.mxu1 %v261_v17 }
  0x33   :  { %286 = vmatpush.msrb.mxu0 %v260_v16  ;;  %346 = vmatpush.msrb.mxu2 %v260_v16 }
  0x34   :  { %362 = vmatpush.msrb.mxu3 %v261_v17  ;;  %310 = vmatpush.msrb.mxu1 %v259_v19 }
  0x35   :  { %287 = vmatpush.msrb.mxu0 %v258_v18  ;;  %347 = vmatpush.msrb.mxu2 %v258_v18 }
  0x36   :  { %363 = vmatpush.msrb.mxu3 %v259_v19  ;;  %311 = vmatpush.msrb.mxu1 %v257_v21 }
  0x37   :  { %288 = vmatpush.msrb.mxu0 %v256_v20  ;;  %348 = vmatpush.msrb.mxu2 %v256_v20 }
  0x38   :  { %364 = vmatpush.msrb.mxu3 %v257_v21  ;;  %312 = vmatpush.msrb.mxu1 %v255_v23  ;;  %v274_v21 = vld [vmem:[%s760_s6] sm:$0x3] }
  0x39   :  { %289 = vmatpush.msrb.mxu0 %v254_v22  ;;  %349 = vmatpush.msrb.mxu2 %v254_v22  ;;  %v276_v22 = vperm.slane %v274_v21, 0 }
  0x3a   :  { %365 = vmatpush.msrb.mxu3 %v255_v23  ;;  %313 = vmatpush.msrb.mxu1 %v253_v25  ;;  %v277_v23 = vperm.slane %v274_v21, 1 }
  0x3b   :  { %290 = vmatpush.msrb.mxu0 %v252_v24  ;;  %350 = vmatpush.msrb.mxu2 %v252_v24 }
  0x3c   :  { %366 = vmatpush.msrb.mxu3 %v253_v25  ;;  %314 = vmatpush.msrb.mxu1 %v251_v27 }
  0x3d   :  { %291 = vmatpush.msrb.mxu0 %v250_v26  ;;  %351 = vmatpush.msrb.mxu2 %v250_v26 }
  0x3e   :  { %367 = vmatpush.msrb.mxu3 %v251_v27  ;;  %315 = vmatpush.msrb.mxu1 %v249_v29 }
  0x3f   :  { %292 = vmatpush.msrb.mxu0 %v248_v28  ;;  %352 = vmatpush.msrb.mxu2 %v248_v28 }
  0x40   :  { %368 = vmatpush.msrb.mxu3 %v249_v29  ;;  %316 = vmatpush.msrb.mxu1 %v247_v31 }
  0x41   :  { %293 = vmatpush.msrb.mxu0 %v246_v30  ;;  %353 = vmatpush.msrb.mxu2 %v246_v30 }
  0x42   :  { %369 = vmatpush.msrb.mxu3 %v247_v31  ;;  %317 = vmatpush.msrb.mxu1 %v245_v35 }
  0x43   :  { %294 = vmatpush.msrb.mxu0 %v244_v34  ;;  %354 = vmatpush.msrb.mxu2 %v244_v34 }
  0x44   :  { %370 = vmatpush.msrb.mxu3 %v245_v35  ;;  %318 = vmatpush.msrb.mxu1 %v243_v38 }
  0x45   :  { %295 = vmatpush.msrb.mxu0 %v242_v37  ;;  %355 = vmatpush.msrb.mxu2 %v242_v37 }
  0x46   :  { %371 = vmatpush.msrb.mxu3 %v243_v38 }
  0x9f   :  { %v136_v32 = vpop.f32.mrf.mxu1 }
  0xa3   :  { %v113_v47 = vpop.f32.mrf.mxu0 }
  0xa4   :  { %v182_v39 = vpop.f32.mrf.mxu3 }
  0xa5   :  { %v183_v40 = vadd.f32 %v182_v39, %v136_v32  ;;  %v159_v48 = vpop.f32.mrf.mxu2 }
  0xa6   :  { %v160_v52 = vadd.f32 %v159_v48, %v113_v47 }
  0xa7   :  { %v195_v41 = vadd.f32 %v191_v36, %v183_v40  ;;  %v139_v43 = vpop.f32.mrf.mxu1 }
  0xa8   :  { %v194_v54 = vadd.f32 %v190_v53, %v160_v52 }
  0xa9   :  { %v338_v42 = vmul.f32 -1.442695, %v195_v41 }
  0xab   :  { %372 = vpow2.f32 %v338_v42  ;;  %v116_v56 = vpop.f32.mrf.mxu0 }
  0xac   :  { %v185_v44 = vpop.f32.mrf.mxu3 }
  0xad   :  { %v186_v45 = vadd.f32 %v185_v44, %v139_v43  ;;  %v162_v57 = vpop.f32.mrf.mxu2 }
  0xae   :  { %v163_v61 = vadd.f32 %v162_v57, %v116_v56 }
  0xaf   :  { %v197_v46 = vadd.f32 %v191_v36, %v186_v45 }
  0xb0   :  { %v196_v2 = vadd.f32 %v190_v53, %v163_v61 }
  0xb1   :  { %v373_v49 = vpop.eup %372  ;;  %v339_v50 = vmul.f32 -1.442695, %v197_v46 }
  0xb2   :  { %v206_v51 = vadd.f32 1.0, %v373_v49 }
  0xb3   :  { %374 = vpow2.f32 %v339_v50 }
  0xb4   :  { %376 = vrcp.f32 %v206_v51  ;;  %v219_v63 = vand.u32 2147483648, %v206_v51  ;;  %v217_v1 = vand.u32 2147483647, %v206_v51  ;;  %vm213_vm1 = vweird.f32 %v206_v51 }
  0xb5   :  { %378 = vtanh.f32 %v194_v54 }
  0xb6   :  { %v220_v6 = vor.u32 1.1754944e-38, %v219_v63  ;;  %vm218_vm3 = vcmp.eq.f32.partialorder %v217_v1, 8.507059e+37 }
  0xb9   :  { %v375_v55 = vpop.eup %374 }
  0xba   :  { %v377_v58 = vpop.eup %376  ;;  %v207_v59 = vadd.f32 1.0, %v375_v55 }
  0xbb   :  { %v209_v60 = vmul.f32 %v377_v58, %v206_v51  ;;  %vm214_vm0 = vweird.f32 %v377_v58  ;;  %v379_v3 = vpop.eup %378 }
  0xbc   :  { %380 = vrcp.f32 %v207_v59  ;;  %vm215_vm2 = vmor %vm213_vm1, %vm214_vm0  ;;  %v234_v12 = vand.u32 2147483648, %v207_v59  ;;  %v232_v14 = vand.u32 2147483647, %v207_v59  ;;  %vm228_vm5 = vweird.f32 %v207_v59 }
  0xbd   :  { %v210_v62 = vsub.f32 1.0, %v209_v60  ;;  %382 = vtanh.f32 %v196_v2 }
  0xbe   :  { %v235_v17 = vor.u32 1.1754944e-38, %v234_v12  ;;  %vm233_vm7 = vcmp.eq.f32.partialorder %v232_v14, 8.507059e+37 }
  0xbf   :  { %v211_v0 = vmul.f32 %v377_v58, %v210_v62 }
  0xc1   :  { %v212_v4 = vadd.f32 %v377_v58, %v211_v0 }
  0xc2   :  { %v381_v5 = vpop.eup %380 }
  0xc3   :  { %v216_v7 = vsel %vm215_vm2, %v377_v58, %v212_v4  ;;  %v224_v8 = vmul.f32 %v381_v5, %v207_v59  ;;  %vm229_vm4 = vweird.f32 %v381_v5  ;;  %v383_v16 = vpop.eup %382 }
  0xc4   :  { %v221_v9 = vsel %vm218_vm3, %v220_v6, %v216_v7  ;;  %vm230_vm6 = vmor %vm228_vm5, %vm229_vm4 }
  0xc5   :  { %v238_v10 = vmul.f32 %v379_v3, %v221_v9  ;;  %v225_v11 = vsub.f32 1.0, %v224_v8 }
  0xc7   :  { %240 = vst [vmem:[%s759_s7] sm:$0xff] %v238_v10  ;;  %296 = vmatmul.f32.vlgmr.msrb.gmra.mxu0 %v238_v10  ;;  %319 = vmatmul.f32.vlgmr.msrb.gmra.mxu1 %v238_v10  ;;  %v226_v13 = vmul.f32 %v381_v5, %v225_v11 }
  0xc9   :  { %v227_v15 = vadd.f32 %v381_v5, %v226_v13 }
  0xcb   :  { %v231_v18 = vsel %vm230_vm6, %v381_v5, %v227_v15 }
  0xcc   :  { %v236_v19 = vsel %vm233_vm7, %v235_v17, %v231_v18 }
  0xcd   :  { %v239_v20 = vmul.f32 %v383_v16, %v236_v19 }
  0xcf   :  { %241 = vst [vmem:[%s759_s7 + $0x8] sm:$0x3] %v239_v20  ;;  %299 = vmatmul.f32.vlgmr.msrb.gmra.mxu2 %v239_v20  ;;  %322 = vmatmul.f32.vlgmr.msrb.gmra.mxu3 %v239_v20 }
 0x144   :  { %v297_v24 = vpop.f32.mrf.mxu0  ;;  %v320_v25 = vpop.f32.mrf.mxu1 }
 0x145   :  { %v298_v26 = vadd.f32 %v297_v24, %v276_v22  ;;  %v321_v27 = vadd.f32 %v320_v25, %v277_v23 }
 0x147   :  { %326 = vst [vmem:[%s761_s8] sm:$0xff] %v298_v26 }
 0x148   :  { %327 = vst [vmem:[%s761_s8 + $0x8] sm:$0xff] %v321_v27 }
 0x152   :  { %v300_v28 = vpop.f32.mrf.mxu2  ;;  %v323_v29 = vpop.f32.mrf.mxu3 }
 0x153   :  { %v301_v30 = vadd.f32 %v300_v28, %v276_v22  ;;  %v324_v31 = vadd.f32 %v323_v29, %v277_v23 }
 0x155   :  { %328 = vst [vmem:[%s761_s8 + $0x10] sm:$0x3] %v301_v30 }
 0x156   :  { %329 = vst [vmem:[%s761_s8 + $0x18] sm:$0x3] %v324_v31 }

// kernel: a_call__.29
= control target key start
LH: loop header
LB: loop body
LE: loop exit
PB: predicated region body
PF: predicated region fallthrough
CT: control target
= control target key end

     0   :  { %s296_s3 = inlined_call_operand.vmem [shape: f32[128,128], index: 3, kind: input, shape index: {}]   ;;  %s297_s2 = inlined_call_operand.vmem [shape: f32[128,128], index: 2, kind: input, shape index: {}]   ;;  %s298_s1 = inlined_call_operand.vmem [shape: f32[10,128], index: 1, kind: input, shape index: {}]   ;;  %s299_s0 = inlined_call_operand.vmem [shape: f32[10,128], index: 0, kind: input, shape index: {}]   ;;  %s300_s4 = inlined_call_operand.vmem [shape: f32[1,128], index: 4, kind: input, shape index: {}]   ;;  %s301_s5 = inlined_call_operand.vmem [shape: f32[10,128], index: 5, kind: output, shape index: {}]  }
   0x1   :  { %v55_v0 = vld [vmem:[%s296_s3 + $0x78] sm:$0xff]  ;;  %v54_v2 = vld [vmem:[%s296_s3 + $0x70] sm:$0xff]  ;;  %v53_v4 = vld [vmem:[%s296_s3 + $0x68] sm:$0xff] }
   0x2   :  { %v37_v1 = vld [vmem:[%s297_s2 + $0x78] sm:$0xff]  ;;  %116 = vmatpush.msra.mxu2 %v55_v0  ;;  %v36_v3 = vld [vmem:[%s297_s2 + $0x70] sm:$0xff]  ;;  %v35_v5 = vld [vmem:[%s297_s2 + $0x68] sm:$0xff]  ;;  %56 = vmatpush.msra.mxu0 %v55_v0 }
   0x3   :  { %132 = vmatpush.msra.mxu3 %v37_v1  ;;  %79 = vmatpush.msra.mxu1 %v37_v1  ;;  %v52_v6 = vld [vmem:[%s296_s3 + $0x60] sm:$0xff]  ;;  %v51_v8 = vld [vmem:[%s296_s3 + $0x58] sm:$0xff]  ;;  %v50_v10 = vld [vmem:[%s296_s3 + $0x50] sm:$0xff] }
   0x4   :  { %117 = vmatpush.msra.mxu2 %v54_v2  ;;  %v34_v7 = vld [vmem:[%s297_s2 + $0x60] sm:$0xff]  ;;  %57 = vmatpush.msra.mxu0 %v54_v2  ;;  %v33_v9 = vld [vmem:[%s297_s2 + $0x58] sm:$0xff]  ;;  %v32_v11 = vld [vmem:[%s297_s2 + $0x50] sm:$0xff] }
   0x5   :  { %133 = vmatpush.msra.mxu3 %v36_v3  ;;  %80 = vmatpush.msra.mxu1 %v36_v3  ;;  %v49_v12 = vld [vmem:[%s296_s3 + $0x48] sm:$0xff]  ;;  %v48_v14 = vld [vmem:[%s296_s3 + $0x40] sm:$0xff]  ;;  %v47_v16 = vld [vmem:[%s296_s3 + $0x38] sm:$0xff] }
   0x6   :  { %118 = vmatpush.msra.mxu2 %v53_v4  ;;  %58 = vmatpush.msra.mxu0 %v53_v4  ;;  %v31_v13 = vld [vmem:[%s297_s2 + $0x48] sm:$0xff]  ;;  %v30_v15 = vld [vmem:[%s297_s2 + $0x40] sm:$0xff]  ;;  %v29_v17 = vld [vmem:[%s297_s2 + $0x38] sm:$0xff] }
   0x7   :  { %134 = vmatpush.msra.mxu3 %v35_v5  ;;  %81 = vmatpush.msra.mxu1 %v35_v5  ;;  %v46_v18 = vld [vmem:[%s296_s3 + $0x30] sm:$0xff]  ;;  %v45_v20 = vld [vmem:[%s296_s3 + $0x28] sm:$0xff]  ;;  %v44_v22 = vld [vmem:[%s296_s3 + $0x20] sm:$0xff] }
   0x8   :  { %119 = vmatpush.msra.mxu2 %v52_v6  ;;  %59 = vmatpush.msra.mxu0 %v52_v6  ;;  %v28_v19 = vld [vmem:[%s297_s2 + $0x30] sm:$0xff]  ;;  %v27_v21 = vld [vmem:[%s297_s2 + $0x28] sm:$0xff]  ;;  %v26_v23 = vld [vmem:[%s297_s2 + $0x20] sm:$0xff] }
   0x9   :  { %135 = vmatpush.msra.mxu3 %v34_v7  ;;  %82 = vmatpush.msra.mxu1 %v34_v7  ;;  %v43_v24 = vld [vmem:[%s296_s3 + $0x18] sm:$0xff]  ;;  %v42_v26 = vld [vmem:[%s296_s3 + $0x10] sm:$0xff]  ;;  %v41_v28 = vld [vmem:[%s296_s3 + $0x8] sm:$0xff] }
   0xa   :  { %120 = vmatpush.msra.mxu2 %v51_v8  ;;  %60 = vmatpush.msra.mxu0 %v51_v8  ;;  %v25_v25 = vld [vmem:[%s297_s2 + $0x18] sm:$0xff]  ;;  %v24_v27 = vld [vmem:[%s297_s2 + $0x10] sm:$0xff]  ;;  %v23_v29 = vld [vmem:[%s297_s2 + $0x8] sm:$0xff] }
   0xb   :  { %136 = vmatpush.msra.mxu3 %v33_v9  ;;  %83 = vmatpush.msra.mxu1 %v33_v9  ;;  %v40_v30 = vld [vmem:[%s296_s3] sm:$0xff]  ;;  %v39_v32 = vld [vmem:[%s298_s1 + $0x8] sm:$0x3] }
   0xc   :  { %121 = vmatpush.msra.mxu2 %v50_v10  ;;  %61 = vmatpush.msra.mxu0 %v50_v10  ;;  %v22_v31 = vld [vmem:[%s297_s2] sm:$0xff]  ;;  %v21_v33 = vld [vmem:[%s299_s0 + $0x8] sm:$0x3] }
   0xd   :  { %137 = vmatpush.msra.mxu3 %v32_v11  ;;  %84 = vmatpush.msra.mxu1 %v32_v11  ;;  %v38_v34 = vld [vmem:[%s298_s1] sm:$0xff] }
   0xe   :  { %122 = vmatpush.msra.mxu2 %v49_v12  ;;  %62 = vmatpush.msra.mxu0 %v49_v12  ;;  %v20_v35 = vld [vmem:[%s299_s0] sm:$0xff] }
   0xf   :  { %138 = vmatpush.msra.mxu3 %v31_v13  ;;  %85 = vmatpush.msra.mxu1 %v31_v13  ;;  %v148_v36 = vld [vmem:[%s300_s4] ss:$0 sm:$0xff] }
  0x10   :  { %123 = vmatpush.msra.mxu2 %v48_v14  ;;  %63 = vmatpush.msra.mxu0 %v48_v14 }
  0x11   :  { %139 = vmatpush.msra.mxu3 %v30_v15  ;;  %86 = vmatpush.msra.mxu1 %v30_v15 }
  0x12   :  { %124 = vmatpush.msra.mxu2 %v47_v16  ;;  %64 = vmatpush.msra.mxu0 %v47_v16 }
  0x13   :  { %140 = vmatpush.msra.mxu3 %v29_v17  ;;  %87 = vmatpush.msra.mxu1 %v29_v17 }
  0x14   :  { %125 = vmatpush.msra.mxu2 %v46_v18  ;;  %65 = vmatpush.msra.mxu0 %v46_v18 }
  0x15   :  { %141 = vmatpush.msra.mxu3 %v28_v19  ;;  %88 = vmatpush.msra.mxu1 %v28_v19 }
  0x16   :  { %126 = vmatpush.msra.mxu2 %v45_v20  ;;  %66 = vmatpush.msra.mxu0 %v45_v20 }
  0x17   :  { %142 = vmatpush.msra.mxu3 %v27_v21  ;;  %89 = vmatpush.msra.mxu1 %v27_v21 }
  0x18   :  { %127 = vmatpush.msra.mxu2 %v44_v22  ;;  %67 = vmatpush.msra.mxu0 %v44_v22 }
  0x19   :  { %143 = vmatpush.msra.mxu3 %v26_v23  ;;  %90 = vmatpush.msra.mxu1 %v26_v23 }
  0x1a   :  { %128 = vmatpush.msra.mxu2 %v43_v24  ;;  %68 = vmatpush.msra.mxu0 %v43_v24 }
  0x1b   :  { %144 = vmatpush.msra.mxu3 %v25_v25  ;;  %91 = vmatpush.msra.mxu1 %v25_v25 }
  0x1c   :  { %129 = vmatpush.msra.mxu2 %v42_v26  ;;  %69 = vmatpush.msra.mxu0 %v42_v26 }
  0x1d   :  { %145 = vmatpush.msra.mxu3 %v24_v27  ;;  %92 = vmatpush.msra.mxu1 %v24_v27 }
  0x1e   :  { %130 = vmatpush.msra.mxu2 %v41_v28  ;;  %70 = vmatpush.msra.mxu0 %v41_v28 }
  0x1f   :  { %146 = vmatpush.msra.mxu3 %v23_v29  ;;  %93 = vmatpush.msra.mxu1 %v23_v29 }
  0x20   :  { %131 = vmatpush.msra.mxu2 %v40_v30  ;;  %71 = vmatpush.msra.mxu0 %v40_v30 }
  0x21   :  { %147 = vmatpush.msra.mxu3 %v22_v31  ;;  %75 = vmatmul.f32.vlgmr.msra.gmra.mxu2 %v39_v32 }
  0x22   :  { %98 = vmatmul.f32.vlgmr.msra.gmra.mxu3 %v21_v33  ;;  %94 = vmatpush.msra.mxu1 %v22_v31 }
  0x23   :  { %72 = vmatmul.f32.vlgmr.msra.gmra.mxu0 %v38_v34  ;;  %95 = vmatmul.f32.vlgmr.msra.gmra.mxu1 %v20_v35 }
  0xa0   :  { %v73_v37 = vpop.f32.mrf.mxu0  ;;  %v96_v38 = vpop.f32.mrf.mxu1 }
  0xa1   :  { %v97_v39 = vadd.f32 %v96_v38, %v73_v37 }
  0xa3   :  { %v106_v40 = vadd.f32 %v148_v36, %v97_v39 }
  0xa4   :  { %v76_v41 = vpop.f32.mrf.mxu2 }
  0xa5   :  { %v99_v42 = vpop.f32.mrf.mxu3  ;;  %v108_v43 = vmax.f32 %v106_v40, 0.0 }
  0xa6   :  { %v100_v44 = vadd.f32 %v99_v42, %v76_v41 }
  0xa7   :  { %110 = vst [vmem:[%s301_s5] sm:$0xff] %v108_v43 }
  0xa8   :  { %v107_v45 = vadd.f32 %v148_v36, %v100_v44 }
  0xaa   :  { %v109_v46 = vmax.f32 %v107_v45, 0.0 }
  0xac   :  { %111 = vst [vmem:[%s301_s5 + $0x8] sm:$0x3] %v109_v46 }

// kernel: a_call__.28
= control target key start
LH: loop header
LB: loop body
LE: loop exit
PB: predicated region body
PF: predicated region fallthrough
CT: control target
= control target key end

     0   :  { %s497_s18 = smov 0   ;;  %s526_s0 = inlined_call_operand.vmem [shape: f32[8,8], index: 0, kind: input, shape index: {}]   ;;  %s527_s1 = inlined_call_operand.vmem [shape: f32[2,8,80], index: 1, kind: input, shape index: {}]   ;;  %s528_s2 = inlined_call_operand.vmem [shape: f32[2,8,160], index: 2, kind: input, shape index: {}]   ;;  %s529_s3 = inlined_call_operand.vmem [shape: f32[2,8,224], index: 3, kind: input, shape index: {}]   ;;  %s530_s4 = inlined_call_operand.vmem [shape: f32[2,8,80], index: 4, kind: output, shape index: {0}]   ;;  %s531_s5 = inlined_call_operand.vmem [shape: f32[2,8,160], index: 5, kind: output, shape index: {1}]  }
   0x1 LB: > { %s430_s19 = sadd.s32 4294967295, %s464_s18   ;;  %p434_p0 = scmp.ge.s32.totalorder %s464_s18, 1  ;;  %s464_s18 = sphi %s497_s18, %s16_s18  }
   0x2   : > { %p209_p1 = scmp.lt.s32.totalorder %s464_s18, 3 }
   0x4   : > { %p210_p2 = pnand %p434_p0, %p209_p1 }
   0x5   : > { %p250_p3 = scmp.lt.s32.totalorder (!%p210_p2), %s430_s19, 1  ;;  %s466_s30 = smov (!%p210_p2), 64  }
   0x6   : > { %213 = sbr.rel (%p210_p2) target bundleno = 144 (0x90), region = 36 }
   0xb   : > { %s533_s19 = smov (!%p250_p3, %s430_s19), 1  ;;  %v273_v0 = vld [vmem:[%s526_s0] sm:$0xff]  ;;  %vm275_vm0 = vcmask 64512   ;;  %vm311_vm1 = vcmask 523264   ;;  %vm318_vm2 = vcmask 261120   ;;  %vm299_vm3 = vcmask 654336  }
   0xc   : > { %s446_s20 = sshll.u32 %s533_s19, 4  ;;  %s435_s21 = sshll.u32 %s533_s19, 3 }
   0xd   : > { %s263_s24 = scalar_lea.vmem %s529_s3, %s446_s20  ;;  %s253_s27 = scalar_lea.vmem %s527_s1, %s435_s21 }
   0xe   : > { %v303_v1 = vld [vmem:[%s263_s24] sm:$0xff]  ;;  %v304_v3 = vld [vmem:[%s263_s24 + $0x8] sm:$0xff]  ;;  %s258_s8 = scalar_lea.vmem %s528_s2, %s446_s20  ;;  %s272_s11 = scalar_lea.vmem %s531_s5, %s446_s20 }
   0xf   : > { %v274_v2 = vld [vmem:[%s253_s27] sm:$0xff]  ;;  %307 = vrot.lane.b32.xlu0 %v303_v1, %s466_s30  ;;  %v302_v5 = vld [vmem:[%s258_s8 + $0x8] sm:$0xff]  ;;  %s267_s14 = scalar_lea.vmem %s530_s4, %s435_s21 }
  0x10   : > { %294 = vmatpush.msra.mxu0 %v274_v2  ;;  %v301_v6 = vld [vmem:[%s258_s8] sm:$0xff] }
  0x11   : > { %443 = vmatmul.msk.f32.vlgmr.msra.gmra.mxu0 %vm275_vm0, %v273_v0 }
  0x17   : > { %309 = vrot.lane.b32.xlu0 %v304_v3, %s466_s30 }
  0x81   : > { %v308_v4 = vpop.permute.xlu0 %307 }
  0x89   : > { %v310_v7 = vpop.permute.xlu0 %309 }
  0x8a   : > { %v312_v8 = vsel %vm311_vm1, %v308_v4, %v310_v7  ;;  %v316_v9 = vadd.f32 %v310_v7, %v302_v5 }
  0x8b   : > { %v315_v10 = vadd.f32 %v312_v8, %v301_v6 }
  0x8c   : > { %319 = vst.msk [vmem:[%s272_s11 + $0x8] sm:$0xff] %vm318_vm2, %v316_v9 }
  0x8d   : > { %317 = vst [vmem:[%s272_s11] sm:$0xff] %v315_v10 }
  0x8e   : > { %v296_v11 = vpop.f32.mrf.mxu0 }
  0x8f   : > { %300 = vst.msk [vmem:[%s267_s14] sm:$0xff] %vm299_vm3, %v296_v11 }
  0x90 PF: > { %s16_s18 = sadd.s32 1, %s464_s18  }
  0x91   : > { %p13_p4 = scmp.ge.s32.totalorder %s16_s18, 4  }
  0x93   :  { %15 = sbr.rel (!%p13_p4) target bundleno = 1 (0x1), region = 84 }

// kernel: a_call__.31
= control target key start
LH: loop header
LB: loop body
LE: loop exit
PB: predicated region body
PF: predicated region fallthrough
CT: control target
= control target key end

     0   :  { %s350_s4 = inlined_call_operand.vmem [shape: f32[128,128], index: 4, kind: input, shape index: {}]   ;;  %s351_s3 = inlined_call_operand.vmem [shape: f32[128,128], index: 3, kind: input, shape index: {}]   ;;  %s352_s1 = inlined_call_operand.vmem [shape: f32[10,128], index: 1, kind: input, shape index: {}]   ;;  %s353_s0 = inlined_call_operand.vmem [shape: f32[10,128], index: 0, kind: input, shape index: {}]   ;;  %s354_s5 = inlined_call_operand.vmem [shape: f32[1,128], index: 5, kind: input, shape index: {}]   ;;  %s355_s6 = inlined_call_operand.vmem [shape: f32[1,128], index: 6, kind: input, shape index: {}]   ;;  %s356_s7 = inlined_call_operand.vmem [shape: f32[1,128], index: 7, kind: input, shape index: {}]   ;;  %s357_s2 = inlined_call_operand.vmem [shape: f32[10,128], index: 2, kind: input, shape index: {}]   ;;  %s358_s8 = inlined_call_operand.vmem [shape: f32[10,128], index: 8, kind: output, shape index: {}]  }
   0x1   :  { %v64_v0 = vld [vmem:[%s350_s4 + $0x78] sm:$0xff]  ;;  %v63_v2 = vld [vmem:[%s350_s4 + $0x70] sm:$0xff]  ;;  %v62_v4 = vld [vmem:[%s350_s4 + $0x68] sm:$0xff] }
   0x2   :  { %v46_v1 = vld [vmem:[%s351_s3 + $0x78] sm:$0xff]  ;;  %141 = vmatpush.msra.mxu2 %v64_v0  ;;  %v45_v3 = vld [vmem:[%s351_s3 + $0x70] sm:$0xff]  ;;  %v44_v5 = vld [vmem:[%s351_s3 + $0x68] sm:$0xff]  ;;  %65 = vmatpush.msra.mxu0 %v64_v0 }
   0x3   :  { %157 = vmatpush.msra.mxu3 %v46_v1  ;;  %88 = vmatpush.msra.mxu1 %v46_v1  ;;  %v61_v6 = vld [vmem:[%s350_s4 + $0x60] sm:$0xff]  ;;  %v60_v8 = vld [vmem:[%s350_s4 + $0x58] sm:$0xff]  ;;  %v59_v10 = vld [vmem:[%s350_s4 + $0x50] sm:$0xff] }
   0x4   :  { %142 = vmatpush.msra.mxu2 %v63_v2  ;;  %v43_v7 = vld [vmem:[%s351_s3 + $0x60] sm:$0xff]  ;;  %66 = vmatpush.msra.mxu0 %v63_v2  ;;  %v42_v9 = vld [vmem:[%s351_s3 + $0x58] sm:$0xff]  ;;  %v41_v11 = vld [vmem:[%s351_s3 + $0x50] sm:$0xff] }
   0x5   :  { %158 = vmatpush.msra.mxu3 %v45_v3  ;;  %89 = vmatpush.msra.mxu1 %v45_v3  ;;  %v58_v12 = vld [vmem:[%s350_s4 + $0x48] sm:$0xff]  ;;  %v57_v14 = vld [vmem:[%s350_s4 + $0x40] sm:$0xff]  ;;  %v56_v16 = vld [vmem:[%s350_s4 + $0x38] sm:$0xff] }
   0x6   :  { %143 = vmatpush.msra.mxu2 %v62_v4  ;;  %67 = vmatpush.msra.mxu0 %v62_v4  ;;  %v40_v13 = vld [vmem:[%s351_s3 + $0x48] sm:$0xff]  ;;  %v39_v15 = vld [vmem:[%s351_s3 + $0x40] sm:$0xff]  ;;  %v38_v17 = vld [vmem:[%s351_s3 + $0x38] sm:$0xff] }
   0x7   :  { %159 = vmatpush.msra.mxu3 %v44_v5  ;;  %90 = vmatpush.msra.mxu1 %v44_v5  ;;  %v55_v18 = vld [vmem:[%s350_s4 + $0x30] sm:$0xff]  ;;  %v54_v20 = vld [vmem:[%s350_s4 + $0x28] sm:$0xff]  ;;  %v53_v22 = vld [vmem:[%s350_s4 + $0x20] sm:$0xff] }
   0x8   :  { %144 = vmatpush.msra.mxu2 %v61_v6  ;;  %68 = vmatpush.msra.mxu0 %v61_v6  ;;  %v37_v19 = vld [vmem:[%s351_s3 + $0x30] sm:$0xff]  ;;  %v36_v21 = vld [vmem:[%s351_s3 + $0x28] sm:$0xff]  ;;  %v35_v23 = vld [vmem:[%s351_s3 + $0x20] sm:$0xff] }
   0x9   :  { %160 = vmatpush.msra.mxu3 %v43_v7  ;;  %91 = vmatpush.msra.mxu1 %v43_v7  ;;  %v52_v24 = vld [vmem:[%s350_s4 + $0x18] sm:$0xff]  ;;  %v51_v26 = vld [vmem:[%s350_s4 + $0x10] sm:$0xff]  ;;  %v50_v28 = vld [vmem:[%s350_s4 + $0x8] sm:$0xff] }
   0xa   :  { %145 = vmatpush.msra.mxu2 %v60_v8  ;;  %69 = vmatpush.msra.mxu0 %v60_v8  ;;  %v34_v25 = vld [vmem:[%s351_s3 + $0x18] sm:$0xff]  ;;  %v33_v27 = vld [vmem:[%s351_s3 + $0x10] sm:$0xff]  ;;  %v32_v29 = vld [vmem:[%s351_s3 + $0x8] sm:$0xff] }
   0xb   :  { %161 = vmatpush.msra.mxu3 %v42_v9  ;;  %92 = vmatpush.msra.mxu1 %v42_v9  ;;  %v49_v30 = vld [vmem:[%s350_s4] sm:$0xff]  ;;  %v48_v32 = vld [vmem:[%s352_s1 + $0x8] sm:$0x3] }
   0xc   :  { %146 = vmatpush.msra.mxu2 %v59_v10  ;;  %70 = vmatpush.msra.mxu0 %v59_v10  ;;  %v31_v31 = vld [vmem:[%s351_s3] sm:$0xff]  ;;  %v30_v33 = vld [vmem:[%s353_s0 + $0x8] sm:$0x3] }
   0xd   :  { %162 = vmatpush.msra.mxu3 %v41_v11  ;;  %93 = vmatpush.msra.mxu1 %v41_v11  ;;  %v47_v34 = vld [vmem:[%s352_s1] sm:$0xff]  ;;  %v120_v50 = vld [vmem:[%s357_s2 + $0x8] sm:$0x3] }
   0xe   :  { %147 = vmatpush.msra.mxu2 %v58_v12  ;;  %71 = vmatpush.msra.mxu0 %v58_v12  ;;  %v29_v35 = vld [vmem:[%s353_s0] sm:$0xff] }
   0xf   :  { %163 = vmatpush.msra.mxu3 %v40_v13  ;;  %94 = vmatpush.msra.mxu1 %v40_v13  ;;  %v173_v36 = vld [vmem:[%s354_s5] ss:$0 sm:$0xff] }
  0x10   :  { %148 = vmatpush.msra.mxu2 %v57_v14  ;;  %72 = vmatpush.msra.mxu0 %v57_v14  ;;  %v119_v42 = vld [vmem:[%s357_s2] sm:$0xff] }
  0x11   :  { %164 = vmatpush.msra.mxu3 %v39_v15  ;;  %95 = vmatpush.msra.mxu1 %v39_v15  ;;  %v174_v45 = vld [vmem:[%s355_s6] ss:$0 sm:$0xff] }
  0x12   :  { %149 = vmatpush.msra.mxu2 %v56_v16  ;;  %73 = vmatpush.msra.mxu0 %v56_v16  ;;  %v175_v48 = vld [vmem:[%s356_s7] ss:$0 sm:$0xff] }
  0x13   :  { %165 = vmatpush.msra.mxu3 %v38_v17  ;;  %96 = vmatpush.msra.mxu1 %v38_v17 }
  0x14   :  { %150 = vmatpush.msra.mxu2 %v55_v18  ;;  %74 = vmatpush.msra.mxu0 %v55_v18 }
  0x15   :  { %166 = vmatpush.msra.mxu3 %v37_v19  ;;  %97 = vmatpush.msra.mxu1 %v37_v19 }
  0x16   :  { %151 = vmatpush.msra.mxu2 %v54_v20  ;;  %75 = vmatpush.msra.mxu0 %v54_v20 }
  0x17   :  { %167 = vmatpush.msra.mxu3 %v36_v21  ;;  %98 = vmatpush.msra.mxu1 %v36_v21 }
  0x18   :  { %152 = vmatpush.msra.mxu2 %v53_v22  ;;  %76 = vmatpush.msra.mxu0 %v53_v22 }
  0x19   :  { %168 = vmatpush.msra.mxu3 %v35_v23  ;;  %99 = vmatpush.msra.mxu1 %v35_v23 }
  0x1a   :  { %153 = vmatpush.msra.mxu2 %v52_v24  ;;  %77 = vmatpush.msra.mxu0 %v52_v24 }
  0x1b   :  { %169 = vmatpush.msra.mxu3 %v34_v25  ;;  %100 = vmatpush.msra.mxu1 %v34_v25 }
  0x1c   :  { %154 = vmatpush.msra.mxu2 %v51_v26  ;;  %78 = vmatpush.msra.mxu0 %v51_v26 }
  0x1d   :  { %170 = vmatpush.msra.mxu3 %v33_v27  ;;  %101 = vmatpush.msra.mxu1 %v33_v27 }
  0x1e   :  { %155 = vmatpush.msra.mxu2 %v50_v28  ;;  %79 = vmatpush.msra.mxu0 %v50_v28 }
  0x1f   :  { %171 = vmatpush.msra.mxu3 %v32_v29  ;;  %102 = vmatpush.msra.mxu1 %v32_v29 }
  0x20   :  { %156 = vmatpush.msra.mxu2 %v49_v30  ;;  %80 = vmatpush.msra.mxu0 %v49_v30 }
  0x21   :  { %172 = vmatpush.msra.mxu3 %v31_v31  ;;  %84 = vmatmul.f32.vlgmr.msra.gmra.mxu2 %v48_v32 }
  0x22   :  { %107 = vmatmul.f32.vlgmr.msra.gmra.mxu3 %v30_v33  ;;  %103 = vmatpush.msra.mxu1 %v31_v31 }
  0x23   :  { %81 = vmatmul.f32.vlgmr.msra.gmra.mxu0 %v47_v34  ;;  %104 = vmatmul.f32.vlgmr.msra.gmra.mxu1 %v29_v35 }
  0xa0   :  { %v82_v37 = vpop.f32.mrf.mxu0  ;;  %v105_v38 = vpop.f32.mrf.mxu1 }
  0xa1   :  { %v106_v39 = vadd.f32 %v105_v38, %v82_v37 }
  0xa3   :  { %v115_v40 = vadd.f32 %v173_v36, %v106_v39 }
  0xa4   :  { %v85_v41 = vpop.f32.mrf.mxu2 }
  0xa5   :  { %v108_v43 = vpop.f32.mrf.mxu3  ;;  %v117_v44 = vmax.f32 %v115_v40, 0.0 }
  0xa6   :  { %v109_v46 = vadd.f32 %v108_v43, %v85_v41 }
  0xa7   :  { %v121_v47 = vadd.f32 %v119_v42, %v117_v44 }
  0xa8   :  { %v116_v49 = vadd.f32 %v173_v36, %v109_v46 }
  0xa9   :  { %v127_v51 = vmul.f32 %v174_v45, %v121_v47 }
  0xaa   :  { %v118_v52 = vmax.f32 %v116_v49, 0.0 }
  0xab   :  { %v133_v53 = vadd.f32 %v175_v48, %v127_v51 }
  0xac   :  { %v122_v54 = vadd.f32 %v120_v50, %v118_v52 }
  0xad   :  { %135 = vst [vmem:[%s358_s8] sm:$0xff] %v133_v53 }
  0xae   :  { %v128_v55 = vmul.f32 %v174_v45, %v122_v54 }
  0xb0   :  { %v134_v56 = vadd.f32 %v175_v48, %v128_v55 }
  0xb2   :  { %136 = vst [vmem:[%s358_s8 + $0x8] sm:$0x3] %v134_v56 }

// kernel: a_call__.32
= control target key start
LH: loop header
LB: loop body
LE: loop exit
PB: predicated region body
PF: predicated region fallthrough
CT: control target
= control target key end

     0   :  { %s653_s2 = inlined_call_operand.vmem [shape: f32[128,256], index: 2, kind: input, shape index: {}]   ;;  %s654_s3 = inlined_call_operand.vmem [shape: f32[128,256], index: 3, kind: input, shape index: {}]   ;;  %s655_s0 = inlined_call_operand.vmem [shape: f32[8,128], index: 0, kind: input, shape index: {}]   ;;  %s656_s1 = inlined_call_operand.vmem [shape: f32[8,128], index: 1, kind: input, shape index: {}]   ;;  %s657_s5 = inlined_call_operand.vmem [shape: f32[128,256], index: 5, kind: input, shape index: {}]   ;;  %s658_s4 = inlined_call_operand.vmem [shape: f32[1,256], index: 4, kind: input, shape index: {}]   ;;  %s659_s7 = inlined_call_operand.vmem [shape: f32[8,128], index: 7, kind: output, shape index: {0}]   ;;  %s660_s6 = inlined_call_operand.vmem [shape: f32[1,256], index: 6, kind: input, shape index: {}]   ;;  %s661_s8 = inlined_call_operand.vmem [shape: f32[8,256], index: 8, kind: output, shape index: {1}]  }
   0x1   :  { %v60_v0 = vld [vmem:[%s653_s2 + $0xf8] sm:$0xff]  ;;  %v58_v1 = vld [vmem:[%s653_s2 + $0xe8] sm:$0xff]  ;;  %v59_v9 = vld [vmem:[%s653_s2 + $0xf0] sm:$0xff] }
   0x2   :  { %154 = vmatpush.msra.mxu3 %v60_v0  ;;  %v93_v2 = vld [vmem:[%s654_s3 + $0xf8] sm:$0xff]  ;;  %v91_v3 = vld [vmem:[%s654_s3 + $0xe8] sm:$0xff]  ;;  %134 = vmatpush.msra.mxu2 %v59_v9  ;;  %v57_v11 = vld [vmem:[%s653_s2 + $0xe0] sm:$0xff] }
   0x3   :  { %v56_v4 = vld [vmem:[%s653_s2 + $0xd8] sm:$0xff]  ;;  %114 = vmatpush.msra.mxu1 %v93_v2  ;;  %v54_v6 = vld [vmem:[%s653_s2 + $0xc8] sm:$0xff]  ;;  %v55_v13 = vld [vmem:[%s653_s2 + $0xd0] sm:$0xff] }
   0x4   :  { %155 = vmatpush.msra.mxu3 %v58_v1  ;;  %v89_v5 = vld [vmem:[%s654_s3 + $0xd8] sm:$0xff]  ;;  %v87_v7 = vld [vmem:[%s654_s3 + $0xc8] sm:$0xff]  ;;  %135 = vmatpush.msra.mxu2 %v57_v11  ;;  %v92_v15 = vld [vmem:[%s654_s3 + $0xf0] sm:$0xff] }
   0x5   :  { %115 = vmatpush.msra.mxu1 %v91_v3  ;;  %v52_v8 = vld [vmem:[%s653_s2 + $0xb8] sm:$0xff]  ;;  %v50_v12 = vld [vmem:[%s653_s2 + $0xa8] sm:$0xff]  ;;  %94 = vmatpush.msra.mxu0 %v92_v15  ;;  %v53_v17 = vld [vmem:[%s653_s2 + $0xc0] sm:$0xff] }
   0x6   :  { %156 = vmatpush.msra.mxu3 %v56_v4  ;;  %v85_v10 = vld [vmem:[%s654_s3 + $0xb8] sm:$0xff]  ;;  %v83_v14 = vld [vmem:[%s654_s3 + $0xa8] sm:$0xff]  ;;  %v90_v18 = vld [vmem:[%s654_s3 + $0xe0] sm:$0xff]  ;;  %136 = vmatpush.msra.mxu2 %v55_v13 }
   0x7   :  { %116 = vmatpush.msra.mxu1 %v89_v5  ;;  %v48_v16 = vld [vmem:[%s653_s2 + $0x98] sm:$0xff]  ;;  %v46_v20 = vld [vmem:[%s653_s2 + $0x88] sm:$0xff]  ;;  %95 = vmatpush.msra.mxu0 %v90_v18  ;;  %v51_v21 = vld [vmem:[%s653_s2 + $0xb0] sm:$0xff] }
   0x8   :  { %157 = vmatpush.msra.mxu3 %v54_v6  ;;  %v81_v19 = vld [vmem:[%s654_s3 + $0x98] sm:$0xff]  ;;  %v88_v22 = vld [vmem:[%s654_s3 + $0xd0] sm:$0xff]  ;;  %v79_v23 = vld [vmem:[%s654_s3 + $0x88] sm:$0xff]  ;;  %137 = vmatpush.msra.mxu2 %v53_v17 }
   0x9   :  { %117 = vmatpush.msra.mxu1 %v87_v7  ;;  %v86_v24 = vld [vmem:[%s654_s3 + $0xc0] sm:$0xff]  ;;  %v44_v25 = vld [vmem:[%s653_s2 + $0x78] sm:$0xff]  ;;  %96 = vmatpush.msra.mxu0 %v88_v22  ;;  %v84_v28 = vld [vmem:[%s654_s3 + $0xb0] sm:$0xff] }
   0xa   :  { %158 = vmatpush.msra.mxu3 %v52_v8  ;;  %v49_v26 = vld [vmem:[%s653_s2 + $0xa0] sm:$0xff]  ;;  %v77_v27 = vld [vmem:[%s654_s3 + $0x78] sm:$0xff]  ;;  %138 = vmatpush.msra.mxu2 %v51_v21  ;;  %v42_v29 = vld [vmem:[%s653_s2 + $0x68] sm:$0xff] }
   0xb   :  { %118 = vmatpush.msra.mxu1 %v85_v10  ;;  %97 = vmatpush.msra.mxu0 %v86_v24  ;;  %v47_v30 = vld [vmem:[%s653_s2 + $0x90] sm:$0xff]  ;;  %v75_v31 = vld [vmem:[%s654_s3 + $0x68] sm:$0xff]  ;;  %v82_v32 = vld [vmem:[%s654_s3 + $0xa0] sm:$0xff] }
   0xc   :  { %159 = vmatpush.msra.mxu3 %v50_v12  ;;  %139 = vmatpush.msra.mxu2 %v49_v26  ;;  %v40_v33 = vld [vmem:[%s653_s2 + $0x58] sm:$0xff]  ;;  %v45_v34 = vld [vmem:[%s653_s2 + $0x80] sm:$0xff]  ;;  %v80_v36 = vld [vmem:[%s654_s3 + $0x90] sm:$0xff] }
   0xd   :  { %119 = vmatpush.msra.mxu1 %v83_v14  ;;  %98 = vmatpush.msra.mxu0 %v84_v28  ;;  %v73_v35 = vld [vmem:[%s654_s3 + $0x58] sm:$0xff]  ;;  %v38_v37 = vld [vmem:[%s653_s2 + $0x48] sm:$0xff]  ;;  %v43_v38 = vld [vmem:[%s653_s2 + $0x70] sm:$0xff] }
   0xe   :  { %160 = vmatpush.msra.mxu3 %v48_v16  ;;  %140 = vmatpush.msra.mxu2 %v47_v30  ;;  %v71_v39 = vld [vmem:[%s654_s3 + $0x48] sm:$0xff]  ;;  %v78_v40 = vld [vmem:[%s654_s3 + $0x80] sm:$0xff]  ;;  %v36_v41 = vld [vmem:[%s653_s2 + $0x38] sm:$0xff] }
   0xf   :  { %120 = vmatpush.msra.mxu1 %v81_v19  ;;  %99 = vmatpush.msra.mxu0 %v82_v32  ;;  %v41_v42 = vld [vmem:[%s653_s2 + $0x60] sm:$0xff]  ;;  %v69_v43 = vld [vmem:[%s654_s3 + $0x38] sm:$0xff]  ;;  %v76_v44 = vld [vmem:[%s654_s3 + $0x70] sm:$0xff] }
  0x10   :  { %161 = vmatpush.msra.mxu3 %v46_v20  ;;  %141 = vmatpush.msra.mxu2 %v45_v34  ;;  %v34_v45 = vld [vmem:[%s653_s2 + $0x28] sm:$0xff]  ;;  %v39_v46 = vld [vmem:[%s653_s2 + $0x50] sm:$0xff]  ;;  %v74_v48 = vld [vmem:[%s654_s3 + $0x60] sm:$0xff] }
  0x11   :  { %121 = vmatpush.msra.mxu1 %v79_v23  ;;  %100 = vmatpush.msra.mxu0 %v80_v36  ;;  %v67_v47 = vld [vmem:[%s654_s3 + $0x28] sm:$0xff]  ;;  %v32_v49 = vld [vmem:[%s653_s2 + $0x18] sm:$0xff]  ;;  %v37_v50 = vld [vmem:[%s653_s2 + $0x40] sm:$0xff] }
  0x12   :  { %162 = vmatpush.msra.mxu3 %v44_v25  ;;  %142 = vmatpush.msra.mxu2 %v43_v38  ;;  %v65_v51 = vld [vmem:[%s654_s3 + $0x18] sm:$0xff]  ;;  %v72_v52 = vld [vmem:[%s654_s3 + $0x50] sm:$0xff]  ;;  %v30_v53 = vld [vmem:[%s653_s2 + $0x8] sm:$0xff] }
  0x13   :  { %122 = vmatpush.msra.mxu1 %v77_v27  ;;  %101 = vmatpush.msra.mxu0 %v78_v40  ;;  %v35_v54 = vld [vmem:[%s653_s2 + $0x30] sm:$0xff]  ;;  %v28_v55 = vld [vmem:[%s655_s0] sm:$0xff]  ;;  %v63_v56 = vld [vmem:[%s654_s3 + $0x8] sm:$0xff] }
  0x14   :  { %163 = vmatpush.msra.mxu3 %v42_v29  ;;  %143 = vmatpush.msra.mxu2 %v41_v42  ;;  %v61_v57 = vld [vmem:[%s656_s1] sm:$0xff]  ;;  %v31_v60 = vld [vmem:[%s653_s2 + $0x10] sm:$0xff]  ;;  %v235_v3 = vld [vmem:[%s657_s5 + $0xf8] sm:$0xff] }
  0x15   :  { %123 = vmatpush.msra.mxu1 %v75_v31  ;;  %102 = vmatpush.msra.mxu0 %v76_v44  ;;  %v33_v58 = vld [vmem:[%s653_s2 + $0x20] sm:$0xff]  ;;  %v68_v61 = vld [vmem:[%s654_s3 + $0x30] sm:$0xff]  ;;  %v233_v5 = vld [vmem:[%s657_s5 + $0xe8] sm:$0xff] }
  0x16   :  { %164 = vmatpush.msra.mxu3 %v40_v33  ;;  %144 = vmatpush.msra.mxu2 %v39_v46  ;;  %v70_v59 = vld [vmem:[%s654_s3 + $0x40] sm:$0xff]  ;;  %v64_v0 = vld [vmem:[%s654_s3 + $0x10] sm:$0xff]  ;;  %v231_v7 = vld [vmem:[%s657_s5 + $0xd8] sm:$0xff] }
  0x17   :  { %124 = vmatpush.msra.mxu1 %v73_v35  ;;  %103 = vmatpush.msra.mxu0 %v74_v48  ;;  %v29_v62 = vld [vmem:[%s653_s2] sm:$0xff]  ;;  %v234_v2 = vld [vmem:[%s657_s5 + $0xf0] sm:$0xff]  ;;  %v229_v9 = vld [vmem:[%s657_s5 + $0xc8] sm:$0xff] }
  0x18   :  { %165 = vmatpush.msra.mxu3 %v38_v37  ;;  %145 = vmatpush.msra.mxu2 %v37_v50  ;;  %v66_v63 = vld [vmem:[%s654_s3 + $0x20] sm:$0xff]  ;;  %v230_v6 = vld [vmem:[%s657_s5 + $0xd0] sm:$0xff]  ;;  %v227_v11 = vld [vmem:[%s657_s5 + $0xb8] sm:$0xff] }
  0x19   :  { %125 = vmatpush.msra.mxu1 %v71_v39  ;;  %104 = vmatpush.msra.mxu0 %v72_v52  ;;  %v62_v1 = vld [vmem:[%s654_s3] sm:$0xff]  ;;  %v226_v10 = vld [vmem:[%s657_s5 + $0xb0] sm:$0xff]  ;;  %v225_v13 = vld [vmem:[%s657_s5 + $0xa8] sm:$0xff] }
  0x1a   :  { %166 = vmatpush.msra.mxu3 %v36_v41  ;;  %146 = vmatpush.msra.mxu2 %v35_v54  ;;  %v232_v4 = vld [vmem:[%s657_s5 + $0xe0] sm:$0xff]  ;;  %v222_v14 = vld [vmem:[%s657_s5 + $0x90] sm:$0xff]  ;;  %v223_v15 = vld [vmem:[%s657_s5 + $0x98] sm:$0xff] }
  0x1b   :  { %126 = vmatpush.msra.mxu1 %v69_v43  ;;  %105 = vmatpush.msra.mxu0 %v70_v59  ;;  %v228_v8 = vld [vmem:[%s657_s5 + $0xc0] sm:$0xff]  ;;  %v221_v17 = vld [vmem:[%s657_s5 + $0x88] sm:$0xff]  ;;  %v218_v18 = vld [vmem:[%s657_s5 + $0x70] sm:$0xff] }
  0x1c   :  { %167 = vmatpush.msra.mxu3 %v34_v45  ;;  %147 = vmatpush.msra.mxu2 %v33_v58  ;;  %v224_v12 = vld [vmem:[%s657_s5 + $0xa0] sm:$0xff]  ;;  %v219_v19 = vld [vmem:[%s657_s5 + $0x78] sm:$0xff]  ;;  %v217_v21 = vld [vmem:[%s657_s5 + $0x68] sm:$0xff] }
  0x1d   :  { %127 = vmatpush.msra.mxu1 %v67_v47  ;;  %106 = vmatpush.msra.mxu0 %v68_v61  ;;  %v220_v16 = vld [vmem:[%s657_s5 + $0x80] sm:$0xff]  ;;  %v214_v22 = vld [vmem:[%s657_s5 + $0x50] sm:$0xff]  ;;  %v215_v23 = vld [vmem:[%s657_s5 + $0x58] sm:$0xff] }
  0x1e   :  { %168 = vmatpush.msra.mxu3 %v32_v49  ;;  %148 = vmatpush.msra.mxu2 %v31_v60  ;;  %v216_v20 = vld [vmem:[%s657_s5 + $0x60] sm:$0xff]  ;;  %v213_v25 = vld [vmem:[%s657_s5 + $0x48] sm:$0xff]  ;;  %v210_v26 = vld [vmem:[%s657_s5 + $0x30] sm:$0xff] }
  0x1f   :  { %128 = vmatpush.msra.mxu1 %v65_v51  ;;  %107 = vmatpush.msra.mxu0 %v66_v63  ;;  %v212_v24 = vld [vmem:[%s657_s5 + $0x40] sm:$0xff]  ;;  %v211_v27 = vld [vmem:[%s657_s5 + $0x38] sm:$0xff]  ;;  %v209_v29 = vld [vmem:[%s657_s5 + $0x28] sm:$0xff] }
  0x20   :  { %169 = vmatpush.msra.mxu3 %v30_v53  ;;  %149 = vmatpush.msra.mxu2 %v29_v62  ;;  %v208_v28 = vld [vmem:[%s657_s5 + $0x20] sm:$0xff]  ;;  %v206_v31 = vld [vmem:[%s657_s5 + $0x10] sm:$0xff]  ;;  %v207_v32 = vld [vmem:[%s657_s5 + $0x18] sm:$0xff] }
  0x21   :  { %170 = vmatmul.f32.vlgmr.msra.gmra.mxu3 %v28_v55  ;;  %129 = vmatpush.msra.mxu1 %v63_v56  ;;  %v174_v30 = vld [vmem:[%s658_s4] sm:$0x3]  ;;  %v205_v36 = vld [vmem:[%s657_s5 + $0x8] sm:$0xff] }
  0x22   :  { %130 = vmatmul.f32.vlgmr.msra.gmra.mxu1 %v61_v57  ;;  %150 = vmatmul.f32.vlgmr.msra.gmra.mxu2 %v28_v55  ;;  %v177_v34 = vperm.slane %v174_v30, 1  ;;  %v204_v35 = vld [vmem:[%s657_s5] sm:$0xff]  ;;  %v176_v46 = vperm.slane %v174_v30, 0 }
  0x23   :  { %108 = vmatpush.msra.mxu0 %v64_v0  ;;  %262 = vmatpush.msrb.mxu1 %v235_v3  ;;  %v236_v60 = vld [vmem:[%s660_s6] sm:$0x3] }
  0x24   :  { %v238_v61 = vperm.slane %v236_v60, 0  ;;  %v239_v62 = vperm.slane %v236_v60, 1 }
  0x25   :  { %109 = vmatpush.msra.mxu0 %v62_v1  ;;  %263 = vmatpush.msrb.mxu1 %v233_v5 }
  0x26   :  { %110 = vmatmul.f32.vlgmr.msra.gmra.mxu0 %v61_v57 }
  0x27   :  { %242 = vmatpush.msrb.mxu0 %v234_v2  ;;  %264 = vmatpush.msrb.mxu1 %v231_v7 }
  0x29   :  { %243 = vmatpush.msrb.mxu0 %v232_v4  ;;  %265 = vmatpush.msrb.mxu1 %v229_v9 }
  0x2b   :  { %244 = vmatpush.msrb.mxu0 %v230_v6  ;;  %266 = vmatpush.msrb.mxu1 %v227_v11 }
  0x2d   :  { %245 = vmatpush.msrb.mxu0 %v228_v8  ;;  %267 = vmatpush.msrb.mxu1 %v225_v13 }
  0x2f   :  { %246 = vmatpush.msrb.mxu0 %v226_v10  ;;  %268 = vmatpush.msrb.mxu1 %v223_v15 }
  0x31   :  { %247 = vmatpush.msrb.mxu0 %v224_v12  ;;  %269 = vmatpush.msrb.mxu1 %v221_v17 }
  0x33   :  { %248 = vmatpush.msrb.mxu0 %v222_v14  ;;  %270 = vmatpush.msrb.mxu1 %v219_v19 }
  0x35   :  { %249 = vmatpush.msrb.mxu0 %v220_v16  ;;  %271 = vmatpush.msrb.mxu1 %v217_v21 }
  0x37   :  { %250 = vmatpush.msrb.mxu0 %v218_v18  ;;  %272 = vmatpush.msrb.mxu1 %v215_v23 }
  0x39   :  { %251 = vmatpush.msrb.mxu0 %v216_v20  ;;  %273 = vmatpush.msrb.mxu1 %v213_v25 }
  0x3b   :  { %252 = vmatpush.msrb.mxu0 %v214_v22  ;;  %274 = vmatpush.msrb.mxu1 %v211_v27 }
  0x3d   :  { %253 = vmatpush.msrb.mxu0 %v212_v24  ;;  %275 = vmatpush.msrb.mxu1 %v209_v29 }
  0x3f   :  { %254 = vmatpush.msrb.mxu0 %v210_v26  ;;  %276 = vmatpush.msrb.mxu1 %v207_v32 }
  0x41   :  { %255 = vmatpush.msrb.mxu0 %v208_v28  ;;  %277 = vmatpush.msrb.mxu1 %v205_v36 }
  0x43   :  { %256 = vmatpush.msrb.mxu0 %v206_v31 }
  0x45   :  { %257 = vmatpush.msrb.mxu0 %v204_v35 }
  0x9f   :  { %v131_v33 = vpop.f32.mrf.mxu1 }
  0xa3   :  { %v111_v42 = vpop.f32.mrf.mxu0 }
  0xa4   :  { %v171_v37 = vpop.f32.mrf.mxu3 }
  0xa5   :  { %v172_v38 = vadd.f32 %v171_v37, %v131_v33  ;;  %v151_v43 = vpop.f32.mrf.mxu2 }
  0xa6   :  { %v152_v45 = vadd.f32 %v151_v43, %v111_v42 }
  0xa7   :  { %v181_v39 = vadd.f32 %v177_v34, %v172_v38 }
  0xa8   :  { %v180_v47 = vadd.f32 %v176_v46, %v152_v45 }
  0xa9   :  { %v292_v40 = vmul.f32 -1.442695, %v181_v39 }
  0xab   :  { %293 = vpow2.f32 %v292_v40 }
  0xb1   :  { %v294_v41 = vpop.eup %293 }
  0xb2   :  { %v186_v44 = vadd.f32 1.0, %v294_v41 }
  0xb4   :  { %295 = vrcp.f32 %v186_v44  ;;  %v198_v51 = vand.u32 2147483648, %v186_v44  ;;  %v196_v53 = vand.u32 2147483647, %v186_v44  ;;  %vm192_vm1 = vweird.f32 %v186_v44 }
  0xb5   :  { %297 = vtanh.f32 %v180_v47 }
  0xb6   :  { %v199_v56 = vor.u32 1.1754944e-38, %v198_v51  ;;  %vm197_vm3 = vcmp.eq.f32.partialorder %v196_v53, 8.507059e+37 }
  0xba   :  { %v296_v48 = vpop.eup %295 }
  0xbb   :  { %v188_v49 = vmul.f32 %v296_v48, %v186_v44  ;;  %vm193_vm0 = vweird.f32 %v296_v48  ;;  %v298_v55 = vpop.eup %297 }
  0xbc   :  { %vm194_vm2 = vmor %vm192_vm1, %vm193_vm0 }
  0xbd   :  { %v189_v50 = vsub.f32 1.0, %v188_v49 }
  0xbf   :  { %v190_v52 = vmul.f32 %v296_v48, %v189_v50 }
  0xc1   :  { %v191_v54 = vadd.f32 %v296_v48, %v190_v52 }
  0xc3   :  { %v195_v57 = vsel %vm194_vm2, %v296_v48, %v191_v54 }
  0xc4   :  { %v200_v58 = vsel %vm197_vm3, %v199_v56, %v195_v57 }
  0xc5   :  { %v202_v59 = vmul.f32 %v298_v55, %v200_v58 }
  0xc7   :  { %203 = vst [vmem:[%s659_s7] sm:$0xff] %v202_v59  ;;  %258 = vmatmul.f32.vlgmr.msrb.gmra.mxu0 %v202_v59  ;;  %278 = vmatmul.f32.vlgmr.msrb.gmra.mxu1 %v202_v59 }
 0x144   :  { %v259_v63 = vpop.f32.mrf.mxu0  ;;  %v279_v0 = vpop.f32.mrf.mxu1 }
 0x145   :  { %v260_v1 = vadd.f32 %v259_v63, %v238_v61  ;;  %v280_v2 = vadd.f32 %v279_v0, %v239_v62 }
 0x147   :  { %282 = vst [vmem:[%s661_s8] sm:$0xff] %v260_v1 }
 0x148   :  { %283 = vst [vmem:[%s661_s8 + $0x8] sm:$0xff] %v280_v2 }

// kernel: a_call__.33
= control target key start
LH: loop header
LB: loop body
LE: loop exit
PB: predicated region body
PF: predicated region fallthrough
CT: control target
= control target key end

     0   :  { %s481_s18 = smov 0   ;;  %s510_s0 = inlined_call_operand.vmem [shape: f32[8,8], index: 0, kind: input, shape index: {}]   ;;  %s511_s1 = inlined_call_operand.vmem [shape: f32[2,8,64], index: 1, kind: input, shape index: {}]   ;;  %s512_s2 = inlined_call_operand.vmem [shape: f32[2,8,128], index: 2, kind: input, shape index: {}]   ;;  %s513_s3 = inlined_call_operand.vmem [shape: f32[2,8,160], index: 3, kind: input, shape index: {}]   ;;  %s514_s4 = inlined_call_operand.vmem [shape: f32[2,8,64], index: 4, kind: output, shape index: {0}]   ;;  %s515_s5 = inlined_call_operand.vmem [shape: f32[2,8,128], index: 5, kind: output, shape index: {1}]  }
   0x1 LB: > { %s418_s19 = sadd.s32 4294967295, %s448_s18   ;;  %p422_p0 = scmp.ge.s32.totalorder %s448_s18, 1  ;;  %s448_s18 = sphi %s481_s18, %s16_s18  }
   0x2   : > { %p208_p1 = scmp.lt.s32.totalorder %s448_s18, 3 }
   0x4   : > { %p209_p2 = pnand %p422_p0, %p208_p1 }
   0x5   : > { %p247_p3 = scmp.lt.s32.totalorder (!%p209_p2), %s418_s19, 1  ;;  %s450_s30 = smov (!%p209_p2), 96  }
   0x6   : > { %212 = sbr.rel (%p209_p2) target bundleno = 144 (0x90), region = 36 }
   0xb   : > { %s517_s19 = smov (!%p247_p3, %s418_s19), 1  ;;  %v268_v0 = vld [vmem:[%s510_s0] sm:$0xff]  ;;  %vm270_vm0 = vcmask 64512   ;;  %vm305_vm1 = vcmask 785408   ;;  %vm294_vm2 = vcmask 523264  }
   0xc   : > { %s432_s20 = sshll.u32 %s517_s19, 4  ;;  %s423_s21 = sshll.u32 %s517_s19, 3 }
   0xd   : > { %s259_s24 = scalar_lea.vmem %s513_s3, %s432_s20  ;;  %s250_s27 = scalar_lea.vmem %s511_s1, %s423_s21 }
   0xe   : > { %v297_v1 = vld [vmem:[%s259_s24] sm:$0xff]  ;;  %v298_v3 = vld [vmem:[%s259_s24 + $0x8] sm:$0xff]  ;;  %s254_s8 = scalar_lea.vmem %s512_s2, %s423_s21  ;;  %s267_s11 = scalar_lea.vmem %s515_s5, %s423_s21 }
   0xf   : > { %v269_v2 = vld [vmem:[%s250_s27] sm:$0xff]  ;;  %301 = vrot.lane.b32.xlu0 %v297_v1, %s450_s30  ;;  %s263_s14 = scalar_lea.vmem %s514_s4, %s423_s21 }
  0x10   : > { %289 = vmatpush.msra.mxu0 %v269_v2  ;;  %v296_v5 = vld [vmem:[%s254_s8] sm:$0xff] }
  0x11   : > { %429 = vmatmul.msk.f32.vlgmr.msra.gmra.mxu0 %vm270_vm0, %v268_v0 }
  0x17   : > { %303 = vrot.lane.b32.xlu0 %v298_v3, %s450_s30 }
  0x81   : > { %v302_v4 = vpop.permute.xlu0 %301 }
  0x89   : > { %v304_v6 = vpop.permute.xlu0 %303 }
  0x8a   : > { %v306_v7 = vsel %vm305_vm1, %v302_v4, %v304_v6 }
  0x8b   : > { %v308_v8 = vadd.f32 %v306_v7, %v296_v5 }
  0x8d   : > { %309 = vst [vmem:[%s267_s11] sm:$0xff] %v308_v8 }
  0x8e   : > { %v291_v9 = vpop.f32.mrf.mxu0 }
  0x8f   : > { %295 = vst.msk [vmem:[%s263_s14] sm:$0xff] %vm294_vm2, %v291_v9 }
  0x90 PF: > { %s16_s18 = sadd.s32 1, %s448_s18  }
  0x91   : > { %p13_p4 = scmp.ge.s32.totalorder %s16_s18, 4  }
  0x93   :  { %15 = sbr.rel (!%p13_p4) target bundleno = 1 (0x1), region = 84 }

// kernel: a_call__.34
= control target key start
LH: loop header
LB: loop body
LE: loop exit
PB: predicated region body
PF: predicated region fallthrough
CT: control target
= control target key end

     0   :  { %s244_s3 = inlined_call_operand.vmem [shape: f32[128,128], index: 3, kind: input, shape index: {}]   ;;  %s245_s2 = inlined_call_operand.vmem [shape: f32[128,128], index: 2, kind: input, shape index: {}]   ;;  %s246_s1 = inlined_call_operand.vmem [shape: f32[8,128], index: 1, kind: input, shape index: {}]   ;;  %s247_s0 = inlined_call_operand.vmem [shape: f32[8,128], index: 0, kind: input, shape index: {}]   ;;  %s248_s4 = inlined_call_operand.vmem [shape: f32[1,128], index: 4, kind: input, shape index: {}]   ;;  %s249_s5 = inlined_call_operand.vmem [shape: f32[8,128], index: 5, kind: output, shape index: {}]  }
   0x1   :  { %v53_v0 = vld [vmem:[%s244_s3 + $0x78] sm:$0xff]  ;;  %v52_v2 = vld [vmem:[%s244_s3 + $0x70] sm:$0xff]  ;;  %v51_v4 = vld [vmem:[%s244_s3 + $0x68] sm:$0xff] }
   0x2   :  { %v36_v1 = vld [vmem:[%s245_s2 + $0x78] sm:$0xff]  ;;  %54 = vmatpush.msra.mxu0 %v53_v0  ;;  %v35_v3 = vld [vmem:[%s245_s2 + $0x70] sm:$0xff]  ;;  %v34_v5 = vld [vmem:[%s245_s2 + $0x68] sm:$0xff] }
   0x3   :  { %74 = vmatpush.msra.mxu1 %v36_v1  ;;  %v50_v6 = vld [vmem:[%s244_s3 + $0x60] sm:$0xff]  ;;  %v49_v8 = vld [vmem:[%s244_s3 + $0x58] sm:$0xff]  ;;  %v48_v10 = vld [vmem:[%s244_s3 + $0x50] sm:$0xff] }
   0x4   :  { %55 = vmatpush.msra.mxu0 %v52_v2  ;;  %v33_v7 = vld [vmem:[%s245_s2 + $0x60] sm:$0xff]  ;;  %v32_v9 = vld [vmem:[%s245_s2 + $0x58] sm:$0xff]  ;;  %v31_v11 = vld [vmem:[%s245_s2 + $0x50] sm:$0xff] }
   0x5   :  { %75 = vmatpush.msra.mxu1 %v35_v3  ;;  %v47_v12 = vld [vmem:[%s244_s3 + $0x48] sm:$0xff]  ;;  %v46_v14 = vld [vmem:[%s244_s3 + $0x40] sm:$0xff]  ;;  %v45_v16 = vld [vmem:[%s244_s3 + $0x38] sm:$0xff] }
   0x6   :  { %56 = vmatpush.msra.mxu0 %v51_v4  ;;  %v30_v13 = vld [vmem:[%s245_s2 + $0x48] sm:$0xff]  ;;  %v29_v15 = vld [vmem:[%s245_s2 + $0x40] sm:$0xff]  ;;  %v28_v17 = vld [vmem:[%s245_s2 + $0x38] sm:$0xff] }
   0x7   :  { %76 = vmatpush.msra.mxu1 %v34_v5  ;;  %v44_v18 = vld [vmem:[%s244_s3 + $0x30] sm:$0xff]  ;;  %v43_v20 = vld [vmem:[%s244_s3 + $0x28] sm:$0xff]  ;;  %v42_v22 = vld [vmem:[%s244_s3 + $0x20] sm:$0xff] }
   0x8   :  { %57 = vmatpush.msra.mxu0 %v50_v6  ;;  %v27_v19 = vld [vmem:[%s245_s2 + $0x30] sm:$0xff]  ;;  %v26_v21 = vld [vmem:[%s245_s2 + $0x28] sm:$0xff]  ;;  %v25_v23 = vld [vmem:[%s245_s2 + $0x20] sm:$0xff] }
   0x9   :  { %77 = vmatpush.msra.mxu1 %v33_v7  ;;  %v41_v24 = vld [vmem:[%s244_s3 + $0x18] sm:$0xff]  ;;  %v40_v26 = vld [vmem:[%s244_s3 + $0x10] sm:$0xff]  ;;  %v39_v28 = vld [vmem:[%s244_s3 + $0x8] sm:$0xff] }
   0xa   :  { %58 = vmatpush.msra.mxu0 %v49_v8  ;;  %v24_v25 = vld [vmem:[%s245_s2 + $0x18] sm:$0xff]  ;;  %v23_v27 = vld [vmem:[%s245_s2 + $0x10] sm:$0xff]  ;;  %v22_v29 = vld [vmem:[%s245_s2 + $0x8] sm:$0xff] }
   0xb   :  { %78 = vmatpush.msra.mxu1 %v32_v9  ;;  %v38_v30 = vld [vmem:[%s244_s3] sm:$0xff] }
   0xc   :  { %59 = vmatpush.msra.mxu0 %v48_v10  ;;  %v21_v31 = vld [vmem:[%s245_s2] sm:$0xff] }
   0xd   :  { %79 = vmatpush.msra.mxu1 %v31_v11  ;;  %v37_v32 = vld [vmem:[%s246_s1] sm:$0xff] }
   0xe   :  { %60 = vmatpush.msra.mxu0 %v47_v12  ;;  %v20_v33 = vld [vmem:[%s247_s0] sm:$0xff] }
   0xf   :  { %80 = vmatpush.msra.mxu1 %v30_v13  ;;  %v105_v34 = vld [vmem:[%s248_s4] ss:$0 sm:$0xff] }
  0x10   :  { %61 = vmatpush.msra.mxu0 %v46_v14 }
  0x11   :  { %81 = vmatpush.msra.mxu1 %v29_v15 }
  0x12   :  { %62 = vmatpush.msra.mxu0 %v45_v16 }
  0x13   :  { %82 = vmatpush.msra.mxu1 %v28_v17 }
  0x14   :  { %63 = vmatpush.msra.mxu0 %v44_v18 }
  0x15   :  { %83 = vmatpush.msra.mxu1 %v27_v19 }
  0x16   :  { %64 = vmatpush.msra.mxu0 %v43_v20 }
  0x17   :  { %84 = vmatpush.msra.mxu1 %v26_v21 }
  0x18   :  { %65 = vmatpush.msra.mxu0 %v42_v22 }
  0x19   :  { %85 = vmatpush.msra.mxu1 %v25_v23 }
  0x1a   :  { %66 = vmatpush.msra.mxu0 %v41_v24 }
  0x1b   :  { %86 = vmatpush.msra.mxu1 %v24_v25 }
  0x1c   :  { %67 = vmatpush.msra.mxu0 %v40_v26 }
  0x1d   :  { %87 = vmatpush.msra.mxu1 %v23_v27 }
  0x1e   :  { %68 = vmatpush.msra.mxu0 %v39_v28 }
  0x1f   :  { %88 = vmatpush.msra.mxu1 %v22_v29 }
  0x20   :  { %69 = vmatpush.msra.mxu0 %v38_v30 }
  0x21   :  { %89 = vmatpush.msra.mxu1 %v21_v31  ;;  %70 = vmatmul.f32.vlgmr.msra.gmra.mxu0 %v37_v32 }
  0x22   :  { %90 = vmatmul.f32.vlgmr.msra.gmra.mxu1 %v20_v33 }
  0x9e   :  { %v71_v35 = vpop.f32.mrf.mxu0 }
  0x9f   :  { %v91_v36 = vpop.f32.mrf.mxu1 }
  0xa0   :  { %v92_v37 = vadd.f32 %v91_v36, %v71_v35 }
  0xa2   :  { %v98_v38 = vadd.f32 %v105_v34, %v92_v37 }
  0xa4   :  { %v99_v39 = vmax.f32 %v98_v38, 0.0 }
  0xa6   :  { %100 = vst [vmem:[%s249_s5] sm:$0xff] %v99_v39 }

// kernel: a_call__.36
= control target key start
LH: loop header
LB: loop body
LE: loop exit
PB: predicated region body
PF: predicated region fallthrough
CT: control target
= control target key end

     0   :  { %s291_s4 = inlined_call_operand.vmem [shape: f32[128,128], index: 4, kind: input, shape index: {}]   ;;  %s292_s3 = inlined_call_operand.vmem [shape: f32[128,128], index: 3, kind: input, shape index: {}]   ;;  %s293_s1 = inlined_call_operand.vmem [shape: f32[8,128], index: 1, kind: input, shape index: {}]   ;;  %s294_s0 = inlined_call_operand.vmem [shape: f32[8,128], index: 0, kind: input, shape index: {}]   ;;  %s295_s5 = inlined_call_operand.vmem [shape: f32[1,128], index: 5, kind: input, shape index: {}]   ;;  %s296_s6 = inlined_call_operand.vmem [shape: f32[1,128], index: 6, kind: input, shape index: {}]   ;;  %s297_s7 = inlined_call_operand.vmem [shape: f32[1,128], index: 7, kind: input, shape index: {}]   ;;  %s298_s2 = inlined_call_operand.vmem [shape: f32[8,128], index: 2, kind: input, shape index: {}]   ;;  %s299_s8 = inlined_call_operand.vmem [shape: f32[8,128], index: 8, kind: output, shape index: {}]  }
   0x1   :  { %v62_v0 = vld [vmem:[%s291_s4 + $0x78] sm:$0xff]  ;;  %v61_v2 = vld [vmem:[%s291_s4 + $0x70] sm:$0xff]  ;;  %v60_v4 = vld [vmem:[%s291_s4 + $0x68] sm:$0xff] }
   0x2   :  { %v45_v1 = vld [vmem:[%s292_s3 + $0x78] sm:$0xff]  ;;  %63 = vmatpush.msra.mxu0 %v62_v0  ;;  %v44_v3 = vld [vmem:[%s292_s3 + $0x70] sm:$0xff]  ;;  %v43_v5 = vld [vmem:[%s292_s3 + $0x68] sm:$0xff] }
   0x3   :  { %83 = vmatpush.msra.mxu1 %v45_v1  ;;  %v59_v6 = vld [vmem:[%s291_s4 + $0x60] sm:$0xff]  ;;  %v58_v8 = vld [vmem:[%s291_s4 + $0x58] sm:$0xff]  ;;  %v57_v10 = vld [vmem:[%s291_s4 + $0x50] sm:$0xff] }
   0x4   :  { %64 = vmatpush.msra.mxu0 %v61_v2  ;;  %v42_v7 = vld [vmem:[%s292_s3 + $0x60] sm:$0xff]  ;;  %v41_v9 = vld [vmem:[%s292_s3 + $0x58] sm:$0xff]  ;;  %v40_v11 = vld [vmem:[%s292_s3 + $0x50] sm:$0xff] }
   0x5   :  { %84 = vmatpush.msra.mxu1 %v44_v3  ;;  %v56_v12 = vld [vmem:[%s291_s4 + $0x48] sm:$0xff]  ;;  %v55_v14 = vld [vmem:[%s291_s4 + $0x40] sm:$0xff]  ;;  %v54_v16 = vld [vmem:[%s291_s4 + $0x38] sm:$0xff] }
   0x6   :  { %65 = vmatpush.msra.mxu0 %v60_v4  ;;  %v39_v13 = vld [vmem:[%s292_s3 + $0x48] sm:$0xff]  ;;  %v38_v15 = vld [vmem:[%s292_s3 + $0x40] sm:$0xff]  ;;  %v37_v17 = vld [vmem:[%s292_s3 + $0x38] sm:$0xff] }
   0x7   :  { %85 = vmatpush.msra.mxu1 %v43_v5  ;;  %v53_v18 = vld [vmem:[%s291_s4 + $0x30] sm:$0xff]  ;;  %v52_v20 = vld [vmem:[%s291_s4 + $0x28] sm:$0xff]  ;;  %v51_v22 = vld [vmem:[%s291_s4 + $0x20] sm:$0xff] }
   0x8   :  { %66 = vmatpush.msra.mxu0 %v59_v6  ;;  %v36_v19 = vld [vmem:[%s292_s3 + $0x30] sm:$0xff]  ;;  %v35_v21 = vld [vmem:[%s292_s3 + $0x28] sm:$0xff]  ;;  %v34_v23 = vld [vmem:[%s292_s3 + $0x20] sm:$0xff] }
   0x9   :  { %86 = vmatpush.msra.mxu1 %v42_v7  ;;  %v50_v24 = vld [vmem:[%s291_s4 + $0x18] sm:$0xff]  ;;  %v49_v26 = vld [vmem:[%s291_s4 + $0x10] sm:$0xff]  ;;  %v48_v28 = vld [vmem:[%s291_s4 + $0x8] sm:$0xff] }
   0xa   :  { %67 = vmatpush.msra.mxu0 %v58_v8  ;;  %v33_v25 = vld [vmem:[%s292_s3 + $0x18] sm:$0xff]  ;;  %v32_v27 = vld [vmem:[%s292_s3 + $0x10] sm:$0xff]  ;;  %v31_v29 = vld [vmem:[%s292_s3 + $0x8] sm:$0xff] }
   0xb   :  { %87 = vmatpush.msra.mxu1 %v41_v9  ;;  %v47_v30 = vld [vmem:[%s291_s4] sm:$0xff] }
   0xc   :  { %68 = vmatpush.msra.mxu0 %v57_v10  ;;  %v30_v31 = vld [vmem:[%s292_s3] sm:$0xff] }
   0xd   :  { %88 = vmatpush.msra.mxu1 %v40_v11  ;;  %v46_v32 = vld [vmem:[%s293_s1] sm:$0xff] }
   0xe   :  { %69 = vmatpush.msra.mxu0 %v56_v12  ;;  %v29_v33 = vld [vmem:[%s294_s0] sm:$0xff] }
   0xf   :  { %89 = vmatpush.msra.mxu1 %v39_v13  ;;  %v126_v34 = vld [vmem:[%s295_s5] ss:$0 sm:$0xff] }
  0x10   :  { %70 = vmatpush.msra.mxu0 %v55_v14  ;;  %v109_v39 = vld [vmem:[%s298_s2] sm:$0xff] }
  0x11   :  { %90 = vmatpush.msra.mxu1 %v38_v15  ;;  %v127_v41 = vld [vmem:[%s296_s6] ss:$0 sm:$0xff] }
  0x12   :  { %71 = vmatpush.msra.mxu0 %v54_v16  ;;  %v128_v43 = vld [vmem:[%s297_s7] ss:$0 sm:$0xff] }
  0x13   :  { %91 = vmatpush.msra.mxu1 %v37_v17 }
  0x14   :  { %72 = vmatpush.msra.mxu0 %v53_v18 }
  0x15   :  { %92 = vmatpush.msra.mxu1 %v36_v19 }
  0x16   :  { %73 = vmatpush.msra.mxu0 %v52_v20 }
  0x17   :  { %93 = vmatpush.msra.mxu1 %v35_v21 }
  0x18   :  { %74 = vmatpush.msra.mxu0 %v51_v22 }
  0x19   :  { %94 = vmatpush.msra.mxu1 %v34_v23 }
  0x1a   :  { %75 = vmatpush.msra.mxu0 %v50_v24 }
  0x1b   :  { %95 = vmatpush.msra.mxu1 %v33_v25 }
  0x1c   :  { %76 = vmatpush.msra.mxu0 %v49_v26 }
  0x1d   :  { %96 = vmatpush.msra.mxu1 %v32_v27 }
  0x1e   :  { %77 = vmatpush.msra.mxu0 %v48_v28 }
  0x1f   :  { %97 = vmatpush.msra.mxu1 %v31_v29 }
  0x20   :  { %78 = vmatpush.msra.mxu0 %v47_v30 }
  0x21   :  { %98 = vmatpush.msra.mxu1 %v30_v31  ;;  %79 = vmatmul.f32.vlgmr.msra.gmra.mxu0 %v46_v32 }
  0x22   :  { %99 = vmatmul.f32.vlgmr.msra.gmra.mxu1 %v29_v33 }
  0x9e   :  { %v80_v35 = vpop.f32.mrf.mxu0 }
  0x9f   :  { %v100_v36 = vpop.f32.mrf.mxu1 }
  0xa0   :  { %v101_v37 = vadd.f32 %v100_v36, %v80_v35 }
  0xa2   :  { %v107_v38 = vadd.f32 %v126_v34, %v101_v37 }
  0xa4   :  { %v108_v40 = vmax.f32 %v107_v38, 0.0 }
  0xa6   :  { %v110_v42 = vadd.f32 %v109_v39, %v108_v40 }
  0xa8   :  { %v115_v44 = vmul.f32 %v127_v41, %v110_v42 }
  0xaa   :  { %v120_v45 = vadd.f32 %v128_v43, %v115_v44 }
  0xac   :  { %121 = vst [vmem:[%s299_s8] sm:$0xff] %v120_v45 }

// kernel: a_call__.35
= control target key start
LH: loop header
LB: loop body
LE: loop exit
PB: predicated region body
PF: predicated region fallthrough
CT: control target
= control target key end

     0   :  { %s242_s9 = smov 0   ;;  %s270_s0 = inlined_call_operand.vmem [shape: f32[8,8], index: 0, kind: input, shape index: {}]   ;;  %s271_s1 = inlined_call_operand.vmem [shape: f32[2,8,64], index: 1, kind: input, shape index: {}]   ;;  %s272_s2 = inlined_call_operand.vmem [shape: f32[2,8,64], index: 2, kind: output, shape index: {}]  }
   0x1 LB: > { %s220_s10 = sadd.s32 4294967295, %s244_s9   ;;  %p224_p0 = scmp.ge.s32.totalorder %s244_s9, 1  ;;  %s244_s9 = sphi %s242_s9, %s12_s9  }
   0x2   : > { %p111_p1 = scmp.lt.s32.totalorder %s244_s9, 3 }
   0x4   : > { %p112_p2 = pnand %p224_p0, %p111_p1 }
   0x5   : > { %p131_p3 = scmp.lt.s32.totalorder (!%p112_p2), %s220_s10, 1 }
   0x6   : > { %115 = sbr.rel (%p112_p2) target bundleno = 143 (0x8f), region = 28 }
   0xb   : > { %s274_s10 = smov (!%p131_p3, %s220_s10), 1  ;;  %v139_v0 = vld [vmem:[%s270_s0] sm:$0xff]  ;;  %vm141_vm0 = vcmask 64512   ;;  %vm165_vm1 = vcmask 523264  }
   0xc   : > { %s225_s11 = sshll.u32 %s274_s10, 3 }
   0xd   : > { %s134_s14 = scalar_lea.vmem %s271_s1, %s225_s11  ;;  %s138_s19 = scalar_lea.vmem %s272_s2, %s225_s11 }
   0xe   : > { %v140_v1 = vld [vmem:[%s134_s14] sm:$0xff] }
   0xf   : > { %160 = vmatpush.msra.mxu0 %v140_v1 }
  0x10   : > { %227 = vmatmul.msk.f32.vlgmr.msra.gmra.mxu0 %vm141_vm0, %v139_v0 }
  0x8d   : > { %v162_v2 = vpop.f32.mrf.mxu0 }
  0x8e   : > { %166 = vst.msk [vmem:[%s138_s19] sm:$0xff] %vm165_vm1, %v162_v2 }
  0x8f PF: > { %s12_s9 = sadd.s32 1, %s244_s9  }
  0x90   : > { %p9_p4 = scmp.ge.s32.totalorder %s12_s9, 4  }
  0x92   :  { %11 = sbr.rel (!%p9_p4) target bundleno = 1 (0x1), region = 58 }

// kernel: a_call__.38
= control target key start
LH: loop header
LB: loop body
LE: loop exit
PB: predicated region body
PF: predicated region fallthrough
CT: control target
= control target key end

     0   :  { %11 = vsyncpa [#allocation3], 0  ;;  %s678_s0 = inlined_call_operand.vmem [shape: f32[8,8], index: 0, kind: input, shape index: {}]   ;;  %s679_s1 = inlined_call_operand.vmem [shape: f32[2,8,32], index: 1, kind: input, shape index: {}]   ;;  %s680_s2 = inlined_call_operand.vmem [shape: f32[2,8,64], index: 2, kind: input, shape index: {}]   ;;  %s681_s3 = inlined_call_operand.vmem [shape: f32[2,8,128], index: 3, kind: input, shape index: {}]   ;;  %s682_s4 = inlined_call_operand.hbm [shape: f32[2,8,32], index: 4, kind: output, shape index: {0}]   ;;  %s683_s5 = inlined_call_operand.vmem [shape: f32[2,8,64], index: 5, kind: output, shape index: {1}]  }
   0x1   :  { %13 = vsyncpa [#allocation3 + $0x1], 0  ;;  %s581_s18 = smov 0   ;;  %s583_s19 = smov 0  }
   0x2   :  { %s585_s20 = smov 0   ;;  %s587_s21 = smov 0  }
   0x3 LB: > { %s602_s22 = sadd.s32 4294967295, %s548_s21   ;;  %s432_s23 = sadd.s32 4294967294, %s548_s21   ;;  %s548_s21 = sphi %s587_s21, %s689_s21   ;;  %s544_s20 = sphi %s585_s20, %s688_s20   ;;  %s540_s19 = sphi %s583_s19, %s687_s19   ;;  %s536_s18 = sphi %s581_s18, %s686_s18  }
   0x4   : > { %s606_s24 = sadd.s32 1, %s548_s21   ;;  %s125_s25 = sadd.s32 1, %s544_s20 }
   0x5   : > { %s122_s26 = ssub.s32 %s548_s21, %s606_s24  ;;  %p135_p0 = scmp.ne.s32.totalorder %s544_s20, %s540_s19 }
   0x6   : > { %p123_p1 = scmp.eq.s32.totalorder %s122_s26, 0  ;;  %p136_p2 = scmp.eq.s32.totalorder %s602_s22, 1 }
   0x7   : > { %p141_p3 = scmp.ne.s32.totalorder %s540_s19, %s536_s18  ;;  %p142_p4 = scmp.eq.s32.totalorder %s432_s23, 1 }
   0x8   : > { %s617_s27 = scalar_select %p123_p1, %s544_s20, %s125_s25  }
   0x9   : > { %p619_p5 = por %p136_p2, %p135_p0  ;;  %p623_p6 = por %p142_p4, %p141_p3 }
   0xa   : > { %p435_p7 = scmp.ge.s32.totalorder %s548_s21, 1  ;;  %p210_p8 = scmp.lt.s32.totalorder %s548_s21, 3 }
   0xc   : > { %p211_p9 = pnand %p435_p7, %p210_p8 }
   0xd   : > { %p249_p10 = scmp.lt.s32.totalorder (!%p211_p9), %s602_s22, 1  ;;  %s550_s15 = smov (!%p211_p9), 64  }
   0xe   : > { %214 = sbr.rel (%p211_p9) target bundleno = 154 (0x9a), region = 36  ;;  %s240_s25 = sand.u32 (!%p211_p9), 1, %s540_s19  }
   0xf   : > { %s436_s8 = sshll.u32 (!%p211_p9), %s240_s25, 3  ;;  %s506_s26 = scalar_lea.hbm (!%p211_p9), %s682_s4, 16 }
  0x10   : > { %s242_s13 = scalar_lea.vmem (!%p211_p9), [#allocation2], %s436_s8 }
  0x13   : > { %s250_s30 = scalar_select %p249_p10, %s602_s22, 1  ;;  %v265_v0 = vld [vmem:[%s678_s0] sm:$0xff]  ;;  %vm267_vm0 = vcmask 64512   ;;  %vm300_vm1 = vcmask 523264   ;;  %vm291_vm2 = vcmask 261120  }
  0x15   : > { %s437_s6 = sshll.u32 %s250_s30, 3 }
  0x16   : > { %s252_s9 = scalar_lea.vmem %s679_s1, %s437_s6  ;;  %s260_s14 = scalar_lea.vmem %s681_s3, %s437_s6 }
  0x17   : > { %v266_v1 = vld [vmem:[%s252_s9] sm:$0xff]  ;;  %s256_s23 = scalar_lea.vmem %s680_s2, %s437_s6  ;;  %s264_s7 = scalar_lea.vmem %s683_s5, %s437_s6 }
  0x18   : > { %v294_v2 = vld [vmem:[%s260_s14] sm:$0xff]  ;;  %286 = vmatpush.msra.mxu0 %v266_v1  ;;  %s443_s9 = sshll.u32 %s602_s22, 3  ;;  %s319_s14 = sshll.u32 %s242_s13, 4  ;;  %s320_s14 = int_to_ptr.vmem [resolvable:$true] %s319_s14 }
  0x19   : > { %296 = vrot.lane.b32.xlu0 %v294_v2, %s550_s15  ;;  %441 = vmatmul.msk.f32.vlgmr.msra.gmra.mxu0 %vm267_vm0, %v265_v0  ;;  %v293_v3 = vld [vmem:[%s256_s23] sm:$0xff]  ;;  %s317_s12 = scalar_lea.hbm %s682_s4, %s443_s9  ;;  %s303_s6 = scalar_lea.sflag [#allocation3], %s240_s25 }
  0x1a   : > { %s321_s15 = sshll.u32 %s317_s12, 4  ;;  %s322_s15 = int_to_ptr.hbm [resolvable:$true] %s321_s15 }
  0x1b   : > { %s500_s16 = sshra.s32 %s322_s15, 4  ;;  %s501_s16 = int_to_ptr.hbm [resolvable:$true] %s500_s16 }
  0x1c   : > { %s502_s17 = scalar_lea.hbm %s501_s16, 8  ;;  %p507_p0 = scmp.lt.s32.totalorder %s501_s16, %s682_s4 }
  0x1d   : > { %p503_p11 = scmp.ne.s32.totalorder %s501_s16, %s502_s17  ;;  %p508_p1 = scmp.lt.s32.totalorder %s506_s26, %s502_s17 }
  0x1f   : > { %p504_p12 = pnand %p503_p11, %p619_p5  ;;  %p509_p2 = por %p508_p1, %p507_p0 }
  0x21   : > { %p505_p13 = pneg %p504_p12 }
  0x23   : > { %p510_p3 = pnand %p509_p2, %p505_p13 }
  0x8b   : > { %v297_v4 = vpop.permute.xlu0 %296 }
  0x8c   : > { %v299_v5 = vadd.f32 %v297_v4, %v293_v3 }
  0x8e   : > { %301 = vst.msk [vmem:[%s264_s7] sm:$0xff] %vm300_vm1, %v299_v5 }
  0x96   : > { %v288_v6 = vpop.f32.mrf.mxu0 }
  0x97   : > { %292 = vst.msk [vmem:[%s242_s13] sm:$0xff] %vm291_vm2, %v288_v6 }
  0x98   : > { %513 = shalt.err (!%p510_p3)
}
  0x99   : > { %446 = dma.vmem_to_hbm [thread:$0]  (%p619_p5), %s320_s14, 128, %s322_s15, %s303_s6  }
  0x9a PF: > { %p452_p4 = scmp.ge.s32.totalorder %s548_s21, 2  ;;  %s336_s25 = sand.u32 1, %s536_s18  }
  0x9b   : > { %s337_s8 = scalar_lea.sflag [#allocation3], %s336_s25 }
  0x9c   : > { %p449_p7 = pnand %p452_p4, %p623_p6 }
  0x9e   : > { %p450_p8 = pneg %p449_p7 }
  0xa0   : > { %531 = dma.done.wait (%p450_p8), %s337_s8, 128  }
  0xa1   : > { %533 = vsyncadd (%p450_p8), %s337_s8, 4294967168  ;;  %p16_p9 = scmp.ge.s32.totalorder %s606_s24, 4   ;;  %s686_s18 = smov %s540_s19 }
  0xa2   : > { %s687_s19 = smov %s544_s20  ;;  %s688_s20 = smov %s617_s27 }
  0xa3   : > { %s689_s21 = smov %s606_s24  ;;  %18 = sbr.rel (!%p16_p9) target bundleno = 3 (0x3), region = 89 }
  0xa8   :  { %350 = vsyncpa [#allocation3], 1 }
  0xa9   :  { %352 = vsyncpa [#allocation3 + $0x1], 1 }

// kernel: a_call__.37
= control target key start
LH: loop header
LB: loop body
LE: loop exit
PB: predicated region body
PF: predicated region fallthrough
CT: control target
= control target key end

     0   :  { %vm285_vm4 = vcmask 1043456   ;;  %s655_s2 = inlined_call_operand.vmem [shape: f32[128,256], index: 2, kind: input, shape index: {}]   ;;  %s656_s3 = inlined_call_operand.vmem [shape: f32[128,256], index: 3, kind: input, shape index: {}]   ;;  %s657_s0 = inlined_call_operand.vmem [shape: f32[4,128], index: 0, kind: input, shape index: {}]   ;;  %s658_s1 = inlined_call_operand.vmem [shape: f32[4,128], index: 1, kind: input, shape index: {}]   ;;  %s659_s5 = inlined_call_operand.vmem [shape: f32[128,256], index: 5, kind: input, shape index: {}]   ;;  %s660_s4 = inlined_call_operand.vmem [shape: f32[1,256], index: 4, kind: input, shape index: {}]   ;;  %s661_s7 = inlined_call_operand.vmem [shape: f32[4,128], index: 7, kind: output, shape index: {0}]   ;;  %s662_s6 = inlined_call_operand.vmem [shape: f32[1,256], index: 6, kind: input, shape index: {}]   ;;  %s663_s8 = inlined_call_operand.vmem [shape: f32[4,256], index: 8, kind: output, shape index: {1}]  }
   0x1   :  { %v60_v0 = vld [vmem:[%s655_s2 + $0xf8] sm:$0xff]  ;;  %v58_v1 = vld [vmem:[%s655_s2 + $0xe8] sm:$0xff]  ;;  %v59_v9 = vld [vmem:[%s655_s2 + $0xf0] sm:$0xff] }
   0x2   :  { %154 = vmatpush.msra.mxu3 %v60_v0  ;;  %v93_v2 = vld [vmem:[%s656_s3 + $0xf8] sm:$0xff]  ;;  %v91_v3 = vld [vmem:[%s656_s3 + $0xe8] sm:$0xff]  ;;  %134 = vmatpush.msra.mxu2 %v59_v9  ;;  %v57_v11 = vld [vmem:[%s655_s2 + $0xe0] sm:$0xff] }
   0x3   :  { %v56_v4 = vld [vmem:[%s655_s2 + $0xd8] sm:$0xff]  ;;  %114 = vmatpush.msra.mxu1 %v93_v2  ;;  %v54_v6 = vld [vmem:[%s655_s2 + $0xc8] sm:$0xff]  ;;  %v55_v13 = vld [vmem:[%s655_s2 + $0xd0] sm:$0xff] }
   0x4   :  { %155 = vmatpush.msra.mxu3 %v58_v1  ;;  %v89_v5 = vld [vmem:[%s656_s3 + $0xd8] sm:$0xff]  ;;  %v87_v7 = vld [vmem:[%s656_s3 + $0xc8] sm:$0xff]  ;;  %135 = vmatpush.msra.mxu2 %v57_v11  ;;  %v92_v15 = vld [vmem:[%s656_s3 + $0xf0] sm:$0xff] }
   0x5   :  { %115 = vmatpush.msra.mxu1 %v91_v3  ;;  %v52_v8 = vld [vmem:[%s655_s2 + $0xb8] sm:$0xff]  ;;  %v50_v12 = vld [vmem:[%s655_s2 + $0xa8] sm:$0xff]  ;;  %94 = vmatpush.msra.mxu0 %v92_v15  ;;  %v53_v17 = vld [vmem:[%s655_s2 + $0xc0] sm:$0xff] }
   0x6   :  { %156 = vmatpush.msra.mxu3 %v56_v4  ;;  %v85_v10 = vld [vmem:[%s656_s3 + $0xb8] sm:$0xff]  ;;  %v83_v14 = vld [vmem:[%s656_s3 + $0xa8] sm:$0xff]  ;;  %v90_v18 = vld [vmem:[%s656_s3 + $0xe0] sm:$0xff]  ;;  %136 = vmatpush.msra.mxu2 %v55_v13 }
   0x7   :  { %116 = vmatpush.msra.mxu1 %v89_v5  ;;  %v48_v16 = vld [vmem:[%s655_s2 + $0x98] sm:$0xff]  ;;  %v46_v20 = vld [vmem:[%s655_s2 + $0x88] sm:$0xff]  ;;  %95 = vmatpush.msra.mxu0 %v90_v18  ;;  %v51_v21 = vld [vmem:[%s655_s2 + $0xb0] sm:$0xff] }
   0x8   :  { %157 = vmatpush.msra.mxu3 %v54_v6  ;;  %v81_v19 = vld [vmem:[%s656_s3 + $0x98] sm:$0xff]  ;;  %v88_v22 = vld [vmem:[%s656_s3 + $0xd0] sm:$0xff]  ;;  %v79_v23 = vld [vmem:[%s656_s3 + $0x88] sm:$0xff]  ;;  %137 = vmatpush.msra.mxu2 %v53_v17 }
   0x9   :  { %117 = vmatpush.msra.mxu1 %v87_v7  ;;  %v86_v24 = vld [vmem:[%s656_s3 + $0xc0] sm:$0xff]  ;;  %v44_v25 = vld [vmem:[%s655_s2 + $0x78] sm:$0xff]  ;;  %96 = vmatpush.msra.mxu0 %v88_v22  ;;  %v84_v28 = vld [vmem:[%s656_s3 + $0xb0] sm:$0xff] }
   0xa   :  { %158 = vmatpush.msra.mxu3 %v52_v8  ;;  %v49_v26 = vld [vmem:[%s655_s2 + $0xa0] sm:$0xff]  ;;  %v77_v27 = vld [vmem:[%s656_s3 + $0x78] sm:$0xff]  ;;  %138 = vmatpush.msra.mxu2 %v51_v21  ;;  %v42_v29 = vld [vmem:[%s655_s2 + $0x68] sm:$0xff] }
   0xb   :  { %118 = vmatpush.msra.mxu1 %v85_v10  ;;  %97 = vmatpush.msra.mxu0 %v86_v24  ;;  %v47_v30 = vld [vmem:[%s655_s2 + $0x90] sm:$0xff]  ;;  %v75_v31 = vld [vmem:[%s656_s3 + $0x68] sm:$0xff]  ;;  %v82_v32 = vld [vmem:[%s656_s3 + $0xa0] sm:$0xff] }
   0xc   :  { %159 = vmatpush.msra.mxu3 %v50_v12  ;;  %139 = vmatpush.msra.mxu2 %v49_v26  ;;  %v40_v33 = vld [vmem:[%s655_s2 + $0x58] sm:$0xff]  ;;  %v45_v34 = vld [vmem:[%s655_s2 + $0x80] sm:$0xff]  ;;  %v80_v36 = vld [vmem:[%s656_s3 + $0x90] sm:$0xff] }
   0xd   :  { %119 = vmatpush.msra.mxu1 %v83_v14  ;;  %98 = vmatpush.msra.mxu0 %v84_v28  ;;  %v73_v35 = vld [vmem:[%s656_s3 + $0x58] sm:$0xff]  ;;  %v38_v37 = vld [vmem:[%s655_s2 + $0x48] sm:$0xff]  ;;  %v43_v38 = vld [vmem:[%s655_s2 + $0x70] sm:$0xff] }
   0xe   :  { %160 = vmatpush.msra.mxu3 %v48_v16  ;;  %140 = vmatpush.msra.mxu2 %v47_v30  ;;  %v71_v39 = vld [vmem:[%s656_s3 + $0x48] sm:$0xff]  ;;  %v78_v40 = vld [vmem:[%s656_s3 + $0x80] sm:$0xff]  ;;  %v36_v41 = vld [vmem:[%s655_s2 + $0x38] sm:$0xff] }
   0xf   :  { %120 = vmatpush.msra.mxu1 %v81_v19  ;;  %99 = vmatpush.msra.mxu0 %v82_v32  ;;  %v41_v42 = vld [vmem:[%s655_s2 + $0x60] sm:$0xff]  ;;  %v69_v43 = vld [vmem:[%s656_s3 + $0x38] sm:$0xff]  ;;  %v76_v44 = vld [vmem:[%s656_s3 + $0x70] sm:$0xff] }
  0x10   :  { %161 = vmatpush.msra.mxu3 %v46_v20  ;;  %141 = vmatpush.msra.mxu2 %v45_v34  ;;  %v34_v45 = vld [vmem:[%s655_s2 + $0x28] sm:$0xff]  ;;  %v39_v46 = vld [vmem:[%s655_s2 + $0x50] sm:$0xff]  ;;  %v74_v48 = vld [vmem:[%s656_s3 + $0x60] sm:$0xff] }
  0x11   :  { %121 = vmatpush.msra.mxu1 %v79_v23  ;;  %100 = vmatpush.msra.mxu0 %v80_v36  ;;  %v67_v47 = vld [vmem:[%s656_s3 + $0x28] sm:$0xff]  ;;  %v32_v49 = vld [vmem:[%s655_s2 + $0x18] sm:$0xff]  ;;  %v37_v50 = vld [vmem:[%s655_s2 + $0x40] sm:$0xff] }
  0x12   :  { %162 = vmatpush.msra.mxu3 %v44_v25  ;;  %142 = vmatpush.msra.mxu2 %v43_v38  ;;  %v65_v51 = vld [vmem:[%s656_s3 + $0x18] sm:$0xff]  ;;  %v72_v52 = vld [vmem:[%s656_s3 + $0x50] sm:$0xff]  ;;  %v30_v53 = vld [vmem:[%s655_s2 + $0x8] sm:$0xff] }
  0x13   :  { %122 = vmatpush.msra.mxu1 %v77_v27  ;;  %101 = vmatpush.msra.mxu0 %v78_v40  ;;  %v35_v54 = vld [vmem:[%s655_s2 + $0x30] sm:$0xff]  ;;  %v28_v55 = vld [vmem:[%s657_s0] sm:$0xf]  ;;  %v63_v56 = vld [vmem:[%s656_s3 + $0x8] sm:$0xff] }
  0x14   :  { %163 = vmatpush.msra.mxu3 %v42_v29  ;;  %143 = vmatpush.msra.mxu2 %v41_v42  ;;  %v61_v57 = vld [vmem:[%s658_s1] sm:$0xf]  ;;  %v31_v60 = vld [vmem:[%s655_s2 + $0x10] sm:$0xff]  ;;  %v235_v3 = vld [vmem:[%s659_s5 + $0xf8] sm:$0xff] }
  0x15   :  { %123 = vmatpush.msra.mxu1 %v75_v31  ;;  %102 = vmatpush.msra.mxu0 %v76_v44  ;;  %v33_v58 = vld [vmem:[%s655_s2 + $0x20] sm:$0xff]  ;;  %v68_v61 = vld [vmem:[%s656_s3 + $0x30] sm:$0xff]  ;;  %v233_v5 = vld [vmem:[%s659_s5 + $0xe8] sm:$0xff] }
  0x16   :  { %164 = vmatpush.msra.mxu3 %v40_v33  ;;  %144 = vmatpush.msra.mxu2 %v39_v46  ;;  %v70_v59 = vld [vmem:[%s656_s3 + $0x40] sm:$0xff]  ;;  %v64_v0 = vld [vmem:[%s656_s3 + $0x10] sm:$0xff]  ;;  %v231_v7 = vld [vmem:[%s659_s5 + $0xd8] sm:$0xff] }
  0x17   :  { %124 = vmatpush.msra.mxu1 %v73_v35  ;;  %103 = vmatpush.msra.mxu0 %v74_v48  ;;  %v29_v62 = vld [vmem:[%s655_s2] sm:$0xff]  ;;  %v234_v2 = vld [vmem:[%s659_s5 + $0xf0] sm:$0xff]  ;;  %v229_v9 = vld [vmem:[%s659_s5 + $0xc8] sm:$0xff] }
  0x18   :  { %165 = vmatpush.msra.mxu3 %v38_v37  ;;  %145 = vmatpush.msra.mxu2 %v37_v50  ;;  %v66_v63 = vld [vmem:[%s656_s3 + $0x20] sm:$0xff]  ;;  %v230_v6 = vld [vmem:[%s659_s5 + $0xd0] sm:$0xff]  ;;  %v227_v11 = vld [vmem:[%s659_s5 + $0xb8] sm:$0xff] }
  0x19   :  { %125 = vmatpush.msra.mxu1 %v71_v39  ;;  %104 = vmatpush.msra.mxu0 %v72_v52  ;;  %v62_v1 = vld [vmem:[%s656_s3] sm:$0xff]  ;;  %v226_v10 = vld [vmem:[%s659_s5 + $0xb0] sm:$0xff]  ;;  %v225_v13 = vld [vmem:[%s659_s5 + $0xa8] sm:$0xff] }
  0x1a   :  { %166 = vmatpush.msra.mxu3 %v36_v41  ;;  %146 = vmatpush.msra.mxu2 %v35_v54  ;;  %v232_v4 = vld [vmem:[%s659_s5 + $0xe0] sm:$0xff]  ;;  %v222_v14 = vld [vmem:[%s659_s5 + $0x90] sm:$0xff]  ;;  %v223_v15 = vld [vmem:[%s659_s5 + $0x98] sm:$0xff] }
  0x1b   :  { %126 = vmatpush.msra.mxu1 %v69_v43  ;;  %105 = vmatpush.msra.mxu0 %v70_v59  ;;  %v228_v8 = vld [vmem:[%s659_s5 + $0xc0] sm:$0xff]  ;;  %v221_v17 = vld [vmem:[%s659_s5 + $0x88] sm:$0xff]  ;;  %v218_v18 = vld [vmem:[%s659_s5 + $0x70] sm:$0xff] }
  0x1c   :  { %167 = vmatpush.msra.mxu3 %v34_v45  ;;  %147 = vmatpush.msra.mxu2 %v33_v58  ;;  %v224_v12 = vld [vmem:[%s659_s5 + $0xa0] sm:$0xff]  ;;  %v219_v19 = vld [vmem:[%s659_s5 + $0x78] sm:$0xff]  ;;  %v217_v21 = vld [vmem:[%s659_s5 + $0x68] sm:$0xff] }
  0x1d   :  { %127 = vmatpush.msra.mxu1 %v67_v47  ;;  %106 = vmatpush.msra.mxu0 %v68_v61  ;;  %v220_v16 = vld [vmem:[%s659_s5 + $0x80] sm:$0xff]  ;;  %v214_v22 = vld [vmem:[%s659_s5 + $0x50] sm:$0xff]  ;;  %v215_v23 = vld [vmem:[%s659_s5 + $0x58] sm:$0xff] }
  0x1e   :  { %168 = vmatpush.msra.mxu3 %v32_v49  ;;  %148 = vmatpush.msra.mxu2 %v31_v60  ;;  %v216_v20 = vld [vmem:[%s659_s5 + $0x60] sm:$0xff]  ;;  %v213_v25 = vld [vmem:[%s659_s5 + $0x48] sm:$0xff]  ;;  %v210_v26 = vld [vmem:[%s659_s5 + $0x30] sm:$0xff] }
  0x1f   :  { %128 = vmatpush.msra.mxu1 %v65_v51  ;;  %107 = vmatpush.msra.mxu0 %v66_v63  ;;  %v212_v24 = vld [vmem:[%s659_s5 + $0x40] sm:$0xff]  ;;  %v211_v27 = vld [vmem:[%s659_s5 + $0x38] sm:$0xff]  ;;  %v209_v29 = vld [vmem:[%s659_s5 + $0x28] sm:$0xff] }
  0x20   :  { %169 = vmatpush.msra.mxu3 %v30_v53  ;;  %149 = vmatpush.msra.mxu2 %v29_v62  ;;  %v208_v28 = vld [vmem:[%s659_s5 + $0x20] sm:$0xff]  ;;  %v206_v31 = vld [vmem:[%s659_s5 + $0x10] sm:$0xff]  ;;  %v207_v32 = vld [vmem:[%s659_s5 + $0x18] sm:$0xff] }
  0x21   :  { %170 = vmatmul.f32.vlgmr.msra.gmra.mxu3 %v28_v55  ;;  %129 = vmatpush.msra.mxu1 %v63_v56  ;;  %v174_v30 = vld [vmem:[%s660_s4] sm:$0x3]  ;;  %v205_v36 = vld [vmem:[%s659_s5 + $0x8] sm:$0xff] }
  0x22   :  { %130 = vmatmul.f32.vlgmr.msra.gmra.mxu1 %v61_v57  ;;  %150 = vmatmul.f32.vlgmr.msra.gmra.mxu2 %v28_v55  ;;  %v177_v34 = vperm.slane %v174_v30, 1  ;;  %v204_v35 = vld [vmem:[%s659_s5] sm:$0xff]  ;;  %v176_v46 = vperm.slane %v174_v30, 0 }
  0x23   :  { %108 = vmatpush.msra.mxu0 %v64_v0  ;;  %262 = vmatpush.msrb.mxu1 %v235_v3  ;;  %v236_v60 = vld [vmem:[%s662_s6] sm:$0x3] }
  0x24   :  { %v239_v61 = vperm.slane %v236_v60, 1  ;;  %v238_v62 = vperm.slane %v236_v60, 0 }
  0x25   :  { %109 = vmatpush.msra.mxu0 %v62_v1  ;;  %263 = vmatpush.msrb.mxu1 %v233_v5 }
  0x26   :  { %110 = vmatmul.f32.vlgmr.msra.gmra.mxu0 %v61_v57 }
  0x27   :  { %242 = vmatpush.msrb.mxu0 %v234_v2  ;;  %264 = vmatpush.msrb.mxu1 %v231_v7 }
  0x29   :  { %243 = vmatpush.msrb.mxu0 %v232_v4  ;;  %265 = vmatpush.msrb.mxu1 %v229_v9 }
  0x2b   :  { %244 = vmatpush.msrb.mxu0 %v230_v6  ;;  %266 = vmatpush.msrb.mxu1 %v227_v11 }
  0x2d   :  { %245 = vmatpush.msrb.mxu0 %v228_v8  ;;  %267 = vmatpush.msrb.mxu1 %v225_v13 }
  0x2f   :  { %246 = vmatpush.msrb.mxu0 %v226_v10  ;;  %268 = vmatpush.msrb.mxu1 %v223_v15 }
  0x31   :  { %247 = vmatpush.msrb.mxu0 %v224_v12  ;;  %269 = vmatpush.msrb.mxu1 %v221_v17 }
  0x33   :  { %248 = vmatpush.msrb.mxu0 %v222_v14  ;;  %270 = vmatpush.msrb.mxu1 %v219_v19 }
  0x35   :  { %249 = vmatpush.msrb.mxu0 %v220_v16  ;;  %271 = vmatpush.msrb.mxu1 %v217_v21 }
  0x37   :  { %250 = vmatpush.msrb.mxu0 %v218_v18  ;;  %272 = vmatpush.msrb.mxu1 %v215_v23 }
  0x39   :  { %251 = vmatpush.msrb.mxu0 %v216_v20  ;;  %273 = vmatpush.msrb.mxu1 %v213_v25 }
  0x3b   :  { %252 = vmatpush.msrb.mxu0 %v214_v22  ;;  %274 = vmatpush.msrb.mxu1 %v211_v27 }
  0x3d   :  { %253 = vmatpush.msrb.mxu0 %v212_v24  ;;  %275 = vmatpush.msrb.mxu1 %v209_v29 }
  0x3f   :  { %254 = vmatpush.msrb.mxu0 %v210_v26  ;;  %276 = vmatpush.msrb.mxu1 %v207_v32 }
  0x41   :  { %255 = vmatpush.msrb.mxu0 %v208_v28  ;;  %277 = vmatpush.msrb.mxu1 %v205_v36 }
  0x43   :  { %256 = vmatpush.msrb.mxu0 %v206_v31 }
  0x45   :  { %257 = vmatpush.msrb.mxu0 %v204_v35 }
  0x9f   :  { %v131_v33 = vpop.f32.mrf.mxu1 }
  0xa3   :  { %v111_v42 = vpop.f32.mrf.mxu0 }
  0xa4   :  { %v171_v37 = vpop.f32.mrf.mxu3 }
  0xa5   :  { %v172_v38 = vadd.f32 %v171_v37, %v131_v33  ;;  %v151_v43 = vpop.f32.mrf.mxu2 }
  0xa6   :  { %v152_v45 = vadd.f32 %v151_v43, %v111_v42 }
  0xa7   :  { %v181_v39 = vadd.f32 %v177_v34, %v172_v38 }
  0xa8   :  { %v180_v47 = vadd.f32 %v176_v46, %v152_v45 }
  0xa9   :  { %v297_v40 = vmul.f32 -1.442695, %v181_v39 }
  0xab   :  { %298 = vpow2.f32 %v297_v40 }
  0xb1   :  { %v299_v41 = vpop.eup %298 }
  0xb2   :  { %v186_v44 = vadd.f32 1.0, %v299_v41 }
  0xb4   :  { %300 = vrcp.f32 %v186_v44  ;;  %v198_v51 = vand.u32 2147483648, %v186_v44  ;;  %v196_v53 = vand.u32 2147483647, %v186_v44  ;;  %vm192_vm1 = vweird.f32 %v186_v44 }
  0xb5   :  { %302 = vtanh.f32 %v180_v47 }
  0xb6   :  { %v199_v56 = vor.u32 1.1754944e-38, %v198_v51  ;;  %vm197_vm3 = vcmp.eq.f32.partialorder %v196_v53, 8.507059e+37 }
  0xba   :  { %v301_v48 = vpop.eup %300 }
  0xbb   :  { %v188_v49 = vmul.f32 %v301_v48, %v186_v44  ;;  %vm193_vm0 = vweird.f32 %v301_v48  ;;  %v303_v55 = vpop.eup %302 }
  0xbc   :  { %vm194_vm2 = vmor %vm192_vm1, %vm193_vm0 }
  0xbd   :  { %v189_v50 = vsub.f32 1.0, %v188_v49 }
  0xbf   :  { %v190_v52 = vmul.f32 %v301_v48, %v189_v50 }
  0xc1   :  { %v191_v54 = vadd.f32 %v301_v48, %v190_v52 }
  0xc3   :  { %v195_v57 = vsel %vm194_vm2, %v301_v48, %v191_v54 }
  0xc4   :  { %v200_v58 = vsel %vm197_vm3, %v199_v56, %v195_v57 }
  0xc5   :  { %v202_v59 = vmul.f32 %v303_v55, %v200_v58 }
  0xc7   :  { %203 = vst [vmem:[%s661_s7] sm:$0xf] %v202_v59  ;;  %258 = vmatmul.f32.vlgmr.msrb.gmra.mxu0 %v202_v59  ;;  %278 = vmatmul.f32.vlgmr.msrb.gmra.mxu1 %v202_v59 }
 0x144   :  { %v259_v63 = vpop.f32.mrf.mxu0  ;;  %v279_v0 = vpop.f32.mrf.mxu1 }
 0x145   :  { %v280_v1 = vadd.f32 %v279_v0, %v239_v61  ;;  %v260_v2 = vadd.f32 %v259_v63, %v238_v62 }
 0x147   :  { %v284_v3 = vrot.slane %v280_v1, 4 }
 0x149   :  { %v286_v4 = vsel %vm285_vm4, %v260_v2, %v284_v3 }
 0x14a   :  { %288 = vst [vmem:[%s663_s8] sm:$0xff] %v286_v4 }

// kernel: a_call__.39
= control target key start
LH: loop header
LB: loop body
LE: loop exit
PB: predicated region body
PF: predicated region fallthrough
CT: control target
= control target key end

     0   :  { %vm478_vm0 = vcmask 781312   ;;  %s1103_s1 = inlined_call_operand.vmem [shape: f32[256,512], index: 1, kind: input, shape index: {}]   ;;  %s1104_s0 = inlined_call_operand.vmem [shape: f32[4,256], index: 0, kind: input, shape index: {}]   ;;  %s1105_s3 = inlined_call_operand.vmem [shape: f32[512,96], index: 3, kind: input, shape index: {}]   ;;  %s1106_s4 = inlined_call_operand.vmem [shape: f32[1,96], index: 4, kind: input, shape index: {}]   ;;  %s1107_s2 = inlined_call_operand.vmem [shape: f32[1,512], index: 2, kind: input, shape index: {}]   ;;  %s1108_s5 = inlined_call_operand.vmem [shape: f32[4,96], index: 5, kind: output, shape index: {}]  }
   0x1   :  { %v82_v0 = vld [vmem:[%s1103_s1 + $0x1e0] sm:$0xff]  ;;  %v83_v1 = vld [vmem:[%s1103_s1 + $0x1e8] sm:$0xff]  ;;  %v84_v62 = vld [vmem:[%s1103_s1 + $0x1f0] sm:$0xff] }
   0x2   :  { %v78_v2 = vld [vmem:[%s1103_s1 + $0x1c0] sm:$0xff]  ;;  %166 = vmatpush.msra.mxu0 %v82_v0  ;;  %206 = vmatpush.msra.mxu2 %v83_v1  ;;  %v79_v4 = vld [vmem:[%s1103_s1 + $0x1c8] sm:$0xff]  ;;  %v85_v63 = vld [vmem:[%s1103_s1 + $0x1f8] sm:$0xff] }
   0x3   :  { %v146_v3 = vld [vmem:[%s1103_s1 + $0x3e0] sm:$0xff]  ;;  %v147_v5 = vld [vmem:[%s1103_s1 + $0x3e8] sm:$0xff] }
   0x4   :  { %186 = vmatpush.msra.mxu1 %v146_v3  ;;  %226 = vmatpush.msra.mxu3 %v147_v5  ;;  %v74_v6 = vld [vmem:[%s1103_s1 + $0x1a0] sm:$0xff]  ;;  %v75_v8 = vld [vmem:[%s1103_s1 + $0x1a8] sm:$0xff]  ;;  %v148_v3 = vld [vmem:[%s1103_s1 + $0x3f0] sm:$0xff] }
   0x5   :  { %v142_v7 = vld [vmem:[%s1103_s1 + $0x3c0] sm:$0xff]  ;;  %167 = vmatpush.msra.mxu0 %v78_v2  ;;  %207 = vmatpush.msra.mxu2 %v79_v4  ;;  %v143_v9 = vld [vmem:[%s1103_s1 + $0x3c8] sm:$0xff]  ;;  %v80_v2 = vld [vmem:[%s1103_s1 + $0x1d0] sm:$0xff] }
   0x6   :  { %v138_v10 = vld [vmem:[%s1103_s1 + $0x3a0] sm:$0xff]  ;;  %187 = vmatpush.msra.mxu1 %v142_v7  ;;  %227 = vmatpush.msra.mxu3 %v143_v9  ;;  %v71_v12 = vld [vmem:[%s1103_s1 + $0x188] sm:$0xff]  ;;  %v81_v4 = vld [vmem:[%s1103_s1 + $0x1d8] sm:$0xff] }
   0x7   :  { %v70_v11 = vld [vmem:[%s1103_s1 + $0x180] sm:$0xff]  ;;  %v139_v13 = vld [vmem:[%s1103_s1 + $0x3a8] sm:$0xff]  ;;  %168 = vmatpush.msra.mxu0 %v74_v6  ;;  %208 = vmatpush.msra.mxu2 %v75_v8  ;;  %v149_v5 = vld [vmem:[%s1103_s1 + $0x3f8] sm:$0xff] }
   0x8   :  { %v134_v14 = vld [vmem:[%s1103_s1 + $0x380] sm:$0xff]  ;;  %v135_v15 = vld [vmem:[%s1103_s1 + $0x388] sm:$0xff]  ;;  %188 = vmatpush.msra.mxu1 %v138_v10  ;;  %228 = vmatpush.msra.mxu3 %v139_v13  ;;  %v76_v6 = vld [vmem:[%s1103_s1 + $0x1b0] sm:$0xff] }
   0x9   :  { %v66_v16 = vld [vmem:[%s1103_s1 + $0x160] sm:$0xff]  ;;  %v67_v17 = vld [vmem:[%s1103_s1 + $0x168] sm:$0xff]  ;;  %169 = vmatpush.msra.mxu0 %v70_v11  ;;  %209 = vmatpush.msra.mxu2 %v71_v12  ;;  %v144_v7 = vld [vmem:[%s1103_s1 + $0x3d0] sm:$0xff] }
   0xa   :  { %v130_v18 = vld [vmem:[%s1103_s1 + $0x360] sm:$0xff]  ;;  %v131_v19 = vld [vmem:[%s1103_s1 + $0x368] sm:$0xff]  ;;  %189 = vmatpush.msra.mxu1 %v134_v14  ;;  %229 = vmatpush.msra.mxu3 %v135_v15  ;;  %v77_v8 = vld [vmem:[%s1103_s1 + $0x1b8] sm:$0xff] }
   0xb   :  { %v62_v20 = vld [vmem:[%s1103_s1 + $0x140] sm:$0xff]  ;;  %v63_v21 = vld [vmem:[%s1103_s1 + $0x148] sm:$0xff]  ;;  %170 = vmatpush.msra.mxu0 %v66_v16  ;;  %210 = vmatpush.msra.mxu2 %v67_v17  ;;  %v145_v9 = vld [vmem:[%s1103_s1 + $0x3d8] sm:$0xff] }
   0xc   :  { %v126_v22 = vld [vmem:[%s1103_s1 + $0x340] sm:$0xff]  ;;  %v127_v23 = vld [vmem:[%s1103_s1 + $0x348] sm:$0xff]  ;;  %190 = vmatpush.msra.mxu1 %v130_v18  ;;  %230 = vmatpush.msra.mxu3 %v131_v19  ;;  %v72_v10 = vld [vmem:[%s1103_s1 + $0x190] sm:$0xff] }
   0xd   :  { %v58_v24 = vld [vmem:[%s1103_s1 + $0x120] sm:$0xff]  ;;  %v59_v25 = vld [vmem:[%s1103_s1 + $0x128] sm:$0xff]  ;;  %171 = vmatpush.msra.mxu0 %v62_v20  ;;  %211 = vmatpush.msra.mxu2 %v63_v21  ;;  %v140_v11 = vld [vmem:[%s1103_s1 + $0x3b0] sm:$0xff] }
   0xe   :  { %v122_v26 = vld [vmem:[%s1103_s1 + $0x320] sm:$0xff]  ;;  %v123_v27 = vld [vmem:[%s1103_s1 + $0x328] sm:$0xff]  ;;  %191 = vmatpush.msra.mxu1 %v126_v22  ;;  %231 = vmatpush.msra.mxu3 %v127_v23  ;;  %v73_v12 = vld [vmem:[%s1103_s1 + $0x198] sm:$0xff] }
   0xf   :  { %v54_v28 = vld [vmem:[%s1103_s1 + $0x100] sm:$0xff]  ;;  %v55_v29 = vld [vmem:[%s1103_s1 + $0x108] sm:$0xff]  ;;  %172 = vmatpush.msra.mxu0 %v58_v24  ;;  %212 = vmatpush.msra.mxu2 %v59_v25  ;;  %v141_v13 = vld [vmem:[%s1103_s1 + $0x3b8] sm:$0xff] }
  0x10   :  { %v118_v30 = vld [vmem:[%s1103_s1 + $0x300] sm:$0xff]  ;;  %v119_v31 = vld [vmem:[%s1103_s1 + $0x308] sm:$0xff]  ;;  %192 = vmatpush.msra.mxu1 %v122_v26  ;;  %232 = vmatpush.msra.mxu3 %v123_v27  ;;  %v68_v15 = vld [vmem:[%s1103_s1 + $0x170] sm:$0xff] }
  0x11   :  { %v50_v32 = vld [vmem:[%s1103_s1 + $0xe0] sm:$0xff]  ;;  %v51_v33 = vld [vmem:[%s1103_s1 + $0xe8] sm:$0xff]  ;;  %173 = vmatpush.msra.mxu0 %v54_v28  ;;  %213 = vmatpush.msra.mxu2 %v55_v29  ;;  %v136_v16 = vld [vmem:[%s1103_s1 + $0x390] sm:$0xff] }
  0x12   :  { %v114_v34 = vld [vmem:[%s1103_s1 + $0x2e0] sm:$0xff]  ;;  %v115_v35 = vld [vmem:[%s1103_s1 + $0x2e8] sm:$0xff]  ;;  %193 = vmatpush.msra.mxu1 %v118_v30  ;;  %233 = vmatpush.msra.mxu3 %v119_v31  ;;  %v69_v18 = vld [vmem:[%s1103_s1 + $0x178] sm:$0xff] }
  0x13   :  { %v46_v36 = vld [vmem:[%s1103_s1 + $0xc0] sm:$0xff]  ;;  %v47_v37 = vld [vmem:[%s1103_s1 + $0xc8] sm:$0xff]  ;;  %174 = vmatpush.msra.mxu0 %v50_v32  ;;  %214 = vmatpush.msra.mxu2 %v51_v33  ;;  %v137_v19 = vld [vmem:[%s1103_s1 + $0x398] sm:$0xff] }
  0x14   :  { %v110_v38 = vld [vmem:[%s1103_s1 + $0x2c0] sm:$0xff]  ;;  %v111_v39 = vld [vmem:[%s1103_s1 + $0x2c8] sm:$0xff]  ;;  %194 = vmatpush.msra.mxu1 %v114_v34  ;;  %234 = vmatpush.msra.mxu3 %v115_v35  ;;  %v64_v20 = vld [vmem:[%s1103_s1 + $0x150] sm:$0xff] }
  0x15   :  { %v42_v40 = vld [vmem:[%s1103_s1 + $0xa0] sm:$0xff]  ;;  %v43_v41 = vld [vmem:[%s1103_s1 + $0xa8] sm:$0xff]  ;;  %175 = vmatpush.msra.mxu0 %v46_v36  ;;  %215 = vmatpush.msra.mxu2 %v47_v37  ;;  %v132_v21 = vld [vmem:[%s1103_s1 + $0x370] sm:$0xff] }
  0x16   :  { %v106_v42 = vld [vmem:[%s1103_s1 + $0x2a0] sm:$0xff]  ;;  %v107_v43 = vld [vmem:[%s1103_s1 + $0x2a8] sm:$0xff]  ;;  %195 = vmatpush.msra.mxu1 %v110_v38  ;;  %235 = vmatpush.msra.mxu3 %v111_v39  ;;  %v65_v22 = vld [vmem:[%s1103_s1 + $0x158] sm:$0xff] }
  0x17   :  { %v38_v44 = vld [vmem:[%s1103_s1 + $0x80] sm:$0xff]  ;;  %v39_v45 = vld [vmem:[%s1103_s1 + $0x88] sm:$0xff]  ;;  %176 = vmatpush.msra.mxu0 %v42_v40  ;;  %216 = vmatpush.msra.mxu2 %v43_v41  ;;  %v133_v23 = vld [vmem:[%s1103_s1 + $0x378] sm:$0xff] }
  0x18   :  { %v102_v46 = vld [vmem:[%s1103_s1 + $0x280] sm:$0xff]  ;;  %v103_v47 = vld [vmem:[%s1103_s1 + $0x288] sm:$0xff]  ;;  %196 = vmatpush.msra.mxu1 %v106_v42  ;;  %236 = vmatpush.msra.mxu3 %v107_v43  ;;  %v60_v24 = vld [vmem:[%s1103_s1 + $0x130] sm:$0xff] }
  0x19   :  { %v34_v48 = vld [vmem:[%s1103_s1 + $0x60] sm:$0xff]  ;;  %v35_v49 = vld [vmem:[%s1103_s1 + $0x68] sm:$0xff]  ;;  %177 = vmatpush.msra.mxu0 %v38_v44  ;;  %217 = vmatpush.msra.mxu2 %v39_v45  ;;  %v128_v25 = vld [vmem:[%s1103_s1 + $0x350] sm:$0xff] }
  0x1a   :  { %v98_v50 = vld [vmem:[%s1103_s1 + $0x260] sm:$0xff]  ;;  %v99_v51 = vld [vmem:[%s1103_s1 + $0x268] sm:$0xff]  ;;  %197 = vmatpush.msra.mxu1 %v102_v46  ;;  %237 = vmatpush.msra.mxu3 %v103_v47  ;;  %v61_v26 = vld [vmem:[%s1103_s1 + $0x138] sm:$0xff] }
  0x1b   :  { %v30_v52 = vld [vmem:[%s1103_s1 + $0x40] sm:$0xff]  ;;  %v31_v53 = vld [vmem:[%s1103_s1 + $0x48] sm:$0xff]  ;;  %178 = vmatpush.msra.mxu0 %v34_v48  ;;  %218 = vmatpush.msra.mxu2 %v35_v49  ;;  %v129_v27 = vld [vmem:[%s1103_s1 + $0x358] sm:$0xff] }
  0x1c   :  { %v94_v54 = vld [vmem:[%s1103_s1 + $0x240] sm:$0xff]  ;;  %v95_v55 = vld [vmem:[%s1103_s1 + $0x248] sm:$0xff]  ;;  %198 = vmatpush.msra.mxu1 %v98_v50  ;;  %238 = vmatpush.msra.mxu3 %v99_v51  ;;  %v56_v28 = vld [vmem:[%s1103_s1 + $0x110] sm:$0xff] }
  0x1d   :  { %v26_v56 = vld [vmem:[%s1103_s1 + $0x20] sm:$0xff]  ;;  %v27_v57 = vld [vmem:[%s1103_s1 + $0x28] sm:$0xff]  ;;  %179 = vmatpush.msra.mxu0 %v30_v52  ;;  %219 = vmatpush.msra.mxu2 %v31_v53  ;;  %v124_v29 = vld [vmem:[%s1103_s1 + $0x330] sm:$0xff] }
  0x1e   :  { %v90_v58 = vld [vmem:[%s1103_s1 + $0x220] sm:$0xff]  ;;  %v91_v59 = vld [vmem:[%s1103_s1 + $0x228] sm:$0xff]  ;;  %199 = vmatpush.msra.mxu1 %v94_v54  ;;  %239 = vmatpush.msra.mxu3 %v95_v55  ;;  %v57_v30 = vld [vmem:[%s1103_s1 + $0x118] sm:$0xff] }
  0x1f   :  { %v22_v60 = vld [vmem:[%s1103_s1] sm:$0xff]  ;;  %v23_v61 = vld [vmem:[%s1103_s1 + $0x8] sm:$0xff]  ;;  %180 = vmatpush.msra.mxu0 %v26_v56  ;;  %220 = vmatpush.msra.mxu2 %v27_v57  ;;  %v125_v31 = vld [vmem:[%s1103_s1 + $0x338] sm:$0xff] }
  0x20   :  { %200 = vmatpush.msra.mxu1 %v90_v58  ;;  %240 = vmatpush.msra.mxu3 %v91_v59  ;;  %v86_v0 = vld [vmem:[%s1103_s1 + $0x200] sm:$0xff]  ;;  %v87_v1 = vld [vmem:[%s1103_s1 + $0x208] sm:$0xff]  ;;  %v52_v32 = vld [vmem:[%s1103_s1 + $0xf0] sm:$0xff] }
  0x21   :  { %181 = vmatpush.msra.mxu0 %v22_v60  ;;  %221 = vmatpush.msra.mxu2 %v23_v61  ;;  %v20_v14 = vld [vmem:[%s1104_s0] sm:$0xff]  ;;  %v120_v33 = vld [vmem:[%s1103_s1 + $0x310] sm:$0xff]  ;;  %v53_v34 = vld [vmem:[%s1103_s1 + $0xf8] sm:$0xff] }
  0x22   :  { %201 = vmatpush.msra.mxu1 %v86_v0  ;;  %241 = vmatpush.msra.mxu3 %v87_v1  ;;  %v21_v17 = vmax.f32 %v20_v14, 0.0  ;;  %v121_v35 = vld [vmem:[%s1103_s1 + $0x318] sm:$0xff]  ;;  %v48_v36 = vld [vmem:[%s1103_s1 + $0xd0] sm:$0xff]  ;;  %v375_v14 = vld [vmem:[%s1105_s3 + $0x168] sm:$0xff] }
  0x23   :  { %246 = vmatpush.msrb.mxu0 %v84_v62  ;;  %286 = vmatpush.msrb.mxu2 %v85_v63  ;;  %v116_v37 = vld [vmem:[%s1103_s1 + $0x2f0] sm:$0xff]  ;;  %v49_v38 = vld [vmem:[%s1103_s1 + $0xd8] sm:$0xff] }
  0x24   :  { %266 = vmatpush.msrb.mxu1 %v148_v3  ;;  %306 = vmatpush.msrb.mxu3 %v149_v5  ;;  %161 = vst [vmem:[#allocation1] ss:$2 sm:$0xff] %v21_v17  ;;  %v117_v39 = vld [vmem:[%s1103_s1 + $0x2f8] sm:$0xff]  ;;  %v44_v40 = vld [vmem:[%s1103_s1 + $0xb0] sm:$0xff]  ;;  %v358_v17 = vld [vmem:[%s1105_s3 + $0xe0] sm:$0xff] }
  0x25   :  { %247 = vmatpush.msrb.mxu0 %v80_v2  ;;  %287 = vmatpush.msrb.mxu2 %v81_v4  ;;  %v112_v41 = vld [vmem:[%s1103_s1 + $0x2d0] sm:$0xff]  ;;  %v45_v42 = vld [vmem:[%s1103_s1 + $0xb8] sm:$0xff] }
  0x26   :  { %267 = vmatpush.msrb.mxu1 %v144_v7  ;;  %307 = vmatpush.msrb.mxu3 %v145_v9  ;;  %v113_v43 = vld [vmem:[%s1103_s1 + $0x2d8] sm:$0xff]  ;;  %v40_v44 = vld [vmem:[%s1103_s1 + $0x90] sm:$0xff] }
  0x27   :  { %248 = vmatpush.msrb.mxu0 %v76_v6  ;;  %288 = vmatpush.msrb.mxu2 %v77_v8  ;;  %v108_v45 = vld [vmem:[%s1103_s1 + $0x2b0] sm:$0xff]  ;;  %v41_v46 = vld [vmem:[%s1103_s1 + $0x98] sm:$0xff] }
  0x28   :  { %268 = vmatpush.msrb.mxu1 %v140_v11  ;;  %308 = vmatpush.msrb.mxu3 %v141_v13  ;;  %v109_v47 = vld [vmem:[%s1103_s1 + $0x2b8] sm:$0xff]  ;;  %v36_v49 = vld [vmem:[%s1103_s1 + $0x70] sm:$0xff]  ;;  %v359_v13 = vld [vmem:[%s1105_s3 + $0xe8] sm:$0xff] }
  0x29   :  { %249 = vmatpush.msrb.mxu0 %v72_v10  ;;  %289 = vmatpush.msrb.mxu2 %v73_v12  ;;  %v104_v50 = vld [vmem:[%s1103_s1 + $0x290] sm:$0xff]  ;;  %v37_v51 = vld [vmem:[%s1103_s1 + $0x78] sm:$0xff]  ;;  %v343_v12 = vld [vmem:[%s1105_s3 + $0x68] sm:$0xff] }
  0x2a   :  { %269 = vmatpush.msrb.mxu1 %v136_v16  ;;  %309 = vmatpush.msrb.mxu3 %v137_v19  ;;  %v105_v52 = vld [vmem:[%s1103_s1 + $0x298] sm:$0xff]  ;;  %v32_v54 = vld [vmem:[%s1103_s1 + $0x50] sm:$0xff]  ;;  %v342_v16 = vld [vmem:[%s1105_s3 + $0x60] sm:$0xff] }
  0x2b   :  { %250 = vmatpush.msrb.mxu0 %v68_v15  ;;  %290 = vmatpush.msrb.mxu2 %v69_v18  ;;  %v162_v48 = vld.sshfl [vmem:[#allocation1] sm:$0xff pattern:$0x75316420]  ;;  %v163_v53 = vld.sshfl [vmem:[#allocation1 + $0x8] sm:$0xff pattern:$0x75316420] }
  0x2c   :  { %270 = vmatpush.msrb.mxu1 %v132_v21  ;;  %310 = vmatpush.msrb.mxu3 %v133_v23  ;;  %v100_v55 = vld [vmem:[%s1103_s1 + $0x270] sm:$0xff]  ;;  %v33_v56 = vld [vmem:[%s1103_s1 + $0x58] sm:$0xff]  ;;  %v391_v15 = vld [vmem:[%s1105_s3 + $0x1e8] sm:$0xff] }
  0x2d   :  { %251 = vmatpush.msrb.mxu0 %v64_v20  ;;  %291 = vmatpush.msrb.mxu2 %v65_v22  ;;  %v101_v57 = vld [vmem:[%s1103_s1 + $0x278] sm:$0xff]  ;;  %v28_v58 = vld [vmem:[%s1103_s1 + $0x30] sm:$0xff]  ;;  %v374_v18 = vld [vmem:[%s1105_s3 + $0x160] sm:$0xff] }
  0x2e   :  { %271 = vmatpush.msrb.mxu1 %v128_v25  ;;  %311 = vmatpush.msrb.mxu3 %v129_v27  ;;  %v96_v59 = vld [vmem:[%s1103_s1 + $0x250] sm:$0xff]  ;;  %v29_v60 = vld [vmem:[%s1103_s1 + $0x38] sm:$0xff]  ;;  %v390_v19 = vld [vmem:[%s1105_s3 + $0x1e0] sm:$0xff] }
  0x2f   :  { %252 = vmatpush.msrb.mxu0 %v60_v24  ;;  %292 = vmatpush.msrb.mxu2 %v61_v26  ;;  %v97_v61 = vld [vmem:[%s1103_s1 + $0x258] sm:$0xff]  ;;  %v24_v62 = vld [vmem:[%s1103_s1 + $0x10] sm:$0xff]  ;;  %v339_v27 = vld [vmem:[%s1105_s3 + $0x48] sm:$0xff] }
  0x30   :  { %272 = vmatpush.msrb.mxu1 %v124_v29  ;;  %312 = vmatpush.msrb.mxu3 %v125_v31  ;;  %v92_v63 = vld [vmem:[%s1103_s1 + $0x230] sm:$0xff]  ;;  %v25_v0 = vld [vmem:[%s1103_s1 + $0x18] sm:$0xff]  ;;  %v371_v29 = vld [vmem:[%s1105_s3 + $0x148] sm:$0xff] }
  0x31   :  { %253 = vmatpush.msrb.mxu0 %v56_v28  ;;  %293 = vmatpush.msrb.mxu2 %v57_v30  ;;  %v93_v1 = vld [vmem:[%s1103_s1 + $0x238] sm:$0xff]  ;;  %v88_v2 = vld [vmem:[%s1103_s1 + $0x210] sm:$0xff]  ;;  %v355_v28 = vld [vmem:[%s1105_s3 + $0xc8] sm:$0xff] }
  0x32   :  { %273 = vmatpush.msrb.mxu1 %v120_v33  ;;  %313 = vmatpush.msrb.mxu3 %v121_v35  ;;  %v89_v3 = vld [vmem:[%s1103_s1 + $0x218] sm:$0xff]  ;;  %v344_v8 = vld [vmem:[%s1105_s3 + $0x70] sm:$0xff]  ;;  %v338_v30 = vld [vmem:[%s1105_s3 + $0x40] sm:$0xff] }
  0x33   :  { %254 = vmatpush.msrb.mxu0 %v52_v32  ;;  %294 = vmatpush.msrb.mxu2 %v53_v34  ;;  %v345_v4 = vld [vmem:[%s1105_s3 + $0x78] sm:$0xff]  ;;  %v360_v9 = vld [vmem:[%s1105_s3 + $0xf0] sm:$0xff]  ;;  %v354_v31 = vld [vmem:[%s1105_s3 + $0xc0] sm:$0xff] }
  0x34   :  { %274 = vmatpush.msrb.mxu1 %v116_v37  ;;  %314 = vmatpush.msrb.mxu3 %v117_v39  ;;  %v361_v5 = vld [vmem:[%s1105_s3 + $0xf8] sm:$0xff]  ;;  %v376_v10 = vld [vmem:[%s1105_s3 + $0x170] sm:$0xff]  ;;  %v370_v32 = vld [vmem:[%s1105_s3 + $0x140] sm:$0xff] }
  0x35   :  { %255 = vmatpush.msrb.mxu0 %v48_v36  ;;  %295 = vmatpush.msrb.mxu2 %v49_v38  ;;  %v377_v6 = vld [vmem:[%s1105_s3 + $0x178] sm:$0xff]  ;;  %v392_v11 = vld [vmem:[%s1105_s3 + $0x1f0] sm:$0xff]  ;;  %v335_v36 = vld [vmem:[%s1105_s3 + $0x28] sm:$0xff] }
  0x36   :  { %275 = vmatpush.msrb.mxu1 %v112_v41  ;;  %315 = vmatpush.msrb.mxu3 %v113_v43  ;;  %v393_v7 = vld [vmem:[%s1105_s3 + $0x1f8] sm:$0xff]  ;;  %v340_v24 = vld [vmem:[%s1105_s3 + $0x50] sm:$0xff]  ;;  %v351_v41 = vld [vmem:[%s1105_s3 + $0xa8] sm:$0xff] }
  0x37   :  { %256 = vmatpush.msrb.mxu0 %v44_v40  ;;  %296 = vmatpush.msrb.mxu2 %v45_v42  ;;  %v341_v20 = vld [vmem:[%s1105_s3 + $0x58] sm:$0xff]  ;;  %v356_v25 = vld [vmem:[%s1105_s3 + $0xd0] sm:$0xff]  ;;  %v334_v40 = vld [vmem:[%s1105_s3 + $0x20] sm:$0xff] }
  0x38   :  { %276 = vmatpush.msrb.mxu1 %v108_v45  ;;  %316 = vmatpush.msrb.mxu3 %v109_v47  ;;  %v357_v21 = vld [vmem:[%s1105_s3 + $0xd8] sm:$0xff]  ;;  %v372_v26 = vld [vmem:[%s1105_s3 + $0x150] sm:$0xff]  ;;  %v387_v43 = vld [vmem:[%s1105_s3 + $0x1c8] sm:$0xff] }
  0x39   :  { %257 = vmatpush.msrb.mxu0 %v40_v44  ;;  %297 = vmatpush.msrb.mxu2 %v41_v46  ;;  %v373_v22 = vld [vmem:[%s1105_s3 + $0x158] sm:$0xff]  ;;  %v336_v35 = vld [vmem:[%s1105_s3 + $0x30] sm:$0xff]  ;;  %v350_v45 = vld [vmem:[%s1105_s3 + $0xa0] sm:$0xff] }
  0x3a   :  { %182 = vmatmul.f32.vlgmr.msra.gmra.mxu0 %v162_v48  ;;  %222 = vmatmul.f32.vlgmr.msra.gmra.mxu2 %v162_v48  ;;  %v389_v23 = vld [vmem:[%s1105_s3 + $0x1d8] sm:$0xff]  ;;  %v352_v37 = vld [vmem:[%s1105_s3 + $0xb0] sm:$0xff]  ;;  %v367_v46 = vld [vmem:[%s1105_s3 + $0x128] sm:$0xff] }
  0x3b   :  { %258 = vmatpush.msrb.mxu0 %v36_v49  ;;  %277 = vmatpush.msrb.mxu1 %v104_v50  ;;  %v337_v33 = vld [vmem:[%s1105_s3 + $0x38] sm:$0xff]  ;;  %v388_v39 = vld [vmem:[%s1105_s3 + $0x1d0] sm:$0xff]  ;;  %v386_v47 = vld [vmem:[%s1105_s3 + $0x1c0] sm:$0xff] }
  0x3c   :  { %298 = vmatpush.msrb.mxu2 %v37_v51  ;;  %317 = vmatpush.msrb.mxu3 %v105_v52  ;;  %v353_v34 = vld [vmem:[%s1105_s3 + $0xb8] sm:$0xff]  ;;  %v368_v42 = vld [vmem:[%s1105_s3 + $0x130] sm:$0xff]  ;;  %v366_v50 = vld [vmem:[%s1105_s3 + $0x120] sm:$0xff] }
  0x3d   :  { %202 = vmatmul.f32.vlgmr.msra.gmra.mxu1 %v163_v53  ;;  %242 = vmatmul.f32.vlgmr.msra.gmra.mxu3 %v163_v53  ;;  %v369_v38 = vld [vmem:[%s1105_s3 + $0x138] sm:$0xff]  ;;  %v331_v52 = vld [vmem:[%s1105_s3 + $0x8] sm:$0xff] }
  0x3e   :  { %259 = vmatpush.msrb.mxu0 %v32_v54  ;;  %278 = vmatpush.msrb.mxu1 %v100_v55  ;;  %v333_v44 = vld [vmem:[%s1105_s3 + $0x18] sm:$0xff]  ;;  %v384_v55 = vld [vmem:[%s1105_s3 + $0x1b0] sm:$0xff] }
  0x3f   :  { %299 = vmatpush.msrb.mxu2 %v33_v56  ;;  %318 = vmatpush.msrb.mxu3 %v101_v57  ;;  %v349_v49 = vld [vmem:[%s1105_s3 + $0x98] sm:$0xff]  ;;  %v330_v56 = vld [vmem:[%s1105_s3] sm:$0xff]  ;;  %v347_v57 = vld [vmem:[%s1105_s3 + $0x88] sm:$0xff] }
  0x40   :  { %260 = vmatpush.msrb.mxu0 %v28_v58  ;;  %279 = vmatpush.msrb.mxu1 %v96_v59  ;;  %v385_v51 = vld [vmem:[%s1105_s3 + $0x1b8] sm:$0xff]  ;;  %v364_v58 = vld [vmem:[%s1105_s3 + $0x110] sm:$0xff]  ;;  %v383_v59 = vld [vmem:[%s1105_s3 + $0x1a8] sm:$0xff] }
  0x41   :  { %300 = vmatpush.msrb.mxu2 %v29_v60  ;;  %319 = vmatpush.msrb.mxu3 %v97_v61  ;;  %v365_v54 = vld [vmem:[%s1105_s3 + $0x118] sm:$0xff]  ;;  %v346_v60 = vld [vmem:[%s1105_s3 + $0x80] sm:$0xff]  ;;  %v363_v61 = vld [vmem:[%s1105_s3 + $0x108] sm:$0xff] }
  0x42   :  { %261 = vmatpush.msrb.mxu0 %v24_v62  ;;  %280 = vmatpush.msrb.mxu1 %v92_v63  ;;  %v382_v62 = vld [vmem:[%s1105_s3 + $0x1a0] sm:$0xff] }
  0x43   :  { %301 = vmatpush.msrb.mxu2 %v25_v0  ;;  %320 = vmatpush.msrb.mxu3 %v93_v1  ;;  %v362_v63 = vld [vmem:[%s1105_s3 + $0x100] sm:$0xff]  ;;  %v381_v0 = vld [vmem:[%s1105_s3 + $0x198] sm:$0xff]  ;;  %v380_v1 = vld [vmem:[%s1105_s3 + $0x190] sm:$0xff] }
  0x44   :  { %262 = vmatmul.f32.vlgmr.msrb.gmra.mxu0 %v162_v48  ;;  %302 = vmatmul.f32.vlgmr.msrb.gmra.mxu2 %v162_v48  ;;  %v332_v48 = vld [vmem:[%s1105_s3 + $0x10] sm:$0xff] }
  0x45   :  { %281 = vmatpush.msrb.mxu1 %v88_v2  ;;  %321 = vmatpush.msrb.mxu3 %v89_v3  ;;  %v379_v2 = vld [vmem:[%s1105_s3 + $0x188] sm:$0xff]  ;;  %v378_v3 = vld [vmem:[%s1105_s3 + $0x180] sm:$0xff] }
  0x46   :  { %282 = vmatmul.f32.vlgmr.msrb.gmra.mxu1 %v163_v53  ;;  %322 = vmatmul.f32.vlgmr.msrb.gmra.mxu3 %v163_v53  ;;  %v348_v53 = vld [vmem:[%s1105_s3 + $0x90] sm:$0xff] }
  0x47   :  { %398 = vmatpush.msra.mxu0 %v345_v4  ;;  %418 = vmatpush.msra.mxu1 %v361_v5  ;;  %v150_v4 = vld [vmem:[%s1107_s2] sm:$0xf] }
  0x48   :  { %438 = vmatpush.msra.mxu2 %v377_v6  ;;  %458 = vmatpush.msra.mxu3 %v393_v7  ;;  %v152_v5 = vperm.slane %v150_v4, 0 }
  0x49   :  { %399 = vmatpush.msra.mxu0 %v344_v8  ;;  %419 = vmatpush.msra.mxu1 %v360_v9  ;;  %v153_v9 = vperm.slane %v150_v4, 1 }
  0x4a   :  { %439 = vmatpush.msra.mxu2 %v376_v10  ;;  %459 = vmatpush.msra.mxu3 %v392_v11 }
  0x4b   :  { %400 = vmatpush.msra.mxu0 %v343_v12  ;;  %420 = vmatpush.msra.mxu1 %v359_v13 }
  0x4c   :  { %440 = vmatpush.msra.mxu2 %v375_v14  ;;  %460 = vmatpush.msra.mxu3 %v391_v15  ;;  %v154_v14 = vperm.slane %v150_v4, 2 }
  0x4d   :  { %401 = vmatpush.msra.mxu0 %v342_v16  ;;  %421 = vmatpush.msra.mxu1 %v358_v17 }
  0x4e   :  { %441 = vmatpush.msra.mxu2 %v374_v18  ;;  %461 = vmatpush.msra.mxu3 %v390_v19 }
  0x4f   :  { %402 = vmatpush.msra.mxu0 %v341_v20  ;;  %422 = vmatpush.msra.mxu1 %v357_v21 }
  0x50   :  { %442 = vmatpush.msra.mxu2 %v373_v22  ;;  %462 = vmatpush.msra.mxu3 %v389_v23  ;;  %v155_v22 = vperm.slane %v150_v4, 3 }
  0x51   :  { %403 = vmatpush.msra.mxu0 %v340_v24  ;;  %423 = vmatpush.msra.mxu1 %v356_v25 }
  0x52   :  { %443 = vmatpush.msra.mxu2 %v372_v26  ;;  %463 = vmatpush.msra.mxu3 %v388_v39 }
  0x53   :  { %404 = vmatpush.msra.mxu0 %v339_v27  ;;  %424 = vmatpush.msra.mxu1 %v355_v28 }
  0x54   :  { %444 = vmatpush.msra.mxu2 %v371_v29  ;;  %464 = vmatpush.msra.mxu3 %v387_v43  ;;  %v484_v29 = vld [vmem:[%s1106_s4] ss:$0 sm:$0xff] }
  0x55   :  { %405 = vmatpush.msra.mxu0 %v338_v30  ;;  %425 = vmatpush.msra.mxu1 %v354_v31 }
  0x56   :  { %445 = vmatpush.msra.mxu2 %v370_v32  ;;  %465 = vmatpush.msra.mxu3 %v386_v47 }
  0x57   :  { %406 = vmatpush.msra.mxu0 %v337_v33  ;;  %426 = vmatpush.msra.mxu1 %v353_v34 }
  0x58   :  { %446 = vmatpush.msra.mxu2 %v369_v38  ;;  %466 = vmatpush.msra.mxu3 %v385_v51 }
  0x59   :  { %407 = vmatpush.msra.mxu0 %v336_v35  ;;  %427 = vmatpush.msra.mxu1 %v352_v37 }
  0x5a   :  { %447 = vmatpush.msra.mxu2 %v368_v42  ;;  %467 = vmatpush.msra.mxu3 %v384_v55 }
  0x5b   :  { %408 = vmatpush.msra.mxu0 %v335_v36  ;;  %428 = vmatpush.msra.mxu1 %v351_v41 }
  0x5c   :  { %448 = vmatpush.msra.mxu2 %v367_v46  ;;  %468 = vmatpush.msra.mxu3 %v383_v59 }
  0x5d   :  { %409 = vmatpush.msra.mxu0 %v334_v40  ;;  %429 = vmatpush.msra.mxu1 %v350_v45 }
  0x5e   :  { %449 = vmatpush.msra.mxu2 %v366_v50  ;;  %469 = vmatpush.msra.mxu3 %v382_v62 }
  0x5f   :  { %410 = vmatpush.msra.mxu0 %v333_v44  ;;  %430 = vmatpush.msra.mxu1 %v349_v49 }
  0x60   :  { %450 = vmatpush.msra.mxu2 %v365_v54  ;;  %470 = vmatpush.msra.mxu3 %v381_v0 }
  0x61   :  { %411 = vmatpush.msra.mxu0 %v332_v48  ;;  %431 = vmatpush.msra.mxu1 %v348_v53 }
  0x62   :  { %451 = vmatpush.msra.mxu2 %v364_v58  ;;  %471 = vmatpush.msra.mxu3 %v380_v1 }
  0x63   :  { %412 = vmatpush.msra.mxu0 %v331_v52  ;;  %432 = vmatpush.msra.mxu1 %v347_v57 }
  0x64   :  { %452 = vmatpush.msra.mxu2 %v363_v61  ;;  %472 = vmatpush.msra.mxu3 %v379_v2 }
  0x65   :  { %413 = vmatpush.msra.mxu0 %v330_v56  ;;  %433 = vmatpush.msra.mxu1 %v346_v60 }
  0x66   :  { %453 = vmatpush.msra.mxu2 %v362_v63  ;;  %473 = vmatpush.msra.mxu3 %v378_v3 }
  0xb7   :  { %v183_v6 = vpop.f32.mrf.mxu0 }
  0xb8   :  { %v184_v7 = vadd.f32 %v183_v6, %v152_v5 }
  0xba   :  { %v203_v8 = vpop.f32.mrf.mxu1 }
  0xbb   :  { %v204_v10 = vadd.f32 %v203_v8, %v184_v7 }
  0xbd   :  { %v326_v11 = vmax.f32 %v204_v10, 0.0  ;;  %v223_v12 = vpop.f32.mrf.mxu2 }
  0xbe   :  { %v224_v13 = vadd.f32 %v223_v12, %v153_v9 }
  0xbf   :  { %414 = vmatmul.f32.vlgmr.msra.gmra.mxu0 %v326_v11 }
  0xc0   :  { %v243_v15 = vpop.f32.mrf.mxu3 }
  0xc1   :  { %v244_v16 = vadd.f32 %v243_v15, %v224_v13  ;;  %v263_v17 = vpop.f32.mrf.mxu0 }
  0xc2   :  { %v264_v18 = vadd.f32 %v263_v17, %v154_v14 }
  0xc3   :  { %v327_v19 = vmax.f32 %v244_v16, 0.0  ;;  %v283_v20 = vpop.f32.mrf.mxu1 }
  0xc4   :  { %v284_v21 = vadd.f32 %v283_v20, %v264_v18 }
  0xc5   :  { %434 = vmatmul.f32.vlgmr.msra.gmra.mxu1 %v327_v19 }
  0xc6   :  { %v328_v23 = vmax.f32 %v284_v21, 0.0 }
  0xc7   :  { %v303_v24 = vpop.f32.mrf.mxu2 }
  0xc8   :  { %v304_v25 = vadd.f32 %v303_v24, %v155_v22  ;;  %454 = vmatmul.f32.vlgmr.msra.gmra.mxu2 %v328_v23 }
  0xc9   :  { %v323_v26 = vpop.f32.mrf.mxu3 }
  0xca   :  { %v324_v27 = vadd.f32 %v323_v26, %v304_v25 }
  0xcc   :  { %v329_v28 = vmax.f32 %v324_v27, 0.0 }
  0xce   :  { %474 = vmatmul.f32.vlgmr.msra.gmra.mxu3 %v329_v28 }
 0x13c   :  { %v415_v30 = vpop.f32.mrf.mxu0 }
 0x13d   :  { %v416_v31 = vadd.f32 %v484_v29, %v415_v30 }
 0x142   :  { %v435_v32 = vpop.f32.mrf.mxu1 }
 0x143   :  { %v436_v34 = vadd.f32 %v435_v32, %v416_v31 }
 0x14b   :  { %v455_v33 = vpop.f32.mrf.mxu2 }
 0x14c   :  { %v456_v35 = vadd.f32 %v455_v33, %v436_v34 }
 0x151   :  { %v475_v36 = vpop.f32.mrf.mxu3 }
 0x152   :  { %v476_v37 = vadd.f32 %v475_v36, %v456_v35 }
 0x154   :  { %479 = vst.msk [vmem:[%s1108_s5] sm:$0xf] %vm478_vm0, %v476_v37 }

</bundles_post_ra>
